<compile_context>
chip_gen: v5e
topology: v5e:2x2
jax: 0.10.0
libtpu: 0.0.40
codegen_flags: <defaults>
</compile_context>

<pallas_src>
import jax
import jax.numpy as jnp
import numpy as np
from jax.experimental import pallas as pl
from jax.experimental.pallas import tpu as pltpu


# ---------------------------------------------------------------------------
# The fused kernel: one grid step == BT images, everything VMEM resident
# ---------------------------------------------------------------------------
def _lenet5_fused_kernel(x_ref, eps_ref,
                         a1_ref, b1_ref, sc1_ref,
                         a2_ref, b2_ref, sc2_ref,
                         a3_ref, b3_ref, sel3_ref,
                         wmu_ref, bmu_ref, wvar_ref, bvar_ref,
                         w1_ref, bc1_ref, w2_ref, bc2_ref,
                         out_ref,
                         p1_ref, p2_ref):
    f32, bf16 = jnp.float32, jnp.bfloat16
    rows = x_ref.shape[1]          # BT * 8 (8 rows per image in every phase slab)
    m1 = rows - 1                  # conv1 / pool1 slab height
    m2 = rows - 3                  # conv2 / pool2 slab height
    m3 = rows - 7                  # conv3 (feature) slab height

    def pool_cols(r, sc_ref):
        """Horizontal 2x max-pool on the (rows, W*C) layout via two exact 0/1
        column-selection matmuls (bf16 MXU, f32 accumulate) + elementwise max."""
        rb = r.astype(bf16)
        return jnp.maximum(
            jnp.dot(rb, sc_ref[0], preferred_element_type=f32),
            jnp.dot(rb, sc_ref[1], preferred_element_type=f32))

    # ---- conv1 (5x5, cin->6) + ReLU, computed as 4 row-phase slabs ----------
    # Phase q slab row 8b+t holds conv1 output row 4t+q of image b.
    def conv1_phase(q):
        acc = b1_ref[...]
        for di in range(5):
            p, j = (q + di) % 4, (q + di) // 4
            acc = acc + jnp.dot(x_ref[p, j:j + m1, :], a1_ref[di],
                                preferred_element_type=f32)
        return jnp.maximum(acc, 0.0)

    # ---- maxpool1: vertical max == elementwise max of phase pairs ----------
    p1_ref[0] = pool_cols(jnp.maximum(conv1_phase(0), conv1_phase(1)),
                          sc1_ref).astype(bf16)
    p1_ref[1] = pool_cols(jnp.maximum(conv1_phase(2), conv1_phase(3)),
                          sc1_ref).astype(bf16)
    # p1_ref[ph][8b + v] == pooled conv1 map of image b, row 2v + ph   (14x14x6)

    # ---- conv2 (5x5, 6->16) + ReLU, even/odd output-row slabs ---------------
    def conv2_phase(par):
        acc = b2_ref[...]
        for di in range(5):
            ph, j = (par + di) % 2, (par + di) // 2
            acc = acc + jnp.dot(p1_ref[ph, j:j + m2, :], a2_ref[di],
                                preferred_element_type=f32)
        return jnp.maximum(acc, 0.0)

    # ---- maxpool2 -----------------------------------------------------------
    p2_ref[...] = pool_cols(jnp.maximum(conv2_phase(0), conv2_phase(1)),
                            sc2_ref).astype(bf16)
    # p2_ref[8b + u] == pooled conv2 map of image b, row u             (5x5x16)

    # ---- conv3 (5x5, 16->120) + ReLU -> one 120-feature row per image -------
    acc = b3_ref[...]
    for di in range(5):
        acc = acc + jnp.dot(p2_ref[di:di + m3, :], a3_ref[di],
                            preferred_element_type=f32)
    feat_slab = jnp.maximum(acc, 0.0).astype(bf16)           # (m3, 120)
    # Only slab rows 8b are real features; compact with a 0/1 row-pick matmul.
    fb = jnp.dot(sel3_ref[...], feat_slab,
                 preferred_element_type=f32).astype(bf16)     # (BT, 120)

    # ---- fc_mu / fc_var / reparameterize / classifier -----------------------
    mu = jnp.dot(fb, wmu_ref[...], preferred_element_type=f32) + bmu_ref[...]
    log_var = jnp.dot(fb, wvar_ref[...], preferred_element_type=f32) + bvar_ref[...]
    std = jnp.exp(0.5 * log_var)                  # log_var.mul(0.5).exp_()
    z = eps_ref[:, 0, :] * std + mu               # eps.mul(std).add_(mu)
    h = jnp.maximum(jnp.dot(z.astype(bf16), w1_ref[...],
                            preferred_element_type=f32) + bc1_ref[...], 0.0)
    out_ref[:, 0, :] = (jnp.dot(h.astype(bf16), w2_ref[...],
                                preferred_element_type=f32) + bc2_ref[...])


# ---------------------------------------------------------------------------
# One-time host-side weight repack (pure numpy, outside jit)
# ---------------------------------------------------------------------------
def _toeplitz_rows(w_hwio, w_in, w_out):
    """(KH,KW,Cin,Cout) HWIO conv weight -> (KH, w_in*Cin, w_out*Cout)
    block-Toeplitz matrices for the flattened (H, W*C) activation layout."""
    kh, kw, cin, cout = w_hwio.shape
    w_np = np.asarray(w_hwio, np.float32)
    a = np.zeros((kh, w_in * cin, w_out * cout), np.float32)
    for di in range(kh):
        for dj in range(kw):
            sel = np.zeros((w_in, w_out), np.float32)
            sel[np.arange(w_out) + dj, np.arange(w_out)] = 1.0
            a[di] += np.kron(sel, w_np[di, dj])
    return jnp.asarray(a, dtype=jnp.bfloat16)


def _pool_col_selector(w_in, c):
    """0/1 selection matrices implementing the horizontal half of a 2x2
    stride-2 max-pool on the (H, W*C) channel-fastest layout."""
    w_out = w_in // 2
    cols = np.zeros((2, w_in, w_out), np.float32)
    cols[0, 2 * np.arange(w_out), np.arange(w_out)] = 1.0
    cols[1, 2 * np.arange(w_out) + 1, np.arange(w_out)] = 1.0
    cols = np.kron(cols, np.eye(c, dtype=np.float32))   # (2, w_in*c, w_out*c)
    return jnp.asarray(cols, dtype=jnp.bfloat16)


def _feature_row_selector(bt):
    """Picks slab row 8b (the valid conv3 output) for each of the bt images."""
    m3 = 8 * bt - 7
    sel = np.zeros((bt, m3), np.float32)
    sel[np.arange(bt), 8 * np.arange(bt)] = 1.0
    return jnp.asarray(sel, dtype=jnp.bfloat16)


def prepare_fused_params(params, block_batch):
    """Repack PyTorch-layout weights for the fused kernel (done once)."""
    bt = int(block_batch)
    w2p = np.zeros((84, 128), np.float32)                 # lane-dense classifier
    w2p[:, :10] = np.asarray(params['w2'], np.float32)
    bc2p = np.zeros((1, 128), np.float32)
    bc2p[0, :10] = np.asarray(params['b2'], np.float32)
    return {
        'a1': _toeplitz_rows(params['conv1_w'], 32, 28),
        'b1': jnp.tile(params['conv1_b'], 28).reshape(1, 28 * 6),
        'sc1': _pool_col_selector(28, 6),
        'a2': _toeplitz_rows(params['conv2_w'], 14, 10),
        'b2': jnp.tile(params['conv2_b'], 10).reshape(1, 10 * 16),
        'sc2': _pool_col_selector(10, 16),
        'a3': _toeplitz_rows(params['conv3_w'], 5, 1),
        'b3': params['conv3_b'].reshape(1, 120),
        'sel3': _feature_row_selector(bt),
        'wmu': params['wmu'].astype(jnp.bfloat16),
        'bmu': params['bmu'].reshape(1, 20),
        'wvar': params['wvar'].astype(jnp.bfloat16),
        'bvar': params['bvar'].reshape(1, 20),
        'w1': params['w1'].astype(jnp.bfloat16),
        'bc1': params['b1'].reshape(1, 84),
        'w2': jnp.asarray(w2p, dtype=jnp.bfloat16),
        'bc2': jnp.asarray(bc2p),
    }


# ---------------------------------------------------------------------------
# Forward wrapper: one pallas_call for the whole network
# ---------------------------------------------------------------------------
def lenet5_forward(fused, img_nchw, eps):
    """LeNet5_ forward (out_feature=False path): returns (B, 10) logits."""
    B, cin, H, W = img_nchw.shape
    assert (H, W) == (32, 32), "feature.view(-1, 120) requires 32x32 input"
    bt = fused['sel3'].shape[0]                 # images per grid step (static)
    bp = pl.cdiv(B, bt) * bt
    pad = bp - B
    m1, m2 = 8 * bt - 1, 8 * bt - 3

    # NCHW -> (B, H, W*Cin) channel-fastest rows, pad batch to a multiple of bt.
    x = jnp.transpose(img_nchw, (0, 2, 3, 1)).reshape(B, 32, 32 * cin)
    if pad:
        x = jnp.pad(x, ((0, pad), (0, 0), (0, 0)))
        eps = jnp.pad(eps, ((0, pad), (0, 0)))
    # Row-phase reorder: phase slab p, row 8b+t  ==  image b, row 4t+p.
    x = (x.reshape(bp, 8, 4, 32 * cin).transpose(2, 0, 1, 3)
          .reshape(4, bp * 8, 32 * cin).astype(jnp.bfloat16))
    eps3 = eps.reshape(bp, 1, 20).astype(jnp.float32)

    def full(arr):  # whole-array weight block, resident across the grid
        return pl.BlockSpec(arr.shape, lambda g: (0,) * arr.ndim)

    grid_spec = pltpu.PrefetchScalarGridSpec(
        num_scalar_prefetch=0,
        grid=(bp // bt,),
        in_specs=[
            pl.BlockSpec((4, bt * 8, 32 * cin), lambda g: (0, g, 0)),  # image
            pl.BlockSpec((bt, 1, 20), lambda g: (g, 0, 0)),            # eps
            full(fused['a1']), full(fused['b1']), full(fused['sc1']),
            full(fused['a2']), full(fused['b2']), full(fused['sc2']),
            full(fused['a3']), full(fused['b3']), full(fused['sel3']),
            full(fused['wmu']), full(fused['bmu']),
            full(fused['wvar']), full(fused['bvar']),
            full(fused['w1']), full(fused['bc1']),
            full(fused['w2']), full(fused['bc2']),
        ],
        out_specs=pl.BlockSpec((bt, 1, 128), lambda g: (g, 0, 0)),
        scratch_shapes=[
            pltpu.VMEM((2, m1, 14 * 6), jnp.bfloat16),   # pooled conv1 phases
            pltpu.VMEM((m2, 5 * 16), jnp.bfloat16),      # pooled conv2 map
        ],
    )

    out = pl.pallas_call(
        _lenet5_fused_kernel,
        out_shape=jax.ShapeDtypeStruct((bp, 1, 128), jnp.float32),
        grid_spec=grid_spec,
        compiler_params=pltpu.CompilerParams(
            dimension_semantics=("parallel",)),   # v7x: steps over both TCs
    )(x, eps3,
      fused['a1'], fused['b1'], fused['sc1'],
      fused['a2'], fused['b2'], fused['sc2'],
      fused['a3'], fused['b3'], fused['sel3'],
      fused['wmu'], fused['bmu'], fused['wvar'], fused['bvar'],
      fused['w1'], fused['bc1'], fused['w2'], fused['bc2'])
    return out[:B, 0, :10]


# ---------------------------------------------------------------------------
# Parameters + pure-JAX reference (for the numerical sanity check)
# ---------------------------------------------------------------------------
def init_params(key, in_channels):
    ks = jax.random.split(key, 14)

    def w(k, shape, scale):
        return (scale * jax.random.normal(k, shape)).astype(jnp.float32)

    # Conv weights stored HWIO (== PyTorch OIHW transposed);
    # Linear weights stored (in, out) (== PyTorch (out, in) transposed).
    return {
        'conv1_w': w(ks[0], (5, 5, in_channels, 6), 0.1),
        'conv1_b': w(ks[1], (6,), 0.1),
        'conv2_w': w(ks[2], (5, 5, 6, 16), 0.05),
        'conv2_b': w(ks[3], (16,), 0.05),
        'conv3_w': w(ks[4], (5, 5, 16, 120), 0.05),
        'conv3_b': w(ks[5], (120,), 0.05),
        'wmu': w(ks[6], (120, 20), 0.05), 'bmu': w(ks[7], (20,), 0.05),
        'wvar': w(ks[8], (120, 20), 0.05), 'bvar': w(ks[9], (20,), 0.05),
        'w1': w(ks[10], (20, 84), 0.1), 'b1': w(ks[11], (84,), 0.1),
        'w2': w(ks[12], (84, 10), 0.1), 'b2': w(ks[13], (10,), 0.1),
    }


def reference_forward(params, img_nchw, eps):
    x = jnp.transpose(img_nchw, (0, 2, 3, 1)).astype(jnp.float32)

    def conv(x, w, b):
        y = jax.lax.conv_general_dilated(
            x, w, (1, 1), 'VALID',
            dimension_numbers=('NHWC', 'HWIO', 'NHWC'))
        return jnp.maximum(y + b.reshape(1, 1, 1, -1), 0.0)

    def pool(y):
        return jnp.maximum(
            jnp.maximum(y[:, 0::2, 0::2, :], y[:, 0::2, 1::2, :]),
            jnp.maximum(y[:, 1::2, 0::2, :], y[:, 1::2, 1::2, :]))

    y = pool(conv(x, params['conv1_w'], params['conv1_b']))
    y = pool(conv(y, params['conv2_w'], params['conv2_b']))
    y = conv(y, params['conv3_w'], params['conv3_b'])
    f = y.reshape(-1, 120)
    mu = f @ params['wmu'] + params['bmu']
    log_var = f @ params['wvar'] + params['bvar']
    z = eps * jnp.exp(0.5 * log_var) + mu
    h = jnp.maximum(z @ params['w1'] + params['b1'], 0.0)
    return h @ params['w2'] + params['b2']


if __name__ == "__main__":
    # 32x32 spatial is required by the architecture (conv stack -> 1x1x120).
    B, IN_CH, H, W = 6, 1, 32, 32
    BT = 4   # images per grid step (use 16-64 in production; keep >=2 steps on v7x)

    key = jax.random.PRNGKey(0)
    k_params, k_img, k_eps = jax.random.split(key, 3)

    params = init_params(k_params, IN_CH)
    img = jax.random.normal(k_img, (B, IN_CH, H, W), dtype=jnp.float32)
    # TODO(synk): torch.FloatTensor(...).normal_() randomness is reproduced with
    # a deterministic jax.random draw (generated outside the kernel, consumed inside).
    eps = jax.random.normal(k_eps, (B, 20), dtype=jnp.float32)

    fused = prepare_fused_params(params, block_batch=BT)   # one-time repack
    out = jax.jit(lenet5_forward)(fused, img, eps)
    out = jax.block_until_ready(out)
    assert out.shape == (B, 10)

    ref = reference_forward(params, img, eps)
    np.testing.assert_allclose(np.asarray(out), np.asarray(ref),
                               rtol=5e-2, atol=5e-2)

    print("KERNEL_OK")
</pallas_src>

<mosaic_0001>
module attributes {stable_mosaic.version = 11 : i64} {
  func.func @_lenet5_fused_kernel(%arg0: i32, %arg1: memref<4x32x32xbf16, #tpu.memory_space<vmem>>, %arg2: memref<4x1x20xf32, #tpu.memory_space<vmem>>, %arg3: memref<5x32x168xbf16, #tpu.memory_space<vmem>>, %arg4: memref<1x168xf32, #tpu.memory_space<vmem>>, %arg5: memref<2x168x84xbf16, #tpu.memory_space<vmem>>, %arg6: memref<5x84x160xbf16, #tpu.memory_space<vmem>>, %arg7: memref<1x160xf32, #tpu.memory_space<vmem>>, %arg8: memref<2x160x80xbf16, #tpu.memory_space<vmem>>, %arg9: memref<5x80x120xbf16, #tpu.memory_space<vmem>>, %arg10: memref<1x120xf32, #tpu.memory_space<vmem>>, %arg11: memref<4x25xbf16, #tpu.memory_space<vmem>>, %arg12: memref<120x20xbf16, #tpu.memory_space<vmem>>, %arg13: memref<1x20xf32, #tpu.memory_space<vmem>>, %arg14: memref<120x20xbf16, #tpu.memory_space<vmem>>, %arg15: memref<1x20xf32, #tpu.memory_space<vmem>>, %arg16: memref<20x84xbf16, #tpu.memory_space<vmem>>, %arg17: memref<1x84xf32, #tpu.memory_space<vmem>>, %arg18: memref<84x128xbf16, #tpu.memory_space<vmem>>, %arg19: memref<1x128xf32, #tpu.memory_space<vmem>>, %arg20: memref<4x1x128xf32, #tpu.memory_space<vmem>>, %arg21: memref<2x31x84xbf16, #tpu.memory_space<vmem>>, %arg22: memref<29x80xbf16, #tpu.memory_space<vmem>>) attributes {dimension_semantics = [#tpu.dimension_semantics<parallel>], iteration_bounds = array<i64: 2>, scalar_prefetch = 0 : i64, scratch_operands = 2 : i64, tpu.core_type = #tpu.core_type<tc>, window_params = [{transform_indices = @transform_0, window_bounds = array<i64: 4, 32, 32>}, {transform_indices = @transform_1, window_bounds = array<i64: 4, 1, 20>}, {pipeline_mode = #tpu.pipeline_mode<synchronous>, transform_indices = @transform_2, window_bounds = array<i64: 5, 32, 168>}, {pipeline_mode = #tpu.pipeline_mode<synchronous>, transform_indices = @transform_3, window_bounds = array<i64: 1, 168>}, {pipeline_mode = #tpu.pipeline_mode<synchronous>, transform_indices = @transform_4, window_bounds = array<i64: 2, 168, 84>}, {pipeline_mode = #tpu.pipeline_mode<synchronous>, transform_indices = @transform_5, window_bounds = array<i64: 5, 84, 160>}, {pipeline_mode = #tpu.pipeline_mode<synchronous>, transform_indices = @transform_6, window_bounds = array<i64: 1, 160>}, {pipeline_mode = #tpu.pipeline_mode<synchronous>, transform_indices = @transform_7, window_bounds = array<i64: 2, 160, 80>}, {pipeline_mode = #tpu.pipeline_mode<synchronous>, transform_indices = @transform_8, window_bounds = array<i64: 5, 80, 120>}, {pipeline_mode = #tpu.pipeline_mode<synchronous>, transform_indices = @transform_9, window_bounds = array<i64: 1, 120>}, {pipeline_mode = #tpu.pipeline_mode<synchronous>, transform_indices = @transform_10, window_bounds = array<i64: 4, 25>}, {pipeline_mode = #tpu.pipeline_mode<synchronous>, transform_indices = @transform_11, window_bounds = array<i64: 120, 20>}, {pipeline_mode = #tpu.pipeline_mode<synchronous>, transform_indices = @transform_12, window_bounds = array<i64: 1, 20>}, {pipeline_mode = #tpu.pipeline_mode<synchronous>, transform_indices = @transform_13, window_bounds = array<i64: 120, 20>}, {pipeline_mode = #tpu.pipeline_mode<synchronous>, transform_indices = @transform_14, window_bounds = array<i64: 1, 20>}, {pipeline_mode = #tpu.pipeline_mode<synchronous>, transform_indices = @transform_15, window_bounds = array<i64: 20, 84>}, {pipeline_mode = #tpu.pipeline_mode<synchronous>, transform_indices = @transform_16, window_bounds = array<i64: 1, 84>}, {pipeline_mode = #tpu.pipeline_mode<synchronous>, transform_indices = @transform_17, window_bounds = array<i64: 84, 128>}, {pipeline_mode = #tpu.pipeline_mode<synchronous>, transform_indices = @transform_18, window_bounds = array<i64: 1, 128>}, {transform_indices = @transform_19, window_bounds = array<i64: 4, 1, 128>}]} {
    %c0 = arith.constant 0 : index
    %c0_0 = arith.constant 0 : index
    %0 = vector.load %arg4[%c0, %c0_0] : memref<1x168xf32, #tpu.memory_space<vmem>>, vector<1x168xf32>
    %c0_1 = arith.constant 0 : index
    %c0_2 = arith.constant 0 : index
    %c0_3 = arith.constant 0 : index
    %1 = vector.load %arg1[%c0_1, %c0_2, %c0_3] : memref<4x32x32xbf16, #tpu.memory_space<vmem>>, vector<1x31x32xbf16>
    %2 = vector.shape_cast %1 : vector<1x31x32xbf16> to vector<31x32xbf16>
    %c0_4 = arith.constant 0 : index
    %c0_5 = arith.constant 0 : index
    %c0_6 = arith.constant 0 : index
    %3 = vector.load %arg3[%c0_4, %c0_5, %c0_6] : memref<5x32x168xbf16, #tpu.memory_space<vmem>>, vector<1x32x168xbf16>
    %4 = vector.shape_cast %3 : vector<1x32x168xbf16> to vector<32x168xbf16>
    %cst = arith.constant dense<0.000000e+00> : vector<31x168xf32>
    %5 = tpu.matmul %2, %4, %cst {dimension_numbers = #tpu.dot_dimension_numbers<[1], [0], [0], [1], [0, 0, 1, 1], [], []>} : vector<31x32xbf16>, vector<32x168xbf16>, vector<31x168xf32> -> vector<31x168xf32>
    %6 = vector.broadcast %0 : vector<1x168xf32> to vector<31x168xf32>
    %7 = arith.addf %6, %5 : vector<31x168xf32>
    %c1 = arith.constant 1 : index
    %c0_7 = arith.constant 0 : index
    %c0_8 = arith.constant 0 : index
    %8 = vector.load %arg1[%c1, %c0_7, %c0_8] : memref<4x32x32xbf16, #tpu.memory_space<vmem>>, vector<1x31x32xbf16>
    %9 = vector.shape_cast %8 : vector<1x31x32xbf16> to vector<31x32xbf16>
    %c1_9 = arith.constant 1 : index
    %c0_10 = arith.constant 0 : index
    %c0_11 = arith.constant 0 : index
    %10 = vector.load %arg3[%c1_9, %c0_10, %c0_11] : memref<5x32x168xbf16, #tpu.memory_space<vmem>>, vector<1x32x168xbf16>
    %11 = vector.shape_cast %10 : vector<1x32x168xbf16> to vector<32x168xbf16>
    %cst_12 = arith.constant dense<0.000000e+00> : vector<31x168xf32>
    %12 = tpu.matmul %9, %11, %cst_12 {dimension_numbers = #tpu.dot_dimension_numbers<[1], [0], [0], [1], [0, 0, 1, 1], [], []>} : vector<31x32xbf16>, vector<32x168xbf16>, vector<31x168xf32> -> vector<31x168xf32>
    %13 = arith.addf %7, %12 : vector<31x168xf32>
    %c2 = arith.constant 2 : index
    %c0_13 = arith.constant 0 : index
    %c0_14 = arith.constant 0 : index
    %14 = vector.load %arg1[%c2, %c0_13, %c0_14] : memref<4x32x32xbf16, #tpu.memory_space<vmem>>, vector<1x31x32xbf16>
    %15 = vector.shape_cast %14 : vector<1x31x32xbf16> to vector<31x32xbf16>
    %c2_15 = arith.constant 2 : index
    %c0_16 = arith.constant 0 : index
    %c0_17 = arith.constant 0 : index
    %16 = vector.load %arg3[%c2_15, %c0_16, %c0_17] : memref<5x32x168xbf16, #tpu.memory_space<vmem>>, vector<1x32x168xbf16>
    %17 = vector.shape_cast %16 : vector<1x32x168xbf16> to vector<32x168xbf16>
    %cst_18 = arith.constant dense<0.000000e+00> : vector<31x168xf32>
    %18 = tpu.matmul %15, %17, %cst_18 {dimension_numbers = #tpu.dot_dimension_numbers<[1], [0], [0], [1], [0, 0, 1, 1], [], []>} : vector<31x32xbf16>, vector<32x168xbf16>, vector<31x168xf32> -> vector<31x168xf32>
    %19 = arith.addf %13, %18 : vector<31x168xf32>
    %c3 = arith.constant 3 : index
    %c0_19 = arith.constant 0 : index
    %c0_20 = arith.constant 0 : index
    %20 = vector.load %arg1[%c3, %c0_19, %c0_20] : memref<4x32x32xbf16, #tpu.memory_space<vmem>>, vector<1x31x32xbf16>
    %21 = vector.shape_cast %20 : vector<1x31x32xbf16> to vector<31x32xbf16>
    %c3_21 = arith.constant 3 : index
    %c0_22 = arith.constant 0 : index
    %c0_23 = arith.constant 0 : index
    %22 = vector.load %arg3[%c3_21, %c0_22, %c0_23] : memref<5x32x168xbf16, #tpu.memory_space<vmem>>, vector<1x32x168xbf16>
    %23 = vector.shape_cast %22 : vector<1x32x168xbf16> to vector<32x168xbf16>
    %cst_24 = arith.constant dense<0.000000e+00> : vector<31x168xf32>
    %24 = tpu.matmul %21, %23, %cst_24 {dimension_numbers = #tpu.dot_dimension_numbers<[1], [0], [0], [1], [0, 0, 1, 1], [], []>} : vector<31x32xbf16>, vector<32x168xbf16>, vector<31x168xf32> -> vector<31x168xf32>
    %25 = arith.addf %19, %24 : vector<31x168xf32>
    %c0_25 = arith.constant 0 : index
    %c1_26 = arith.constant 1 : index
    %c0_27 = arith.constant 0 : index
    %26 = vector.load %arg1[%c0_25, %c1_26, %c0_27] : memref<4x32x32xbf16, #tpu.memory_space<vmem>>, vector<1x31x32xbf16>
    %27 = vector.shape_cast %26 : vector<1x31x32xbf16> to vector<31x32xbf16>
    %c4 = arith.constant 4 : index
    %c0_28 = arith.constant 0 : index
    %c0_29 = arith.constant 0 : index
    %28 = vector.load %arg3[%c4, %c0_28, %c0_29] : memref<5x32x168xbf16, #tpu.memory_space<vmem>>, vector<1x32x168xbf16>
    %29 = vector.shape_cast %28 : vector<1x32x168xbf16> to vector<32x168xbf16>
    %cst_30 = arith.constant dense<0.000000e+00> : vector<31x168xf32>
    %30 = tpu.matmul %27, %29, %cst_30 {dimension_numbers = #tpu.dot_dimension_numbers<[1], [0], [0], [1], [0, 0, 1, 1], [], []>} : vector<31x32xbf16>, vector<32x168xbf16>, vector<31x168xf32> -> vector<31x168xf32>
    %31 = arith.addf %25, %30 : vector<31x168xf32>
    %cst_31 = arith.constant 0.000000e+00 : f32
    %32 = vector.broadcast %cst_31 : f32 to vector<31x168xf32>
    %33 = arith.maximumf %31, %32 : vector<31x168xf32>
    %c0_32 = arith.constant 0 : index
    %c0_33 = arith.constant 0 : index
    %34 = vector.load %arg4[%c0_32, %c0_33] : memref<1x168xf32, #tpu.memory_space<vmem>>, vector<1x168xf32>
    %c1_34 = arith.constant 1 : index
    %c0_35 = arith.constant 0 : index
    %c0_36 = arith.constant 0 : index
    %35 = vector.load %arg1[%c1_34, %c0_35, %c0_36] : memref<4x32x32xbf16, #tpu.memory_space<vmem>>, vector<1x31x32xbf16>
    %36 = vector.shape_cast %35 : vector<1x31x32xbf16> to vector<31x32xbf16>
    %c0_37 = arith.constant 0 : index
    %c0_38 = arith.constant 0 : index
    %c0_39 = arith.constant 0 : index
    %37 = vector.load %arg3[%c0_37, %c0_38, %c0_39] : memref<5x32x168xbf16, #tpu.memory_space<vmem>>, vector<1x32x168xbf16>
    %38 = vector.shape_cast %37 : vector<1x32x168xbf16> to vector<32x168xbf16>
    %cst_40 = arith.constant dense<0.000000e+00> : vector<31x168xf32>
    %39 = tpu.matmul %36, %38, %cst_40 {dimension_numbers = #tpu.dot_dimension_numbers<[1], [0], [0], [1], [0, 0, 1, 1], [], []>} : vector<31x32xbf16>, vector<32x168xbf16>, vector<31x168xf32> -> vector<31x168xf32>
    %40 = vector.broadcast %34 : vector<1x168xf32> to vector<31x168xf32>
    %41 = arith.addf %40, %39 : vector<31x168xf32>
    %c2_41 = arith.constant 2 : index
    %c0_42 = arith.constant 0 : index
    %c0_43 = arith.constant 0 : index
    %42 = vector.load %arg1[%c2_41, %c0_42, %c0_43] : memref<4x32x32xbf16, #tpu.memory_space<vmem>>, vector<1x31x32xbf16>
    %43 = vector.shape_cast %42 : vector<1x31x32xbf16> to vector<31x32xbf16>
    %c1_44 = arith.constant 1 : index
    %c0_45 = arith.constant 0 : index
    %c0_46 = arith.constant 0 : index
    %44 = vector.load %arg3[%c1_44, %c0_45, %c0_46] : memref<5x32x168xbf16, #tpu.memory_space<vmem>>, vector<1x32x168xbf16>
    %45 = vector.shape_cast %44 : vector<1x32x168xbf16> to vector<32x168xbf16>
    %cst_47 = arith.constant dense<0.000000e+00> : vector<31x168xf32>
    %46 = tpu.matmul %43, %45, %cst_47 {dimension_numbers = #tpu.dot_dimension_numbers<[1], [0], [0], [1], [0, 0, 1, 1], [], []>} : vector<31x32xbf16>, vector<32x168xbf16>, vector<31x168xf32> -> vector<31x168xf32>
    %47 = arith.addf %41, %46 : vector<31x168xf32>
    %c3_48 = arith.constant 3 : index
    %c0_49 = arith.constant 0 : index
    %c0_50 = arith.constant 0 : index
    %48 = vector.load %arg1[%c3_48, %c0_49, %c0_50] : memref<4x32x32xbf16, #tpu.memory_space<vmem>>, vector<1x31x32xbf16>
    %49 = vector.shape_cast %48 : vector<1x31x32xbf16> to vector<31x32xbf16>
    %c2_51 = arith.constant 2 : index
    %c0_52 = arith.constant 0 : index
    %c0_53 = arith.constant 0 : index
    %50 = vector.load %arg3[%c2_51, %c0_52, %c0_53] : memref<5x32x168xbf16, #tpu.memory_space<vmem>>, vector<1x32x168xbf16>
    %51 = vector.shape_cast %50 : vector<1x32x168xbf16> to vector<32x168xbf16>
    %cst_54 = arith.constant dense<0.000000e+00> : vector<31x168xf32>
    %52 = tpu.matmul %49, %51, %cst_54 {dimension_numbers = #tpu.dot_dimension_numbers<[1], [0], [0], [1], [0, 0, 1, 1], [], []>} : vector<31x32xbf16>, vector<32x168xbf16>, vector<31x168xf32> -> vector<31x168xf32>
    %53 = arith.addf %47, %52 : vector<31x168xf32>
    %c0_55 = arith.constant 0 : index
    %c1_56 = arith.constant 1 : index
    %c0_57 = arith.constant 0 : index
    %54 = vector.load %arg1[%c0_55, %c1_56, %c0_57] : memref<4x32x32xbf16, #tpu.memory_space<vmem>>, vector<1x31x32xbf16>
    %55 = vector.shape_cast %54 : vector<1x31x32xbf16> to vector<31x32xbf16>
    %c3_58 = arith.constant 3 : index
    %c0_59 = arith.constant 0 : index
    %c0_60 = arith.constant 0 : index
    %56 = vector.load %arg3[%c3_58, %c0_59, %c0_60] : memref<5x32x168xbf16, #tpu.memory_space<vmem>>, vector<1x32x168xbf16>
    %57 = vector.shape_cast %56 : vector<1x32x168xbf16> to vector<32x168xbf16>
    %cst_61 = arith.constant dense<0.000000e+00> : vector<31x168xf32>
    %58 = tpu.matmul %55, %57, %cst_61 {dimension_numbers = #tpu.dot_dimension_numbers<[1], [0], [0], [1], [0, 0, 1, 1], [], []>} : vector<31x32xbf16>, vector<32x168xbf16>, vector<31x168xf32> -> vector<31x168xf32>
    %59 = arith.addf %53, %58 : vector<31x168xf32>
    %c1_62 = arith.constant 1 : index
    %c1_63 = arith.constant 1 : index
    %c0_64 = arith.constant 0 : index
    %60 = vector.load %arg1[%c1_62, %c1_63, %c0_64] : memref<4x32x32xbf16, #tpu.memory_space<vmem>>, vector<1x31x32xbf16>
    %61 = vector.shape_cast %60 : vector<1x31x32xbf16> to vector<31x32xbf16>
    %c4_65 = arith.constant 4 : index
    %c0_66 = arith.constant 0 : index
    %c0_67 = arith.constant 0 : index
    %62 = vector.load %arg3[%c4_65, %c0_66, %c0_67] : memref<5x32x168xbf16, #tpu.memory_space<vmem>>, vector<1x32x168xbf16>
    %63 = vector.shape_cast %62 : vector<1x32x168xbf16> to vector<32x168xbf16>
    %cst_68 = arith.constant dense<0.000000e+00> : vector<31x168xf32>
    %64 = tpu.matmul %61, %63, %cst_68 {dimension_numbers = #tpu.dot_dimension_numbers<[1], [0], [0], [1], [0, 0, 1, 1], [], []>} : vector<31x32xbf16>, vector<32x168xbf16>, vector<31x168xf32> -> vector<31x168xf32>
    %65 = arith.addf %59, %64 : vector<31x168xf32>
    %cst_69 = arith.constant 0.000000e+00 : f32
    %66 = vector.broadcast %cst_69 : f32 to vector<31x168xf32>
    %67 = arith.maximumf %65, %66 : vector<31x168xf32>
    %68 = arith.maximumf %33, %67 : vector<31x168xf32>
    %69 = arith.truncf %68 : vector<31x168xf32> to vector<31x168xbf16>
    %c0_70 = arith.constant 0 : index
    %c0_71 = arith.constant 0 : index
    %c0_72 = arith.constant 0 : index
    %70 = vector.load %arg5[%c0_70, %c0_71, %c0_72] : memref<2x168x84xbf16, #tpu.memory_space<vmem>>, vector<1x168x84xbf16>
    %71 = vector.shape_cast %70 : vector<1x168x84xbf16> to vector<168x84xbf16>
    %cst_73 = arith.constant dense<0.000000e+00> : vector<31x84xf32>
    %72 = tpu.matmul %69, %71, %cst_73 {dimension_numbers = #tpu.dot_dimension_numbers<[1], [0], [0], [1], [0, 0, 1, 1], [], []>} : vector<31x168xbf16>, vector<168x84xbf16>, vector<31x84xf32> -> vector<31x84xf32>
    %c1_74 = arith.constant 1 : index
    %c0_75 = arith.constant 0 : index
    %c0_76 = arith.constant 0 : index
    %73 = vector.load %arg5[%c1_74, %c0_75, %c0_76] : memref<2x168x84xbf16, #tpu.memory_space<vmem>>, vector<1x168x84xbf16>
    %74 = vector.shape_cast %73 : vector<1x168x84xbf16> to vector<168x84xbf16>
    %cst_77 = arith.constant dense<0.000000e+00> : vector<31x84xf32>
    %75 = tpu.matmul %69, %74, %cst_77 {dimension_numbers = #tpu.dot_dimension_numbers<[1], [0], [0], [1], [0, 0, 1, 1], [], []>} : vector<31x168xbf16>, vector<168x84xbf16>, vector<31x84xf32> -> vector<31x84xf32>
    %76 = arith.maximumf %72, %75 : vector<31x84xf32>
    %77 = arith.truncf %76 : vector<31x84xf32> to vector<31x84xbf16>
    %c0_78 = arith.constant 0 : index
    %c0_79 = arith.constant 0 : index
    %c0_80 = arith.constant 0 : index
    %78 = vector.load %arg21[%c0_78, %c0_79, %c0_80] : memref<2x31x84xbf16, #tpu.memory_space<vmem>>, vector<1x31x84xbf16>
    %79 = vector.shape_cast %78 : vector<1x31x84xbf16> to vector<31x84xbf16>
    %80 = vector.shape_cast %77 : vector<31x84xbf16> to vector<1x31x84xbf16>
    tpu.vector_store %arg21[%c0_78, %c0_79, %c0_80], %80 {strides = array<i32>} : memref<2x31x84xbf16, #tpu.memory_space<vmem>>, vector<1x31x84xbf16>,
    %c0_81 = arith.constant 0 : index
    %c0_82 = arith.constant 0 : index
    %81 = vector.load %arg4[%c0_81, %c0_82] : memref<1x168xf32, #tpu.memory_space<vmem>>, vector<1x168xf32>
    %c2_83 = arith.constant 2 : index
    %c0_84 = arith.constant 0 : index
    %c0_85 = arith.constant 0 : index
    %82 = vector.load %arg1[%c2_83, %c0_84, %c0_85] : memref<4x32x32xbf16, #tpu.memory_space<vmem>>, vector<1x31x32xbf16>
    %83 = vector.shape_cast %82 : vector<1x31x32xbf16> to vector<31x32xbf16>
    %c0_86 = arith.constant 0 : index
    %c0_87 = arith.constant 0 : index
    %c0_88 = arith.constant 0 : index
    %84 = vector.load %arg3[%c0_86, %c0_87, %c0_88] : memref<5x32x168xbf16, #tpu.memory_space<vmem>>, vector<1x32x168xbf16>
    %85 = vector.shape_cast %84 : vector<1x32x168xbf16> to vector<32x168xbf16>
    %cst_89 = arith.constant dense<0.000000e+00> : vector<31x168xf32>
    %86 = tpu.matmul %83, %85, %cst_89 {dimension_numbers = #tpu.dot_dimension_numbers<[1], [0], [0], [1], [0, 0, 1, 1], [], []>} : vector<31x32xbf16>, vector<32x168xbf16>, vector<31x168xf32> -> vector<31x168xf32>
    %87 = vector.broadcast %81 : vector<1x168xf32> to vector<31x168xf32>
    %88 = arith.addf %87, %86 : vector<31x168xf32>
    %c3_90 = arith.constant 3 : index
    %c0_91 = arith.constant 0 : index
    %c0_92 = arith.constant 0 : index
    %89 = vector.load %arg1[%c3_90, %c0_91, %c0_92] : memref<4x32x32xbf16, #tpu.memory_space<vmem>>, vector<1x31x32xbf16>
    %90 = vector.shape_cast %89 : vector<1x31x32xbf16> to vector<31x32xbf16>
    %c1_93 = arith.constant 1 : index
    %c0_94 = arith.constant 0 : index
    %c0_95 = arith.constant 0 : index
    %91 = vector.load %arg3[%c1_93, %c0_94, %c0_95] : memref<5x32x168xbf16, #tpu.memory_space<vmem>>, vector<1x32x168xbf16>
    %92 = vector.shape_cast %91 : vector<1x32x168xbf16> to vector<32x168xbf16>
    %cst_96 = arith.constant dense<0.000000e+00> : vector<31x168xf32>
    %93 = tpu.matmul %90, %92, %cst_96 {dimension_numbers = #tpu.dot_dimension_numbers<[1], [0], [0], [1], [0, 0, 1, 1], [], []>} : vector<31x32xbf16>, vector<32x168xbf16>, vector<31x168xf32> -> vector<31x168xf32>
    %94 = arith.addf %88, %93 : vector<31x168xf32>
    %c0_97 = arith.constant 0 : index
    %c1_98 = arith.constant 1 : index
    %c0_99 = arith.constant 0 : index
    %95 = vector.load %arg1[%c0_97, %c1_98, %c0_99] : memref<4x32x32xbf16, #tpu.memory_space<vmem>>, vector<1x31x32xbf16>
    %96 = vector.shape_cast %95 : vector<1x31x32xbf16> to vector<31x32xbf16>
    %c2_100 = arith.constant 2 : index
    %c0_101 = arith.constant 0 : index
    %c0_102 = arith.constant 0 : index
    %97 = vector.load %arg3[%c2_100, %c0_101, %c0_102] : memref<5x32x168xbf16, #tpu.memory_space<vmem>>, vector<1x32x168xbf16>
    %98 = vector.shape_cast %97 : vector<1x32x168xbf16> to vector<32x168xbf16>
    %cst_103 = arith.constant dense<0.000000e+00> : vector<31x168xf32>
    %99 = tpu.matmul %96, %98, %cst_103 {dimension_numbers = #tpu.dot_dimension_numbers<[1], [0], [0], [1], [0, 0, 1, 1], [], []>} : vector<31x32xbf16>, vector<32x168xbf16>, vector<31x168xf32> -> vector<31x168xf32>
    %100 = arith.addf %94, %99 : vector<31x168xf32>
    %c1_104 = arith.constant 1 : index
    %c1_105 = arith.constant 1 : index
    %c0_106 = arith.constant 0 : index
    %101 = vector.load %arg1[%c1_104, %c1_105, %c0_106] : memref<4x32x32xbf16, #tpu.memory_space<vmem>>, vector<1x31x32xbf16>
    %102 = vector.shape_cast %101 : vector<1x31x32xbf16> to vector<31x32xbf16>
    %c3_107 = arith.constant 3 : index
    %c0_108 = arith.constant 0 : index
    %c0_109 = arith.constant 0 : index
    %103 = vector.load %arg3[%c3_107, %c0_108, %c0_109] : memref<5x32x168xbf16, #tpu.memory_space<vmem>>, vector<1x32x168xbf16>
    %104 = vector.shape_cast %103 : vector<1x32x168xbf16> to vector<32x168xbf16>
    %cst_110 = arith.constant dense<0.000000e+00> : vector<31x168xf32>
    %105 = tpu.matmul %102, %104, %cst_110 {dimension_numbers = #tpu.dot_dimension_numbers<[1], [0], [0], [1], [0, 0, 1, 1], [], []>} : vector<31x32xbf16>, vector<32x168xbf16>, vector<31x168xf32> -> vector<31x168xf32>
    %106 = arith.addf %100, %105 : vector<31x168xf32>
    %c2_111 = arith.constant 2 : index
    %c1_112 = arith.constant 1 : index
    %c0_113 = arith.constant 0 : index
    %107 = vector.load %arg1[%c2_111, %c1_112, %c0_113] : memref<4x32x32xbf16, #tpu.memory_space<vmem>>, vector<1x31x32xbf16>
    %108 = vector.shape_cast %107 : vector<1x31x32xbf16> to vector<31x32xbf16>
    %c4_114 = arith.constant 4 : index
    %c0_115 = arith.constant 0 : index
    %c0_116 = arith.constant 0 : index
    %109 = vector.load %arg3[%c4_114, %c0_115, %c0_116] : memref<5x32x168xbf16, #tpu.memory_space<vmem>>, vector<1x32x168xbf16>
    %110 = vector.shape_cast %109 : vector<1x32x168xbf16> to vector<32x168xbf16>
    %cst_117 = arith.constant dense<0.000000e+00> : vector<31x168xf32>
    %111 = tpu.matmul %108, %110, %cst_117 {dimension_numbers = #tpu.dot_dimension_numbers<[1], [0], [0], [1], [0, 0, 1, 1], [], []>} : vector<31x32xbf16>, vector<32x168xbf16>, vector<31x168xf32> -> vector<31x168xf32>
    %112 = arith.addf %106, %111 : vector<31x168xf32>
    %cst_118 = arith.constant 0.000000e+00 : f32
    %113 = vector.broadcast %cst_118 : f32 to vector<31x168xf32>
    %114 = arith.maximumf %112, %113 : vector<31x168xf32>
    %c0_119 = arith.constant 0 : index
    %c0_120 = arith.constant 0 : index
    %115 = vector.load %arg4[%c0_119, %c0_120] : memref<1x168xf32, #tpu.memory_space<vmem>>, vector<1x168xf32>
    %c3_121 = arith.constant 3 : index
    %c0_122 = arith.constant 0 : index
    %c0_123 = arith.constant 0 : index
    %116 = vector.load %arg1[%c3_121, %c0_122, %c0_123] : memref<4x32x32xbf16, #tpu.memory_space<vmem>>, vector<1x31x32xbf16>
    %117 = vector.shape_cast %116 : vector<1x31x32xbf16> to vector<31x32xbf16>
    %c0_124 = arith.constant 0 : index
    %c0_125 = arith.constant 0 : index
    %c0_126 = arith.constant 0 : index
    %118 = vector.load %arg3[%c0_124, %c0_125, %c0_126] : memref<5x32x168xbf16, #tpu.memory_space<vmem>>, vector<1x32x168xbf16>
    %119 = vector.shape_cast %118 : vector<1x32x168xbf16> to vector<32x168xbf16>
    %cst_127 = arith.constant dense<0.000000e+00> : vector<31x168xf32>
    %120 = tpu.matmul %117, %119, %cst_127 {dimension_numbers = #tpu.dot_dimension_numbers<[1], [0], [0], [1], [0, 0, 1, 1], [], []>} : vector<31x32xbf16>, vector<32x168xbf16>, vector<31x168xf32> -> vector<31x168xf32>
    %121 = vector.broadcast %115 : vector<1x168xf32> to vector<31x168xf32>
    %122 = arith.addf %121, %120 : vector<31x168xf32>
    %c0_128 = arith.constant 0 : index
    %c1_129 = arith.constant 1 : index
    %c0_130 = arith.constant 0 : index
    %123 = vector.load %arg1[%c0_128, %c1_129, %c0_130] : memref<4x32x32xbf16, #tpu.memory_space<vmem>>, vector<1x31x32xbf16>
    %124 = vector.shape_cast %123 : vector<1x31x32xbf16> to vector<31x32xbf16>
    %c1_131 = arith.constant 1 : index
    %c0_132 = arith.constant 0 : index
    %c0_133 = arith.constant 0 : index
    %125 = vector.load %arg3[%c1_131, %c0_132, %c0_133] : memref<5x32x168xbf16, #tpu.memory_space<vmem>>, vector<1x32x168xbf16>
    %126 = vector.shape_cast %125 : vector<1x32x168xbf16> to vector<32x168xbf16>
    %cst_134 = arith.constant dense<0.000000e+00> : vector<31x168xf32>
    %127 = tpu.matmul %124, %126, %cst_134 {dimension_numbers = #tpu.dot_dimension_numbers<[1], [0], [0], [1], [0, 0, 1, 1], [], []>} : vector<31x32xbf16>, vector<32x168xbf16>, vector<31x168xf32> -> vector<31x168xf32>
    %128 = arith.addf %122, %127 : vector<31x168xf32>
    %c1_135 = arith.constant 1 : index
    %c1_136 = arith.constant 1 : index
    %c0_137 = arith.constant 0 : index
    %129 = vector.load %arg1[%c1_135, %c1_136, %c0_137] : memref<4x32x32xbf16, #tpu.memory_space<vmem>>, vector<1x31x32xbf16>
    %130 = vector.shape_cast %129 : vector<1x31x32xbf16> to vector<31x32xbf16>
    %c2_138 = arith.constant 2 : index
    %c0_139 = arith.constant 0 : index
    %c0_140 = arith.constant 0 : index
    %131 = vector.load %arg3[%c2_138, %c0_139, %c0_140] : memref<5x32x168xbf16, #tpu.memory_space<vmem>>, vector<1x32x168xbf16>
    %132 = vector.shape_cast %131 : vector<1x32x168xbf16> to vector<32x168xbf16>
    %cst_141 = arith.constant dense<0.000000e+00> : vector<31x168xf32>
    %133 = tpu.matmul %130, %132, %cst_141 {dimension_numbers = #tpu.dot_dimension_numbers<[1], [0], [0], [1], [0, 0, 1, 1], [], []>} : vector<31x32xbf16>, vector<32x168xbf16>, vector<31x168xf32> -> vector<31x168xf32>
    %134 = arith.addf %128, %133 : vector<31x168xf32>
    %c2_142 = arith.constant 2 : index
    %c1_143 = arith.constant 1 : index
    %c0_144 = arith.constant 0 : index
    %135 = vector.load %arg1[%c2_142, %c1_143, %c0_144] : memref<4x32x32xbf16, #tpu.memory_space<vmem>>, vector<1x31x32xbf16>
    %136 = vector.shape_cast %135 : vector<1x31x32xbf16> to vector<31x32xbf16>
    %c3_145 = arith.constant 3 : index
    %c0_146 = arith.constant 0 : index
    %c0_147 = arith.constant 0 : index
    %137 = vector.load %arg3[%c3_145, %c0_146, %c0_147] : memref<5x32x168xbf16, #tpu.memory_space<vmem>>, vector<1x32x168xbf16>
    %138 = vector.shape_cast %137 : vector<1x32x168xbf16> to vector<32x168xbf16>
    %cst_148 = arith.constant dense<0.000000e+00> : vector<31x168xf32>
    %139 = tpu.matmul %136, %138, %cst_148 {dimension_numbers = #tpu.dot_dimension_numbers<[1], [0], [0], [1], [0, 0, 1, 1], [], []>} : vector<31x32xbf16>, vector<32x168xbf16>, vector<31x168xf32> -> vector<31x168xf32>
    %140 = arith.addf %134, %139 : vector<31x168xf32>
    %c3_149 = arith.constant 3 : index
    %c1_150 = arith.constant 1 : index
    %c0_151 = arith.constant 0 : index
    %141 = vector.load %arg1[%c3_149, %c1_150, %c0_151] : memref<4x32x32xbf16, #tpu.memory_space<vmem>>, vector<1x31x32xbf16>
    %142 = vector.shape_cast %141 : vector<1x31x32xbf16> to vector<31x32xbf16>
    %c4_152 = arith.constant 4 : index
    %c0_153 = arith.constant 0 : index
    %c0_154 = arith.constant 0 : index
    %143 = vector.load %arg3[%c4_152, %c0_153, %c0_154] : memref<5x32x168xbf16, #tpu.memory_space<vmem>>, vector<1x32x168xbf16>
    %144 = vector.shape_cast %143 : vector<1x32x168xbf16> to vector<32x168xbf16>
    %cst_155 = arith.constant dense<0.000000e+00> : vector<31x168xf32>
    %145 = tpu.matmul %142, %144, %cst_155 {dimension_numbers = #tpu.dot_dimension_numbers<[1], [0], [0], [1], [0, 0, 1, 1], [], []>} : vector<31x32xbf16>, vector<32x168xbf16>, vector<31x168xf32> -> vector<31x168xf32>
    %146 = arith.addf %140, %145 : vector<31x168xf32>
    %cst_156 = arith.constant 0.000000e+00 : f32
    %147 = vector.broadcast %cst_156 : f32 to vector<31x168xf32>
    %148 = arith.maximumf %146, %147 : vector<31x168xf32>
    %149 = arith.maximumf %114, %148 : vector<31x168xf32>
    %150 = arith.truncf %149 : vector<31x168xf32> to vector<31x168xbf16>
    %c0_157 = arith.constant 0 : index
    %c0_158 = arith.constant 0 : index
    %c0_159 = arith.constant 0 : index
    %151 = vector.load %arg5[%c0_157, %c0_158, %c0_159] : memref<2x168x84xbf16, #tpu.memory_space<vmem>>, vector<1x168x84xbf16>
    %152 = vector.shape_cast %151 : vector<1x168x84xbf16> to vector<168x84xbf16>
    %cst_160 = arith.constant dense<0.000000e+00> : vector<31x84xf32>
    %153 = tpu.matmul %150, %152, %cst_160 {dimension_numbers = #tpu.dot_dimension_numbers<[1], [0], [0], [1], [0, 0, 1, 1], [], []>} : vector<31x168xbf16>, vector<168x84xbf16>, vector<31x84xf32> -> vector<31x84xf32>
    %c1_161 = arith.constant 1 : index
    %c0_162 = arith.constant 0 : index
    %c0_163 = arith.constant 0 : index
    %154 = vector.load %arg5[%c1_161, %c0_162, %c0_163] : memref<2x168x84xbf16, #tpu.memory_space<vmem>>, vector<1x168x84xbf16>
    %155 = vector.shape_cast %154 : vector<1x168x84xbf16> to vector<168x84xbf16>
    %cst_164 = arith.constant dense<0.000000e+00> : vector<31x84xf32>
    %156 = tpu.matmul %150, %155, %cst_164 {dimension_numbers = #tpu.dot_dimension_numbers<[1], [0], [0], [1], [0, 0, 1, 1], [], []>} : vector<31x168xbf16>, vector<168x84xbf16>, vector<31x84xf32> -> vector<31x84xf32>
    %157 = arith.maximumf %153, %156 : vector<31x84xf32>
    %158 = arith.truncf %157 : vector<31x84xf32> to vector<31x84xbf16>
    %c1_165 = arith.constant 1 : index
    %c0_166 = arith.constant 0 : index
    %c0_167 = arith.constant 0 : index
    %159 = vector.load %arg21[%c1_165, %c0_166, %c0_167] : memref<2x31x84xbf16, #tpu.memory_space<vmem>>, vector<1x31x84xbf16>
    %160 = vector.shape_cast %159 : vector<1x31x84xbf16> to vector<31x84xbf16>
    %161 = vector.shape_cast %158 : vector<31x84xbf16> to vector<1x31x84xbf16>
    tpu.vector_store %arg21[%c1_165, %c0_166, %c0_167], %161 {strides = array<i32>} : memref<2x31x84xbf16, #tpu.memory_space<vmem>>, vector<1x31x84xbf16>,
    %c0_168 = arith.constant 0 : index
    %c0_169 = arith.constant 0 : index
    %162 = vector.load %arg7[%c0_168, %c0_169] : memref<1x160xf32, #tpu.memory_space<vmem>>, vector<1x160xf32>
    %c0_170 = arith.constant 0 : index
    %c0_171 = arith.constant 0 : index
    %c0_172 = arith.constant 0 : index
    %163 = vector.load %arg21[%c0_170, %c0_171, %c0_172] : memref<2x31x84xbf16, #tpu.memory_space<vmem>>, vector<1x29x84xbf16>
    %164 = vector.shape_cast %163 : vector<1x29x84xbf16> to vector<29x84xbf16>
    %c0_173 = arith.constant 0 : index
    %c0_174 = arith.constant 0 : index
    %c0_175 = arith.constant 0 : index
    %165 = vector.load %arg6[%c0_173, %c0_174, %c0_175] : memref<5x84x160xbf16, #tpu.memory_space<vmem>>, vector<1x84x160xbf16>
    %166 = vector.shape_cast %165 : vector<1x84x160xbf16> to vector<84x160xbf16>
    %cst_176 = arith.constant dense<0.000000e+00> : vector<29x160xf32>
    %167 = tpu.matmul %164, %166, %cst_176 {dimension_numbers = #tpu.dot_dimension_numbers<[1], [0], [0], [1], [0, 0, 1, 1], [], []>} : vector<29x84xbf16>, vector<84x160xbf16>, vector<29x160xf32> -> vector<29x160xf32>
    %168 = vector.broadcast %162 : vector<1x160xf32> to vector<29x160xf32>
    %169 = arith.addf %168, %167 : vector<29x160xf32>
    %c1_177 = arith.constant 1 : index
    %c0_178 = arith.constant 0 : index
    %c0_179 = arith.constant 0 : index
    %170 = vector.load %arg21[%c1_177, %c0_178, %c0_179] : memref<2x31x84xbf16, #tpu.memory_space<vmem>>, vector<1x29x84xbf16>
    %171 = vector.shape_cast %170 : vector<1x29x84xbf16> to vector<29x84xbf16>
    %c1_180 = arith.constant 1 : index
    %c0_181 = arith.constant 0 : index
    %c0_182 = arith.constant 0 : index
    %172 = vector.load %arg6[%c1_180, %c0_181, %c0_182] : memref<5x84x160xbf16, #tpu.memory_space<vmem>>, vector<1x84x160xbf16>
    %173 = vector.shape_cast %172 : vector<1x84x160xbf16> to vector<84x160xbf16>
    %cst_183 = arith.constant dense<0.000000e+00> : vector<29x160xf32>
    %174 = tpu.matmul %171, %173, %cst_183 {dimension_numbers = #tpu.dot_dimension_numbers<[1], [0], [0], [1], [0, 0, 1, 1], [], []>} : vector<29x84xbf16>, vector<84x160xbf16>, vector<29x160xf32> -> vector<29x160xf32>
    %175 = arith.addf %169, %174 : vector<29x160xf32>
    %c0_184 = arith.constant 0 : index
    %c1_185 = arith.constant 1 : index
    %c0_186 = arith.constant 0 : index
    %176 = vector.load %arg21[%c0_184, %c1_185, %c0_186] : memref<2x31x84xbf16, #tpu.memory_space<vmem>>, vector<1x29x84xbf16>
    %177 = vector.shape_cast %176 : vector<1x29x84xbf16> to vector<29x84xbf16>
    %c2_187 = arith.constant 2 : index
    %c0_188 = arith.constant 0 : index
    %c0_189 = arith.constant 0 : index
    %178 = vector.load %arg6[%c2_187, %c0_188, %c0_189] : memref<5x84x160xbf16, #tpu.memory_space<vmem>>, vector<1x84x160xbf16>
    %179 = vector.shape_cast %178 : vector<1x84x160xbf16> to vector<84x160xbf16>
    %cst_190 = arith.constant dense<0.000000e+00> : vector<29x160xf32>
    %180 = tpu.matmul %177, %179, %cst_190 {dimension_numbers = #tpu.dot_dimension_numbers<[1], [0], [0], [1], [0, 0, 1, 1], [], []>} : vector<29x84xbf16>, vector<84x160xbf16>, vector<29x160xf32> -> vector<29x160xf32>
    %181 = arith.addf %175, %180 : vector<29x160xf32>
    %c1_191 = arith.constant 1 : index
    %c1_192 = arith.constant 1 : index
    %c0_193 = arith.constant 0 : index
    %182 = vector.load %arg21[%c1_191, %c1_192, %c0_193] : memref<2x31x84xbf16, #tpu.memory_space<vmem>>, vector<1x29x84xbf16>
    %183 = vector.shape_cast %182 : vector<1x29x84xbf16> to vector<29x84xbf16>
    %c3_194 = arith.constant 3 : index
    %c0_195 = arith.constant 0 : index
    %c0_196 = arith.constant 0 : index
    %184 = vector.load %arg6[%c3_194, %c0_195, %c0_196] : memref<5x84x160xbf16, #tpu.memory_space<vmem>>, vector<1x84x160xbf16>
    %185 = vector.shape_cast %184 : vector<1x84x160xbf16> to vector<84x160xbf16>
    %cst_197 = arith.constant dense<0.000000e+00> : vector<29x160xf32>
    %186 = tpu.matmul %183, %185, %cst_197 {dimension_numbers = #tpu.dot_dimension_numbers<[1], [0], [0], [1], [0, 0, 1, 1], [], []>} : vector<29x84xbf16>, vector<84x160xbf16>, vector<29x160xf32> -> vector<29x160xf32>
    %187 = arith.addf %181, %186 : vector<29x160xf32>
    %c0_198 = arith.constant 0 : index
    %c2_199 = arith.constant 2 : index
    %c0_200 = arith.constant 0 : index
    %188 = vector.load %arg21[%c0_198, %c2_199, %c0_200] : memref<2x31x84xbf16, #tpu.memory_space<vmem>>, vector<1x29x84xbf16>
    %189 = vector.shape_cast %188 : vector<1x29x84xbf16> to vector<29x84xbf16>
    %c4_201 = arith.constant 4 : index
    %c0_202 = arith.constant 0 : index
    %c0_203 = arith.constant 0 : index
    %190 = vector.load %arg6[%c4_201, %c0_202, %c0_203] : memref<5x84x160xbf16, #tpu.memory_space<vmem>>, vector<1x84x160xbf16>
    %191 = vector.shape_cast %190 : vector<1x84x160xbf16> to vector<84x160xbf16>
    %cst_204 = arith.constant dense<0.000000e+00> : vector<29x160xf32>
    %192 = tpu.matmul %189, %191, %cst_204 {dimension_numbers = #tpu.dot_dimension_numbers<[1], [0], [0], [1], [0, 0, 1, 1], [], []>} : vector<29x84xbf16>, vector<84x160xbf16>, vector<29x160xf32> -> vector<29x160xf32>
    %193 = arith.addf %187, %192 : vector<29x160xf32>
    %cst_205 = arith.constant 0.000000e+00 : f32
    %194 = vector.broadcast %cst_205 : f32 to vector<29x160xf32>
    %195 = arith.maximumf %193, %194 : vector<29x160xf32>
    %c0_206 = arith.constant 0 : index
    %c0_207 = arith.constant 0 : index
    %196 = vector.load %arg7[%c0_206, %c0_207] : memref<1x160xf32, #tpu.memory_space<vmem>>, vector<1x160xf32>
    %c1_208 = arith.constant 1 : index
    %c0_209 = arith.constant 0 : index
    %c0_210 = arith.constant 0 : index
    %197 = vector.load %arg21[%c1_208, %c0_209, %c0_210] : memref<2x31x84xbf16, #tpu.memory_space<vmem>>, vector<1x29x84xbf16>
    %198 = vector.shape_cast %197 : vector<1x29x84xbf16> to vector<29x84xbf16>
    %c0_211 = arith.constant 0 : index
    %c0_212 = arith.constant 0 : index
    %c0_213 = arith.constant 0 : index
    %199 = vector.load %arg6[%c0_211, %c0_212, %c0_213] : memref<5x84x160xbf16, #tpu.memory_space<vmem>>, vector<1x84x160xbf16>
    %200 = vector.shape_cast %199 : vector<1x84x160xbf16> to vector<84x160xbf16>
    %cst_214 = arith.constant dense<0.000000e+00> : vector<29x160xf32>
    %201 = tpu.matmul %198, %200, %cst_214 {dimension_numbers = #tpu.dot_dimension_numbers<[1], [0], [0], [1], [0, 0, 1, 1], [], []>} : vector<29x84xbf16>, vector<84x160xbf16>, vector<29x160xf32> -> vector<29x160xf32>
    %202 = vector.broadcast %196 : vector<1x160xf32> to vector<29x160xf32>
    %203 = arith.addf %202, %201 : vector<29x160xf32>
    %c0_215 = arith.constant 0 : index
    %c1_216 = arith.constant 1 : index
    %c0_217 = arith.constant 0 : index
    %204 = vector.load %arg21[%c0_215, %c1_216, %c0_217] : memref<2x31x84xbf16, #tpu.memory_space<vmem>>, vector<1x29x84xbf16>
    %205 = vector.shape_cast %204 : vector<1x29x84xbf16> to vector<29x84xbf16>
    %c1_218 = arith.constant 1 : index
    %c0_219 = arith.constant 0 : index
    %c0_220 = arith.constant 0 : index
    %206 = vector.load %arg6[%c1_218, %c0_219, %c0_220] : memref<5x84x160xbf16, #tpu.memory_space<vmem>>, vector<1x84x160xbf16>
    %207 = vector.shape_cast %206 : vector<1x84x160xbf16> to vector<84x160xbf16>
    %cst_221 = arith.constant dense<0.000000e+00> : vector<29x160xf32>
    %208 = tpu.matmul %205, %207, %cst_221 {dimension_numbers = #tpu.dot_dimension_numbers<[1], [0], [0], [1], [0, 0, 1, 1], [], []>} : vector<29x84xbf16>, vector<84x160xbf16>, vector<29x160xf32> -> vector<29x160xf32>
    %209 = arith.addf %203, %208 : vector<29x160xf32>
    %c1_222 = arith.constant 1 : index
    %c1_223 = arith.constant 1 : index
    %c0_224 = arith.constant 0 : index
    %210 = vector.load %arg21[%c1_222, %c1_223, %c0_224] : memref<2x31x84xbf16, #tpu.memory_space<vmem>>, vector<1x29x84xbf16>
    %211 = vector.shape_cast %210 : vector<1x29x84xbf16> to vector<29x84xbf16>
    %c2_225 = arith.constant 2 : index
    %c0_226 = arith.constant 0 : index
    %c0_227 = arith.constant 0 : index
    %212 = vector.load %arg6[%c2_225, %c0_226, %c0_227] : memref<5x84x160xbf16, #tpu.memory_space<vmem>>, vector<1x84x160xbf16>
    %213 = vector.shape_cast %212 : vector<1x84x160xbf16> to vector<84x160xbf16>
    %cst_228 = arith.constant dense<0.000000e+00> : vector<29x160xf32>
    %214 = tpu.matmul %211, %213, %cst_228 {dimension_numbers = #tpu.dot_dimension_numbers<[1], [0], [0], [1], [0, 0, 1, 1], [], []>} : vector<29x84xbf16>, vector<84x160xbf16>, vector<29x160xf32> -> vector<29x160xf32>
    %215 = arith.addf %209, %214 : vector<29x160xf32>
    %c0_229 = arith.constant 0 : index
    %c2_230 = arith.constant 2 : index
    %c0_231 = arith.constant 0 : index
    %216 = vector.load %arg21[%c0_229, %c2_230, %c0_231] : memref<2x31x84xbf16, #tpu.memory_space<vmem>>, vector<1x29x84xbf16>
    %217 = vector.shape_cast %216 : vector<1x29x84xbf16> to vector<29x84xbf16>
    %c3_232 = arith.constant 3 : index
    %c0_233 = arith.constant 0 : index
    %c0_234 = arith.constant 0 : index
    %218 = vector.load %arg6[%c3_232, %c0_233, %c0_234] : memref<5x84x160xbf16, #tpu.memory_space<vmem>>, vector<1x84x160xbf16>
    %219 = vector.shape_cast %218 : vector<1x84x160xbf16> to vector<84x160xbf16>
    %cst_235 = arith.constant dense<0.000000e+00> : vector<29x160xf32>
    %220 = tpu.matmul %217, %219, %cst_235 {dimension_numbers = #tpu.dot_dimension_numbers<[1], [0], [0], [1], [0, 0, 1, 1], [], []>} : vector<29x84xbf16>, vector<84x160xbf16>, vector<29x160xf32> -> vector<29x160xf32>
    %221 = arith.addf %215, %220 : vector<29x160xf32>
    %c1_236 = arith.constant 1 : index
    %c2_237 = arith.constant 2 : index
    %c0_238 = arith.constant 0 : index
    %222 = vector.load %arg21[%c1_236, %c2_237, %c0_238] : memref<2x31x84xbf16, #tpu.memory_space<vmem>>, vector<1x29x84xbf16>
    %223 = vector.shape_cast %222 : vector<1x29x84xbf16> to vector<29x84xbf16>
    %c4_239 = arith.constant 4 : index
    %c0_240 = arith.constant 0 : index
    %c0_241 = arith.constant 0 : index
    %224 = vector.load %arg6[%c4_239, %c0_240, %c0_241] : memref<5x84x160xbf16, #tpu.memory_space<vmem>>, vector<1x84x160xbf16>
    %225 = vector.shape_cast %224 : vector<1x84x160xbf16> to vector<84x160xbf16>
    %cst_242 = arith.constant dense<0.000000e+00> : vector<29x160xf32>
    %226 = tpu.matmul %223, %225, %cst_242 {dimension_numbers = #tpu.dot_dimension_numbers<[1], [0], [0], [1], [0, 0, 1, 1], [], []>} : vector<29x84xbf16>, vector<84x160xbf16>, vector<29x160xf32> -> vector<29x160xf32>
    %227 = arith.addf %221, %226 : vector<29x160xf32>
    %cst_243 = arith.constant 0.000000e+00 : f32
    %228 = vector.broadcast %cst_243 : f32 to vector<29x160xf32>
    %229 = arith.maximumf %227, %228 : vector<29x160xf32>
    %230 = arith.maximumf %195, %229 : vector<29x160xf32>
    %231 = arith.truncf %230 : vector<29x160xf32> to vector<29x160xbf16>
    %c0_244 = arith.constant 0 : index
    %c0_245 = arith.constant 0 : index
    %c0_246 = arith.constant 0 : index
    %232 = vector.load %arg8[%c0_244, %c0_245, %c0_246] : memref<2x160x80xbf16, #tpu.memory_space<vmem>>, vector<1x160x80xbf16>
    %233 = vector.shape_cast %232 : vector<1x160x80xbf16> to vector<160x80xbf16>
    %cst_247 = arith.constant dense<0.000000e+00> : vector<29x80xf32>
    %234 = tpu.matmul %231, %233, %cst_247 {dimension_numbers = #tpu.dot_dimension_numbers<[1], [0], [0], [1], [0, 0, 1, 1], [], []>} : vector<29x160xbf16>, vector<160x80xbf16>, vector<29x80xf32> -> vector<29x80xf32>
    %c1_248 = arith.constant 1 : index
    %c0_249 = arith.constant 0 : index
    %c0_250 = arith.constant 0 : index
    %235 = vector.load %arg8[%c1_248, %c0_249, %c0_250] : memref<2x160x80xbf16, #tpu.memory_space<vmem>>, vector<1x160x80xbf16>
    %236 = vector.shape_cast %235 : vector<1x160x80xbf16> to vector<160x80xbf16>
    %cst_251 = arith.constant dense<0.000000e+00> : vector<29x80xf32>
    %237 = tpu.matmul %231, %236, %cst_251 {dimension_numbers = #tpu.dot_dimension_numbers<[1], [0], [0], [1], [0, 0, 1, 1], [], []>} : vector<29x160xbf16>, vector<160x80xbf16>, vector<29x80xf32> -> vector<29x80xf32>
    %238 = arith.maximumf %234, %237 : vector<29x80xf32>
    %239 = arith.truncf %238 : vector<29x80xf32> to vector<29x80xbf16>
    %c0_252 = arith.constant 0 : index
    %c0_253 = arith.constant 0 : index
    %240 = vector.load %arg22[%c0_252, %c0_253] : memref<29x80xbf16, #tpu.memory_space<vmem>>, vector<29x80xbf16>
    tpu.vector_store %arg22[%c0_252, %c0_253], %239 {strides = array<i32>} : memref<29x80xbf16, #tpu.memory_space<vmem>>, vector<29x80xbf16>,
    %c0_254 = arith.constant 0 : index
    %c0_255 = arith.constant 0 : index
    %241 = vector.load %arg10[%c0_254, %c0_255] : memref<1x120xf32, #tpu.memory_space<vmem>>, vector<1x120xf32>
    %c0_256 = arith.constant 0 : index
    %c0_257 = arith.constant 0 : index
    %242 = vector.load %arg22[%c0_256, %c0_257] : memref<29x80xbf16, #tpu.memory_space<vmem>>, vector<25x80xbf16>
    %c0_258 = arith.constant 0 : index
    %c0_259 = arith.constant 0 : index
    %c0_260 = arith.constant 0 : index
    %243 = vector.load %arg9[%c0_258, %c0_259, %c0_260] : memref<5x80x120xbf16, #tpu.memory_space<vmem>>, vector<1x80x120xbf16>
    %244 = vector.shape_cast %243 : vector<1x80x120xbf16> to vector<80x120xbf16>
    %cst_261 = arith.constant dense<0.000000e+00> : vector<25x120xf32>
    %245 = tpu.matmul %242, %244, %cst_261 {dimension_numbers = #tpu.dot_dimension_numbers<[1], [0], [0], [1], [0, 0, 1, 1], [], []>} : vector<25x80xbf16>, vector<80x120xbf16>, vector<25x120xf32> -> vector<25x120xf32>
    %246 = vector.broadcast %241 : vector<1x120xf32> to vector<25x120xf32>
    %247 = arith.addf %246, %245 : vector<25x120xf32>
    %c1_262 = arith.constant 1 : index
    %c0_263 = arith.constant 0 : index
    %248 = vector.load %arg22[%c1_262, %c0_263] : memref<29x80xbf16, #tpu.memory_space<vmem>>, vector<25x80xbf16>
    %c1_264 = arith.constant 1 : index
    %c0_265 = arith.constant 0 : index
    %c0_266 = arith.constant 0 : index
    %249 = vector.load %arg9[%c1_264, %c0_265, %c0_266] : memref<5x80x120xbf16, #tpu.memory_space<vmem>>, vector<1x80x120xbf16>
    %250 = vector.shape_cast %249 : vector<1x80x120xbf16> to vector<80x120xbf16>
    %cst_267 = arith.constant dense<0.000000e+00> : vector<25x120xf32>
    %251 = tpu.matmul %248, %250, %cst_267 {dimension_numbers = #tpu.dot_dimension_numbers<[1], [0], [0], [1], [0, 0, 1, 1], [], []>} : vector<25x80xbf16>, vector<80x120xbf16>, vector<25x120xf32> -> vector<25x120xf32>
    %252 = arith.addf %247, %251 : vector<25x120xf32>
    %c2_268 = arith.constant 2 : index
    %c0_269 = arith.constant 0 : index
    %253 = vector.load %arg22[%c2_268, %c0_269] : memref<29x80xbf16, #tpu.memory_space<vmem>>, vector<25x80xbf16>
    %c2_270 = arith.constant 2 : index
    %c0_271 = arith.constant 0 : index
    %c0_272 = arith.constant 0 : index
    %254 = vector.load %arg9[%c2_270, %c0_271, %c0_272] : memref<5x80x120xbf16, #tpu.memory_space<vmem>>, vector<1x80x120xbf16>
    %255 = vector.shape_cast %254 : vector<1x80x120xbf16> to vector<80x120xbf16>
    %cst_273 = arith.constant dense<0.000000e+00> : vector<25x120xf32>
    %256 = tpu.matmul %253, %255, %cst_273 {dimension_numbers = #tpu.dot_dimension_numbers<[1], [0], [0], [1], [0, 0, 1, 1], [], []>} : vector<25x80xbf16>, vector<80x120xbf16>, vector<25x120xf32> -> vector<25x120xf32>
    %257 = arith.addf %252, %256 : vector<25x120xf32>
    %c3_274 = arith.constant 3 : index
    %c0_275 = arith.constant 0 : index
    %258 = vector.load %arg22[%c3_274, %c0_275] : memref<29x80xbf16, #tpu.memory_space<vmem>>, vector<25x80xbf16>
    %c3_276 = arith.constant 3 : index
    %c0_277 = arith.constant 0 : index
    %c0_278 = arith.constant 0 : index
    %259 = vector.load %arg9[%c3_276, %c0_277, %c0_278] : memref<5x80x120xbf16, #tpu.memory_space<vmem>>, vector<1x80x120xbf16>
    %260 = vector.shape_cast %259 : vector<1x80x120xbf16> to vector<80x120xbf16>
    %cst_279 = arith.constant dense<0.000000e+00> : vector<25x120xf32>
    %261 = tpu.matmul %258, %260, %cst_279 {dimension_numbers = #tpu.dot_dimension_numbers<[1], [0], [0], [1], [0, 0, 1, 1], [], []>} : vector<25x80xbf16>, vector<80x120xbf16>, vector<25x120xf32> -> vector<25x120xf32>
    %262 = arith.addf %257, %261 : vector<25x120xf32>
    %c4_280 = arith.constant 4 : index
    %c0_281 = arith.constant 0 : index
    %263 = vector.load %arg22[%c4_280, %c0_281] : memref<29x80xbf16, #tpu.memory_space<vmem>>, vector<25x80xbf16>
    %c4_282 = arith.constant 4 : index
    %c0_283 = arith.constant 0 : index
    %c0_284 = arith.constant 0 : index
    %264 = vector.load %arg9[%c4_282, %c0_283, %c0_284] : memref<5x80x120xbf16, #tpu.memory_space<vmem>>, vector<1x80x120xbf16>
    %265 = vector.shape_cast %264 : vector<1x80x120xbf16> to vector<80x120xbf16>
    %cst_285 = arith.constant dense<0.000000e+00> : vector<25x120xf32>
    %266 = tpu.matmul %263, %265, %cst_285 {dimension_numbers = #tpu.dot_dimension_numbers<[1], [0], [0], [1], [0, 0, 1, 1], [], []>} : vector<25x80xbf16>, vector<80x120xbf16>, vector<25x120xf32> -> vector<25x120xf32>
    %267 = arith.addf %262, %266 : vector<25x120xf32>
    %cst_286 = arith.constant 0.000000e+00 : f32
    %268 = vector.broadcast %cst_286 : f32 to vector<25x120xf32>
    %269 = arith.maximumf %267, %268 : vector<25x120xf32>
    %270 = arith.truncf %269 : vector<25x120xf32> to vector<25x120xbf16>
    %c0_287 = arith.constant 0 : index
    %c0_288 = arith.constant 0 : index
    %271 = vector.load %arg11[%c0_287, %c0_288] : memref<4x25xbf16, #tpu.memory_space<vmem>>, vector<4x25xbf16>
    %cst_289 = arith.constant dense<0.000000e+00> : vector<4x120xf32>
    %272 = tpu.matmul %271, %270, %cst_289 {dimension_numbers = #tpu.dot_dimension_numbers<[1], [0], [0], [1], [0, 0, 1, 1], [], []>} : vector<4x25xbf16>, vector<25x120xbf16>, vector<4x120xf32> -> vector<4x120xf32>
    %273 = arith.truncf %272 : vector<4x120xf32> to vector<4x120xbf16>
    %c0_290 = arith.constant 0 : index
    %c0_291 = arith.constant 0 : index
    %274 = vector.load %arg12[%c0_290, %c0_291] : memref<120x20xbf16, #tpu.memory_space<vmem>>, vector<120x20xbf16>
    %cst_292 = arith.constant dense<0.000000e+00> : vector<4x20xf32>
    %275 = tpu.matmul %273, %274, %cst_292 {dimension_numbers = #tpu.dot_dimension_numbers<[1], [0], [0], [1], [0, 0, 1, 1], [], []>} : vector<4x120xbf16>, vector<120x20xbf16>, vector<4x20xf32> -> vector<4x20xf32>
    %c0_293 = arith.constant 0 : index
    %c0_294 = arith.constant 0 : index
    %276 = vector.load %arg13[%c0_293, %c0_294] : memref<1x20xf32, #tpu.memory_space<vmem>>, vector<1x20xf32>
    %277 = vector.broadcast %276 : vector<1x20xf32> to vector<4x20xf32>
    %278 = arith.addf %275, %277 : vector<4x20xf32>
    %c0_295 = arith.constant 0 : index
    %c0_296 = arith.constant 0 : index
    %279 = vector.load %arg14[%c0_295, %c0_296] : memref<120x20xbf16, #tpu.memory_space<vmem>>, vector<120x20xbf16>
    %cst_297 = arith.constant dense<0.000000e+00> : vector<4x20xf32>
    %280 = tpu.matmul %273, %279, %cst_297 {dimension_numbers = #tpu.dot_dimension_numbers<[1], [0], [0], [1], [0, 0, 1, 1], [], []>} : vector<4x120xbf16>, vector<120x20xbf16>, vector<4x20xf32> -> vector<4x20xf32>
    %c0_298 = arith.constant 0 : index
    %c0_299 = arith.constant 0 : index
    %281 = vector.load %arg15[%c0_298, %c0_299] : memref<1x20xf32, #tpu.memory_space<vmem>>, vector<1x20xf32>
    %282 = vector.broadcast %281 : vector<1x20xf32> to vector<4x20xf32>
    %283 = arith.addf %280, %282 : vector<4x20xf32>
    %cst_300 = arith.constant 5.000000e-01 : f32
    %284 = vector.broadcast %cst_300 : f32 to vector<4x20xf32>
    %285 = arith.mulf %284, %283 : vector<4x20xf32>
    %286 = math.exp %285 : vector<4x20xf32>
    %c0_301 = arith.constant 0 : index
    %c0_302 = arith.constant 0 : index
    %c0_303 = arith.constant 0 : index
    %287 = vector.load %arg2[%c0_301, %c0_302, %c0_303] : memref<4x1x20xf32, #tpu.memory_space<vmem>>, vector<4x1x20xf32>
    %288 = vector.shape_cast %287 : vector<4x1x20xf32> to vector<4x20xf32>
    %289 = arith.mulf %288, %286 : vector<4x20xf32>
    %290 = arith.addf %289, %278 : vector<4x20xf32>
    %291 = arith.truncf %290 : vector<4x20xf32> to vector<4x20xbf16>
    %c0_304 = arith.constant 0 : index
    %c0_305 = arith.constant 0 : index
    %292 = vector.load %arg16[%c0_304, %c0_305] : memref<20x84xbf16, #tpu.memory_space<vmem>>, vector<20x84xbf16>
    %cst_306 = arith.constant dense<0.000000e+00> : vector<4x84xf32>
    %293 = tpu.matmul %291, %292, %cst_306 {dimension_numbers = #tpu.dot_dimension_numbers<[1], [0], [0], [1], [0, 0, 1, 1], [], []>} : vector<4x20xbf16>, vector<20x84xbf16>, vector<4x84xf32> -> vector<4x84xf32>
    %c0_307 = arith.constant 0 : index
    %c0_308 = arith.constant 0 : index
    %294 = vector.load %arg17[%c0_307, %c0_308] : memref<1x84xf32, #tpu.memory_space<vmem>>, vector<1x84xf32>
    %295 = vector.broadcast %294 : vector<1x84xf32> to vector<4x84xf32>
    %296 = arith.addf %293, %295 : vector<4x84xf32>
    %cst_309 = arith.constant 0.000000e+00 : f32
    %297 = vector.broadcast %cst_309 : f32 to vector<4x84xf32>
    %298 = arith.maximumf %296, %297 : vector<4x84xf32>
    %299 = arith.truncf %298 : vector<4x84xf32> to vector<4x84xbf16>
    %c0_310 = arith.constant 0 : index
    %c0_311 = arith.constant 0 : index
    %300 = vector.load %arg18[%c0_310, %c0_311] : memref<84x128xbf16, #tpu.memory_space<vmem>>, vector<84x128xbf16>
    %cst_312 = arith.constant dense<0.000000e+00> : vector<4x128xf32>
    %301 = tpu.matmul %299, %300, %cst_312 {dimension_numbers = #tpu.dot_dimension_numbers<[1], [0], [0], [1], [0, 0, 1, 1], [], []>} : vector<4x84xbf16>, vector<84x128xbf16>, vector<4x128xf32> -> vector<4x128xf32>
    %c0_313 = arith.constant 0 : index
    %c0_314 = arith.constant 0 : index
    %302 = vector.load %arg19[%c0_313, %c0_314] : memref<1x128xf32, #tpu.memory_space<vmem>>, vector<1x128xf32>
    %303 = vector.broadcast %302 : vector<1x128xf32> to vector<4x128xf32>
    %304 = arith.addf %301, %303 : vector<4x128xf32>
    %c0_315 = arith.constant 0 : index
    %c0_316 = arith.constant 0 : index
    %c0_317 = arith.constant 0 : index
    %305 = vector.load %arg20[%c0_315, %c0_316, %c0_317] : memref<4x1x128xf32, #tpu.memory_space<vmem>>, vector<4x1x128xf32>
    %306 = vector.shape_cast %305 : vector<4x1x128xf32> to vector<4x128xf32>
    %307 = vector.shape_cast %304 : vector<4x128xf32> to vector<4x1x128xf32>
    tpu.vector_store %arg20[%c0_315, %c0_316, %c0_317], %307 {strides = array<i32>} : memref<4x1x128xf32, #tpu.memory_space<vmem>>, vector<4x1x128xf32>,
    return
  }
  func.func @transform_0(%arg0: i32) -> (i32, i32, i32) {
    %c0_i32 = arith.constant 0 : i32
    %c0_i32_0 = arith.constant 0 : i32
    %c0_i32_1 = arith.constant 0 : i32
    return %c0_i32, %arg0, %c0_i32_0 : i32, i32, i32
  }
  func.func @transform_1(%arg0: i32) -> (i32, i32, i32) {
    %c0_i32 = arith.constant 0 : i32
    %c0_i32_0 = arith.constant 0 : i32
    %c0_i32_1 = arith.constant 0 : i32
    return %arg0, %c0_i32, %c0_i32_0 : i32, i32, i32
  }
  func.func @transform_2(%arg0: i32) -> (i32, i32, i32) {
    %c0_i32 = arith.constant 0 : i32
    %c0_i32_0 = arith.constant 0 : i32
    %c0_i32_1 = arith.constant 0 : i32
    %c0_i32_2 = arith.constant 0 : i32
    return %c0_i32, %c0_i32_0, %c0_i32_1 : i32, i32, i32
  }
  func.func @transform_3(%arg0: i32) -> (i32, i32) {
    %c0_i32 = arith.constant 0 : i32
    %c0_i32_0 = arith.constant 0 : i32
    %c0_i32_1 = arith.constant 0 : i32
    return %c0_i32, %c0_i32_0 : i32, i32
  }
  func.func @transform_4(%arg0: i32) -> (i32, i32, i32) {
    %c0_i32 = arith.constant 0 : i32
    %c0_i32_0 = arith.constant 0 : i32
    %c0_i32_1 = arith.constant 0 : i32
    %c0_i32_2 = arith.constant 0 : i32
    return %c0_i32, %c0_i32_0, %c0_i32_1 : i32, i32, i32
  }
  func.func @transform_5(%arg0: i32) -> (i32, i32, i32) {
    %c0_i32 = arith.constant 0 : i32
    %c0_i32_0 = arith.constant 0 : i32
    %c0_i32_1 = arith.constant 0 : i32
    %c0_i32_2 = arith.constant 0 : i32
    return %c0_i32, %c0_i32_0, %c0_i32_1 : i32, i32, i32
  }
  func.func @transform_6(%arg0: i32) -> (i32, i32) {
    %c0_i32 = arith.constant 0 : i32
    %c0_i32_0 = arith.constant 0 : i32
    %c0_i32_1 = arith.constant 0 : i32
    return %c0_i32, %c0_i32_0 : i32, i32
  }
  func.func @transform_7(%arg0: i32) -> (i32, i32, i32) {
    %c0_i32 = arith.constant 0 : i32
    %c0_i32_0 = arith.constant 0 : i32
    %c0_i32_1 = arith.constant 0 : i32
    %c0_i32_2 = arith.constant 0 : i32
    return %c0_i32, %c0_i32_0, %c0_i32_1 : i32, i32, i32
  }
  func.func @transform_8(%arg0: i32) -> (i32, i32, i32) {
    %c0_i32 = arith.constant 0 : i32
    %c0_i32_0 = arith.constant 0 : i32
    %c0_i32_1 = arith.constant 0 : i32
    %c0_i32_2 = arith.constant 0 : i32
    return %c0_i32, %c0_i32_0, %c0_i32_1 : i32, i32, i32
  }
  func.func @transform_9(%arg0: i32) -> (i32, i32) {
    %c0_i32 = arith.constant 0 : i32
    %c0_i32_0 = arith.constant 0 : i32
    %c0_i32_1 = arith.constant 0 : i32
    return %c0_i32, %c0_i32_0 : i32, i32
  }
  func.func @transform_10(%arg0: i32) -> (i32, i32) {
    %c0_i32 = arith.constant 0 : i32
    %c0_i32_0 = arith.constant 0 : i32
    %c0_i32_1 = arith.constant 0 : i32
    return %c0_i32, %c0_i32_0 : i32, i32
  }
  func.func @transform_11(%arg0: i32) -> (i32, i32) {
    %c0_i32 = arith.constant 0 : i32
    %c0_i32_0 = arith.constant 0 : i32
    %c0_i32_1 = arith.constant 0 : i32
    return %c0_i32, %c0_i32_0 : i32, i32
  }
  func.func @transform_12(%arg0: i32) -> (i32, i32) {
    %c0_i32 = arith.constant 0 : i32
    %c0_i32_0 = arith.constant 0 : i32
    %c0_i32_1 = arith.constant 0 : i32
    return %c0_i32, %c0_i32_0 : i32, i32
  }
  func.func @transform_13(%arg0: i32) -> (i32, i32) {
    %c0_i32 = arith.constant 0 : i32
    %c0_i32_0 = arith.constant 0 : i32
    %c0_i32_1 = arith.constant 0 : i32
    return %c0_i32, %c0_i32_0 : i32, i32
  }
  func.func @transform_14(%arg0: i32) -> (i32, i32) {
    %c0_i32 = arith.constant 0 : i32
    %c0_i32_0 = arith.constant 0 : i32
    %c0_i32_1 = arith.constant 0 : i32
    return %c0_i32, %c0_i32_0 : i32, i32
  }
  func.func @transform_15(%arg0: i32) -> (i32, i32) {
    %c0_i32 = arith.constant 0 : i32
    %c0_i32_0 = arith.constant 0 : i32
    %c0_i32_1 = arith.constant 0 : i32
    return %c0_i32, %c0_i32_0 : i32, i32
  }
  func.func @transform_16(%arg0: i32) -> (i32, i32) {
    %c0_i32 = arith.constant 0 : i32
    %c0_i32_0 = arith.constant 0 : i32
    %c0_i32_1 = arith.constant 0 : i32
    return %c0_i32, %c0_i32_0 : i32, i32
  }
  func.func @transform_17(%arg0: i32) -> (i32, i32) {
    %c0_i32 = arith.constant 0 : i32
    %c0_i32_0 = arith.constant 0 : i32
    %c0_i32_1 = arith.constant 0 : i32
    return %c0_i32, %c0_i32_0 : i32, i32
  }
  func.func @transform_18(%arg0: i32) -> (i32, i32) {
    %c0_i32 = arith.constant 0 : i32
    %c0_i32_0 = arith.constant 0 : i32
    %c0_i32_1 = arith.constant 0 : i32
    return %c0_i32, %c0_i32_0 : i32, i32
  }
  func.func @transform_19(%arg0: i32) -> (i32, i32, i32) {
    %c0_i32 = arith.constant 0 : i32
    %c0_i32_0 = arith.constant 0 : i32
    %c0_i32_1 = arith.constant 0 : i32
    return %arg0, %c0_i32, %c0_i32_0 : i32, i32, i32
  }
}

</mosaic_0001>

<bundles_post_ra>
// kernel: lenet5_forward.1
= control target key start
LH: loop header
LB: loop body
LE: loop exit
PB: predicated region body
PF: predicated region fallthrough
CT: control target
= control target key end

     0   :  { %s8525_s0 = inlined_call_operand.vmem [shape: bf16[4,64,32], index: 0, kind: input, shape index: {}]   ;;  %s8526_s1 = inlined_call_operand.vmem [shape: f32[8,1,20], index: 1, kind: input, shape index: {}]   ;;  %s8527_s2 = inlined_call_operand.vmem [shape: bf16[5,32,168], index: 2, kind: input, shape index: {}]   ;;  %s8528_s3 = inlined_call_operand.vmem [shape: f32[1,168], index: 3, kind: input, shape index: {}]   ;;  %s8529_s4 = inlined_call_operand.vmem [shape: bf16[2,168,84], index: 4, kind: input, shape index: {}]   ;;  %s8530_s5 = inlined_call_operand.vmem [shape: bf16[5,84,160], index: 5, kind: input, shape index: {}]   ;;  %s8531_s6 = inlined_call_operand.vmem [shape: f32[1,160], index: 6, kind: input, shape index: {}]   ;;  %s8532_s7 = inlined_call_operand.vmem [shape: bf16[2,160,80], index: 7, kind: input, shape index: {}]   ;;  %s8533_s8 = inlined_call_operand.vmem [shape: bf16[5,80,120], index: 8, kind: input, shape index: {}]   ;;  %s8534_s9 = inlined_call_operand.vmem [shape: f32[1,120], index: 9, kind: input, shape index: {}]   ;;  %s8535_s10 = inlined_call_operand.vmem [shape: bf16[4,25], index: 10, kind: input, shape index: {}]   ;;  %s8536_s11 = inlined_call_operand.vmem [shape: bf16[120,20], index: 11, kind: input, shape index: {}]   ;;  %s8537_s12 = inlined_call_operand.vmem [shape: f32[1,20], index: 12, kind: input, shape index: {}]   ;;  %s8538_s13 = inlined_call_operand.vmem [shape: bf16[120,20], index: 13, kind: input, shape index: {}]   ;;  %s8539_s14 = inlined_call_operand.vmem [shape: f32[1,20], index: 14, kind: input, shape index: {}]   ;;  %s8540_s15 = inlined_call_operand.vmem [shape: bf16[20,84], index: 15, kind: input, shape index: {}]   ;;  %s8541_s16 = inlined_call_operand.vmem [shape: f32[1,84], index: 16, kind: input, shape index: {}]   ;;  %s8542_s17 = inlined_call_operand.vmem [shape: bf16[84,128], index: 17, kind: input, shape index: {}]   ;;  %s8543_s18 = inlined_call_operand.vmem [shape: f32[1,128], index: 18, kind: input, shape index: {}]   ;;  %s8544_s19 = inlined_call_operand.vmem [shape: f32[8,1,128], index: 19, kind: output, shape index: {}]  }
   0x1   :  { %8548 = sst [smem:[#allocation7_spill]] %s8525_s0 }
   0x2   :  { %8549 = sst [smem:[#allocation8_spill]] %s8526_s1 }
   0x3   :  { %8550 = sst [smem:[#allocation9_spill]] %s8527_s2 }
   0x4   :  { %8551 = sst [smem:[#allocation10_spill]] %s8528_s3 }
   0x5   :  { %s6466_s0 = smov 0   ;;  %s6468_s30 = smov 0  }
   0x6   :  { %s6470_s20 = smov 0  }
   0x7 LB: > { %8552 = sst [smem:[#allocation5_spill]] %s6359_s30  ;;  %s6483_s1 = sadd.s32 1, %s6363_s20   ;;  %s6363_s20 = sphi %s6470_s20, %s8564_s20   ;;  %s6359_s30 = sphi %s6468_s30, %s8563_s30   ;;  %s6355_s0 = sphi %s6466_s0, %s8562_s0  }
   0x8   : > { %s33_s22 = ssub.s32 %s6363_s20, %s6483_s1  ;;  %s36_s2 = sadd.s32 1, %s6359_s30 }
   0x9   : > { %p34_p0 = scmp.eq.s32.totalorder %s33_s22, 0  ;;  %p43_p1 = scmp.ne.s32.totalorder %s6359_s30, %s6355_s0 }
   0xa   : > { %p44_p2 = scmp.eq.s32.totalorder %s6363_s20, 0  ;;  %p4864_p4 = scmp.ge.s32.totalorder %s6363_s20, 2 }
   0xb   : > { %s6492_s23 = scalar_select %p34_p0, %s6359_s30, %s36_s2  }
   0xc   : > { %p45_p3 = por %p44_p2, %p43_p1  ;;  %529 = sbr.rel (%p4864_p4) target bundleno = 35 (0x23), region = 84 }
   0xd   : > { %8553 = sst [smem:[#allocation6_spill]] %s6492_s23 }
  0x11   : > { %532 = sbr.rel (!%p45_p3) target bundleno = 35 (0x23), region = 88  ;;  %s534_s24 = sand.u32 (%p45_p3), 1, %s6359_s30  }
  0x12   : > { %s6067_s25 = sshll.u32 (%p45_p3), %s6363_s20, 4  ;;  %s4865_s3 = sshll.u32 (%p45_p3), %s534_s24, 6 }
  0x13   : > { %s8554_s28 = sld [smem:[#allocation7_spill]] (%p45_p3)  ;;  %s536_s22 = scalar_lea.vmem (%p45_p3), [#allocation4], %s4865_s3 }
  0x19   : > { %s539_s29 = scalar_lea.vmem %s8554_s28, %s6067_s25 }
  0x1a   : > { %v556_v0 = vld [vmem:[%s539_s29] sm:$0xff]   ;;  %v560_v1 = vld [vmem:[%s539_s29 + $0x8] sm:$0xff]  }
  0x1b   : > { %v564_v2 = vld [vmem:[%s539_s29 + $0x20] sm:$0xff]   ;;  %557 = vst [vmem:[%s536_s22] sm:$0xff] %v556_v0   ;;  %v568_v3 = vld [vmem:[%s539_s29 + $0x28] sm:$0xff]  }
  0x1c   : > { %561 = vst [vmem:[%s536_s22 + $0x8] sm:$0xff] %v560_v1   ;;  %v572_v4 = vld [vmem:[%s539_s29 + $0x40] sm:$0xff]   ;;  %v576_v5 = vld [vmem:[%s539_s29 + $0x48] sm:$0xff]  }
  0x1d   : > { %565 = vst [vmem:[%s536_s22 + $0x10] sm:$0xff] %v564_v2   ;;  %v580_v6 = vld [vmem:[%s539_s29 + $0x60] sm:$0xff]   ;;  %v584_v7 = vld [vmem:[%s539_s29 + $0x68] sm:$0xff]  }
  0x1e   : > { %569 = vst [vmem:[%s536_s22 + $0x18] sm:$0xff] %v568_v3  }
  0x1f   : > { %573 = vst [vmem:[%s536_s22 + $0x20] sm:$0xff] %v572_v4  }
  0x20   : > { %577 = vst [vmem:[%s536_s22 + $0x28] sm:$0xff] %v576_v5  }
  0x21   : > { %581 = vst [vmem:[%s536_s22 + $0x30] sm:$0xff] %v580_v6  }
  0x22   : > { %585 = vst [vmem:[%s536_s22 + $0x38] sm:$0xff] %v584_v7  }
  0x23 PF: > { %p4868_p5 = scmp.ge.s32.totalorder %s6363_s20, 1  ;;  %p650_p6 = scmp.lt.s32.totalorder %s6363_s20, 3 }
  0x25   : > { %p651_p7 = pnand %p4868_p5, %p650_p6 }
  0x26   : > { %s8555_s25 = sld [smem:[#allocation9_spill]] (!%p651_p7)  ;;  %s657_s27 = sand.u32 (!%p651_p7), 1, %s6355_s0  }
  0x27   : > { %654 = sbr.rel (%p651_p7) target bundleno = 2008 (0x7d8), region = 133  ;;  %s4869_s22 = sshll.u32 (!%p651_p7), %s657_s27, 6 }
  0x28   : > { %s6576_s27 = scalar_lea.vmem (!%p651_p7), [#allocation4], %s4869_s22  ;;  %s8556_s0 = sld [smem:[#allocation10_spill]] (!%p651_p7) }
  0x29   : > { %s8560_s24 = sadd.s32 (!%p651_p7), 4294967295, %s6363_s20   ;;  %s8561_s2 = sld [smem:[#allocation8_spill]] (!%p651_p7) }
  0x2c   : > { %v4890_v8 = vld [vmem:[%s8555_s25 + $0x10] sm:$0xf]  ;;  %v6073_v9 = vld [vmem:[%s8555_s25 + $0x14] sm:$0xf0]  ;;  %v6072_v10 = vld [vmem:[%s8555_s25 + $0x14] sm:$0xf] }
  0x2d   : > { %v6511_v11 = vor.u32 %v6073_v9, %v4890_v8  ;;  %v4892_v12 = vld [vmem:[%s8555_s25 + $0x18] sm:$0xf0]  ;;  %v4926_v13 = vld [vmem:[%s8555_s25 + $0x30] sm:$0xf]  ;;  %v6079_v14 = vld [vmem:[%s8555_s25 + $0x34] sm:$0xf0] }
  0x2e   : > { %v6522_v15 = vor.u32 %v6072_v10, %v4892_v12  ;;  %v6524_v16 = vor.u32 %v6079_v14, %v4926_v13  ;;  %v4882_v17 = vld [vmem:[%s8555_s25] sm:$0xf]  ;;  %v6071_v18 = vld [vmem:[%s8555_s25 + $0x4] sm:$0xf0]  ;;  %v6070_v19 = vld [vmem:[%s8555_s25 + $0x4] sm:$0xf]  ;;  %s8557_s28 = smov %s8556_s0 }
  0x2f   : > { %779 = vmatpush.bf16.msra.mxu0 %v6511_v11  ;;  %v6536_v20 = vor.u32 %v6071_v18, %v4882_v17  ;;  %v4884_v21 = vld [vmem:[%s8555_s25 + $0x8] sm:$0xf0]  ;;  %v4918_v22 = vld [vmem:[%s8555_s25 + $0x20] sm:$0xf]  ;;  %v6077_v23 = vld [vmem:[%s8555_s25 + $0x24] sm:$0xf0] }
  0x30   : > { %798 = vmatpush.bf16.msra.mxu1 %v6522_v15  ;;  %6297 = vmatpush.bf16.msra.mxu3 %v6524_v16  ;;  %v6549_v24 = vor.u32 %v6070_v19, %v4884_v21  ;;  %v6551_v25 = vor.u32 %v6077_v23, %v4918_v22  ;;  %v6078_v26 = vld [vmem:[%s8555_s25 + $0x34] sm:$0xf]  ;;  %v4928_v27 = vld [vmem:[%s8555_s25 + $0x38] sm:$0xf0]  ;;  %v6076_v29 = vld [vmem:[%s8555_s25 + $0x24] sm:$0xf] }
  0x31   : > { %876 = vmatpush.bf16.msra.mxu2 %v6524_v16  ;;  %v6561_v28 = vor.u32 %v6078_v26, %v4928_v27  ;;  %v4920_v30 = vld [vmem:[%s8555_s25 + $0x28] sm:$0xf0]  ;;  %v4998_v31 = vld [vmem:[%s8555_s25 + $0x70] sm:$0xf]  ;;  %v6091_v32 = vld [vmem:[%s8555_s25 + $0x74] sm:$0xf0] }
  0x32   : > { %v6579_v33 = vld [vmem:[%s6576_s27] sm:$0xff]  ;;  %vm766_vm0 = vcmask 261120   ;;  %v6582_v34 = vld [vmem:[%s6576_s27 + $0x18] sm:$0xff]  ;;  %v6584_v35 = vor.u32 %v6091_v32, %v4998_v31  ;;  %v6589_v36 = vld [vmem:[%s6576_s27 + $0x10] sm:$0xff]  ;;  %v6599_v39 = vor.u32 %v6076_v29, %v4920_v30  ;;  %vm1105_vm1 = vsmask.f32 7424 }
  0x33   : > { %780 = vmatpush.bf16.msra.mxu0 %v6536_v20  ;;  %v4962_v37 = vld [vmem:[%s8555_s25 + $0x50] sm:$0xf]  ;;  %v6085_v38 = vld [vmem:[%s8555_s25 + $0x54] sm:$0xf0]  ;;  %v6084_v41 = vld [vmem:[%s8555_s25 + $0x54] sm:$0xf] }
  0x34   : > { %799 = vmatpush.bf16.msra.mxu1 %v6549_v24  ;;  %6298 = vmatpush.bf16.msra.mxu3 %v6551_v25  ;;  %v4963_v40 = vor.u32 %v6085_v38, %v4962_v37  ;;  %v4964_v42 = vld [vmem:[%s8555_s25 + $0x58] sm:$0xf0]  ;;  %v4990_v43 = vld [vmem:[%s8555_s25 + $0x60] sm:$0xf]  ;;  %v6089_v45 = vld [vmem:[%s8555_s25 + $0x64] sm:$0xf0] }
  0x35   : > { %877 = vmatpush.bf16.msra.mxu2 %v6551_v25  ;;  %v6613_v44 = vor.u32 %v6084_v41, %v4964_v42  ;;  %v4954_v46 = vld [vmem:[%s8555_s25 + $0x40] sm:$0xf]  ;;  %v6625_v47 = vor.u32 %v6089_v45, %v4990_v43  ;;  %v6083_v48 = vld [vmem:[%s8555_s25 + $0x44] sm:$0xf0]  ;;  %v6082_v49 = vld [vmem:[%s8555_s25 + $0x44] sm:$0xf] }
  0x36   : > { %4896 = vmatmul.msk.bf16.vlgmr.msra.gmra.mxu0 %vm766_vm0, %v6579_v33  ;;  %v4956_v50 = vld [vmem:[%s8555_s25 + $0x48] sm:$0xf0]  ;;  %v4955_v51 = vor.u32 %v6083_v48, %v4954_v46  ;;  %v6090_v52 = vld [vmem:[%s8555_s25 + $0x74] sm:$0xf]  ;;  %v5000_v53 = vld [vmem:[%s8555_s25 + $0x78] sm:$0xf0] }
  0x37   : > { %4898 = vmatmul.msk.bf16.vlgmr.msra.gmra.mxu1 %vm766_vm0, %v6579_v33  ;;  %4933 = vmatmul.msk.bf16.vlgmr.msra.gmra.mxu3 %vm766_vm0, %v6582_v34  ;;  %v4959_v54 = vor.u32 %v6082_v49, %v4956_v50  ;;  %v6646_v55 = vor.u32 %v6090_v52, %v5000_v53  ;;  %v6088_v56 = vld [vmem:[%s8555_s25 + $0x64] sm:$0xf]  ;;  %v4992_v57 = vld [vmem:[%s8555_s25 + $0x68] sm:$0xf0]  ;;  %v6662_v59 = vld [vmem:[%s6576_s27 + $0x8] sm:$0xff]  ;;  %v1108_v12 = vshll.u32 %v6579_v33, 16 }
  0x38   : > { %895 = vmatpush.bf16.msrb.mxu3 %v6561_v28  ;;  %4932 = vmatmul.msk.bf16.vlgmr.msra.gmra.mxu2 %vm766_vm0, %v6589_v36  ;;  %v6656_v58 = vor.u32 %v6088_v56, %v4992_v57  ;;  %v6665_v60 = vld [vmem:[%s6576_s27 + $0x30] sm:$0xff]  ;;  %v5022_v61 = vld [vmem:[%s8555_s25 + $0x90] sm:$0xf]  ;;  %v6095_v62 = vld [vmem:[%s8555_s25 + $0x94] sm:$0xf0]  ;;  %v1106_v13 = vshrl.u32 %v6579_v33, 16 }
  0x39   : > { %1060 = vmatpush.bf16.msrb.mxu2 %v6584_v35  ;;  %968 = vmatpush.bf16.msrb.mxu0 %v4963_v40  ;;  %v6094_v63 = vld [vmem:[%s8555_s25 + $0x94] sm:$0xf]  ;;  %v5023_v0 = vor.u32 %v6095_v62, %v5022_v61  ;;  %v5024_v1 = vld [vmem:[%s8555_s25 + $0x98] sm:$0xf0]  ;;  %v5014_v2 = vld [vmem:[%s8555_s25 + $0x80] sm:$0xf] }
  0x3a   : > { %987 = vmatpush.bf16.msrb.mxu1 %v6613_v44  ;;  %v6093_v3 = vld [vmem:[%s8555_s25 + $0x84] sm:$0xf0]  ;;  %v5027_v4 = vor.u32 %v6094_v63, %v5024_v1  ;;  %v6092_v5 = vld [vmem:[%s8555_s25 + $0x84] sm:$0xf]  ;;  %v5016_v6 = vld [vmem:[%s8555_s25 + $0x88] sm:$0xf0] }
  0x3b   : > { %v5015_v7 = vor.u32 %v6093_v3, %v5014_v2  ;;  %v5019_v8 = vor.u32 %v6092_v5, %v5016_v6  ;;  %v6080_v9 = vld [vmem:[%s6576_s27 + $0x20] sm:$0xff]  ;;  %v6703_v10 = vld [vmem:[%s6576_s27 + $0x38] sm:$0xff]  ;;  %v1110_v14 = vrot.slane %v1108_v12, 1  ;;  %v1116_v19 = vshrl.u32 %v6662_v59, 16  ;;  %v727_v29 = vld [vmem:[%s8556_s0] sm:$0x3] }
  0x3c   : > { %896 = vmatpush.bf16.msrb.mxu3 %v6599_v39  ;;  %v1385_v21 = vshll.u32 %v6589_v36, 16  ;;  %v1383_v22 = vshrl.u32 %v6589_v36, 16  ;;  %v6763_v33 = vperm.slane %v727_v29, 0  ;;  %v6777_v41 = vperm.slane %v727_v29, 1 }
  0x3d   : > { %1061 = vmatpush.bf16.msrb.mxu2 %v6625_v47  ;;  %969 = vmatpush.bf16.msrb.mxu0 %v4955_v51  ;;  %vm1559_vm2 = vcmask 1043456   ;;  %vm1552_vm3 = vcmask 326656   ;;  %vm1735_vm4 = vcmask 683008   ;;  %vm1740_vm5 = vsmask.f32 3328 }
  0x3e   : > { %988 = vmatpush.bf16.msrb.mxu1 %v4959_v54  ;;  %v1387_v23 = vrot.slane %v1385_v21, 1  ;;  %vm7303_vm6 = vmand %vm1735_vm4, %vm1740_vm5  ;;  %vm2866_vm7 = vcmask 1041408   ;;  %vm2859_vm8 = vcmask 687104   ;;  %vm3359_vm9 = vcmask 1046528  }
  0x3f   : > { %vm4002_vm10 = vcmask 650240   ;;  %vm4067_vm11 = vcmask 654336   ;;  %vm4006_vm12 = vcmask 649216   ;;  %vm4007_vm13 = vsmask.f32 2304 }
  0x40   : > { %1079 = vmatpush.bf16.msra.mxu3 %v6646_v55  ;;  %vm4008_vm14 = vmand %vm4006_vm12, %vm4007_vm13  ;;  %vm4275_vm15 = vsmask.f32 6400  ;;  %vm4681_vm5 = vcmask 1042434  }
  0x41   : > { %1205 = vmatpush.bf16.msra.mxu2 %v6511_v11  ;;  %1151 = vmatpush.bf16.msra.mxu0 %v5023_v0  ;;  %v6081_v11 = vld [vmem:[%s6576_s27 + $0x28] sm:$0xff] }
  0x42   : > { %1170 = vmatpush.bf16.msra.mxu1 %v5027_v4 }
  0x44   : > { %1080 = vmatpush.bf16.msra.mxu3 %v6656_v58 }
  0x45   : > { %1206 = vmatpush.bf16.msra.mxu2 %v6536_v20  ;;  %1152 = vmatpush.bf16.msra.mxu0 %v5015_v7 }
  0x46   : > { %4897 = vmatmul.msk.bf16.gmra.mxu0 %vm766_vm0, %v6662_v59  ;;  %1171 = vmatpush.bf16.msra.mxu1 %v5019_v8 }
  0x47   : > { %4899 = vmatmul.msk.bf16.gmra.mxu1 %vm766_vm0, %v6662_v59  ;;  %4934 = vmatmul.msk.bf16.vlgmr.msrb.gmra.mxu3 %vm766_vm0, %v6589_v36 }
  0x48   : > { %5004 = vmatmul.msk.bf16.vlgmr.msrb.gmra.mxu2 %vm766_vm0, %v6665_v60  ;;  %1224 = vmatpush.bf16.msrb.mxu3 %v6522_v15  ;;  %v1112_v15 = vshll.u32 %v6662_v59, 16 }
  0x49   : > { %1297 = vmatpush.bf16.msrb.mxu2 %v4963_v40 }
  0x4a   : > { %v1114_v17 = vrot.slane %v1112_v15, 1 }
  0x4c   : > { %1225 = vmatpush.bf16.msrb.mxu3 %v6549_v24  ;;  %v1118_v20 = vor.u32 %v1116_v19, %v1114_v17  ;;  %v1389_v24 = vshll.u32 %v6582_v34, 16 }
  0x4d   : > { %1298 = vmatpush.bf16.msrb.mxu2 %v4955_v51 }
  0x4e   : > { %v1391_v26 = vrot.slane %v1389_v24, 1 }
  0x56   : > { %4968 = vmatmul.msk.bf16.vlgmr.msrb.gmra.mxu0 %vm766_vm0, %v6080_v9 }
  0x57   : > { %4935 = vmatmul.msk.bf16.gmra.mxu3 %vm766_vm0, %v6582_v34  ;;  %4970 = vmatmul.msk.bf16.vlgmr.msrb.gmra.mxu1 %vm766_vm0, %v6080_v9 }
  0x58   : > { %5005 = vmatmul.msk.bf16.gmra.mxu2 %vm766_vm0, %v6703_v10  ;;  %1251 = vmatpush.bf16.msrb.mxu0 %v6524_v16  ;;  %v1111_v16 = vor.u32 %v1110_v14, %v1106_v13 }
  0x59   : > { %1270 = vmatpush.bf16.msrb.mxu1 %v6561_v28  ;;  %v1393_v28 = vshrl.u32 %v6582_v34, 16 }
  0x5a   : > { %v1115_v18 = vsel %vm1105_vm1, %v1111_v16, %v1114_v17 }
  0x5b   : > { %v1395_v32 = vor.u32 %v1393_v28, %v1391_v26 }
  0x5c   : > { %1252 = vmatpush.bf16.msrb.mxu0 %v6551_v25  ;;  %v1388_v25 = vor.u32 %v1387_v23, %v1383_v22 }
  0x5d   : > { %1271 = vmatpush.bf16.msrb.mxu1 %v6599_v39 }
  0x5e   : > { %v1392_v27 = vsel %vm1105_vm1, %v1388_v25, %v1391_v26 }
  0x66   : > { %4969 = vmatmul.msk.bf16.gmra.mxu0 %vm766_vm0, %v6081_v11 }
  0x67   : > { %4971 = vmatmul.msk.bf16.gmra.mxu1 %vm766_vm0, %v6081_v11  ;;  %5006 = vmatmul.msk.bf16.vlgmr.msra.gmra.mxu3 %vm766_vm0, %v6665_v60 }
  0x68   : > { %5032 = vmatmul.msk.bf16.vlgmr.msra.gmra.mxu2 %vm766_vm0, %v6589_v36  ;;  %1316 = vmatpush.bf16.msra.mxu3 %v6613_v44 }
  0x69   : > { %1408 = vmatpush.bf16.msra.mxu2 %v5023_v0 }
  0x6c   : > { %1317 = vmatpush.bf16.msra.mxu3 %v4959_v54 }
  0x6d   : > { %1409 = vmatpush.bf16.msra.mxu2 %v5015_v7 }
  0x76   : > { %5028 = vmatmul.msk.bf16.vlgmr.msra.gmra.mxu0 %vm766_vm0, %v1115_v18 }
  0x77   : > { %5007 = vmatmul.msk.bf16.gmra.mxu3 %vm766_vm0, %v6703_v10  ;;  %5030 = vmatmul.msk.bf16.vlgmr.msra.gmra.mxu1 %vm766_vm0, %v1115_v18 }
  0x78   : > { %5033 = vmatmul.msk.bf16.gmra.mxu2 %vm766_vm0, %v6582_v34  ;;  %1343 = vmatpush.bf16.msra.mxu0 %v6584_v35 }
  0x79   : > { %1362 = vmatpush.bf16.msra.mxu1 %v6646_v55 }
  0x7c   : > { %1344 = vmatpush.bf16.msra.mxu0 %v6625_v47 }
  0x7d   : > { %1363 = vmatpush.bf16.msra.mxu1 %v6656_v58 }
  0x86   : > { %5029 = vmatmul.msk.bf16.gmra.mxu0 %vm766_vm0, %v1118_v20 }
  0x87   : > { %5031 = vmatmul.msk.bf16.gmra.mxu1 %vm766_vm0, %v1118_v20  ;;  %5034 = vmatmul.msk.bf16.vlgmr.msrb.gmra.mxu3 %vm766_vm0, %v6589_v36 }
  0x88   : > { %5040 = vmatmul.msk.bf16.vlgmr.msrb.gmra.mxu2 %vm766_vm0, %v6665_v60  ;;  %1427 = vmatpush.bf16.msrb.mxu3 %v5027_v4 }
  0x8c   : > { %1428 = vmatpush.bf16.msrb.mxu3 %v5019_v8 }
  0x96   : > { %5036 = vmatmul.msk.bf16.vlgmr.msrb.gmra.mxu0 %vm766_vm0, %v6080_v9 }
  0x97   : > { %5035 = vmatmul.msk.bf16.gmra.mxu3 %vm766_vm0, %v6582_v34  ;;  %5038 = vmatmul.msk.bf16.vlgmr.msrb.gmra.mxu1 %vm766_vm0, %v6080_v9 }
  0x98   : > { %5041 = vmatmul.msk.bf16.gmra.mxu2 %vm766_vm0, %v6703_v10 }
  0xa6   : > { %5037 = vmatmul.msk.bf16.gmra.mxu0 %vm766_vm0, %v6081_v11 }
  0xa7   : > { %5039 = vmatmul.msk.bf16.gmra.mxu1 %vm766_vm0, %v6081_v11  ;;  %5042 = vmatmul.msk.bf16.vlgmr.msra.gmra.mxu3 %vm766_vm0, %v6665_v60 }
  0xa8   : > { %5048 = vmatmul.msk.bf16.vlgmr.msra.gmra.mxu2 %vm766_vm0, %v1392_v27 }
  0xb3   : > { %v782_v30 = vpop.f32.mrf.mxu0 }
  0xb4   : > { %v801_v31 = vpop.f32.mrf.mxu1  ;;  %v816_v35 = vadd.f32 %v6763_v33, %v782_v30 }
  0xb5   : > { %v817_v47 = vadd.f32 %v6777_v41, %v801_v31  ;;  %v6103_v31 = vld [vmem:[%s8529_s4 + $0x38] sm:$0xff] }
  0xb6   : > { %5044 = vmatmul.msk.bf16.vlgmr.msra.gmra.mxu0 %vm766_vm0, %v1115_v18 }
  0xb7   : > { %5043 = vmatmul.msk.bf16.gmra.mxu3 %vm766_vm0, %v6703_v10  ;;  %5046 = vmatmul.msk.bf16.vlgmr.msra.gmra.mxu1 %vm766_vm0, %v1115_v18 }
  0xb8   : > { %5049 = vmatmul.msk.bf16.gmra.mxu2 %vm766_vm0, %v1395_v32  ;;  %1563 = vmatpush.bf16.msrb.mxu0 %v6103_v31 }
  0xba   : > { %v884_v34 = vpop.f32.mrf.mxu3 }
  0xbb   : > { %v6771_v36 = vpop.f32.mrf.mxu0  ;;  %v879_v37 = vpop.f32.mrf.mxu2 }
  0xbc   : > { %v6773_v38 = vpop.f32.mrf.mxu1  ;;  %v908_v39 = vadd.f32 %v879_v37, %v816_v35  ;;  %v6112_v37 = vld [vmem:[%s8529_s4 + $0x84] sm:$0xff] }
  0xc2   : > { %v6775_v40 = vpop.f32.mrf.mxu3 }
  0xc3   : > { %v787_v42 = vpop.f32.mrf.mxu0  ;;  %v6779_v43 = vpop.f32.mrf.mxu2 }
  0xc4   : > { %v820_v44 = vadd.f32 %v6763_v33, %v787_v42  ;;  %v806_v45 = vpop.f32.mrf.mxu1 }
  0xc5   : > { %v821_v60 = vadd.f32 %v6777_v41, %v806_v45  ;;  %v6101_v45 = vld [vmem:[%s8529_s4 + $0x28] sm:$0xff] }
  0xc6   : > { %5045 = vmatmul.msk.bf16.gmra.mxu0 %vm766_vm0, %v1118_v20  ;;  %v912_v46 = vadd.f32 %v884_v34, %v820_v44  ;;  %v6102_v34 = vld [vmem:[%s8529_s4 + $0x30] sm:$0xff] }
  0xc7   : > { %5047 = vmatmul.msk.bf16.gmra.mxu1 %vm766_vm0, %v1118_v20  ;;  %5050 = vmatmul.msk.bf16.vlgmr.msrb.gmra.mxu3 %vm766_vm0, %v1392_v27 }
  0xc8   : > { %1564 = vmatpush.bf16.msrb.mxu0 %v6102_v34 }
  0xca   : > { %v898_v48 = vpop.f32.mrf.mxu3 }
  0xcb   : > { %v909_v49 = vadd.f32 %v898_v48, %v817_v47  ;;  %v6786_v50 = vpop.f32.mrf.mxu0  ;;  %v1063_v51 = vpop.f32.mrf.mxu2  ;;  %v6100_v48 = vld [vmem:[%s8529_s4 + $0x20] sm:$0xff] }
  0xcc   : > { %v6788_v52 = vpop.f32.mrf.mxu1  ;;  %1565 = vmatpush.bf16.msrb.mxu0 %v6101_v45 }
  0xd0   : > { %1566 = vmatpush.bf16.msrb.mxu0 %v6100_v48 }
  0xd2   : > { %v6790_v53 = vpop.f32.mrf.mxu3 }
  0xd3   : > { %v971_v54 = vpop.f32.mrf.mxu0  ;;  %v6792_v55 = vpop.f32.mrf.mxu2 }
  0xd4   : > { %v1000_v56 = vadd.f32 %v971_v54, %v908_v39  ;;  %v990_v57 = vpop.f32.mrf.mxu1 }
  0xd5   : > { %v1001_v58 = vadd.f32 %v990_v57, %v909_v49  ;;  %v6110_v49 = vld [vmem:[%s8529_s4 + $0x74] sm:$0xff]  ;;  %v6109_v57 = vld [vmem:[%s8529_s4 + $0x6c] sm:$0xff] }
  0xd6   : > { %v1092_v59 = vadd.f32 %v1063_v51, %v1000_v56  ;;  %v6099_v56 = vld [vmem:[%s8529_s4 + $0x18] sm:$0xff] }
  0xd7   : > { %5051 = vmatmul.msk.bf16.gmra.mxu3 %vm766_vm0, %v1395_v32  ;;  %v6113_v32 = vld [vmem:[%s8529_s4 + $0x8c] sm:$0xff]  ;;  %1567 = vmatpush.bf16.msrb.mxu0 %v6099_v56 }
  0xd8   : > { %1689 = vmatpush.bf16.msrb.mxu2 %v6113_v32 }
  0xda   : > { %v903_v61 = vpop.f32.mrf.mxu3 }
  0xdb   : > { %v913_v62 = vadd.f32 %v903_v61, %v821_v60  ;;  %v6796_v63 = vpop.f32.mrf.mxu0  ;;  %v1068_v0 = vpop.f32.mrf.mxu2  ;;  %v6098_v60 = vld [vmem:[%s8529_s4 + $0x10] sm:$0xff]  ;;  %v6108_v61 = vld [vmem:[%s8529_s4 + $0x64] sm:$0xff] }
  0xdc   : > { %v6798_v1 = vpop.f32.mrf.mxu1  ;;  %1690 = vmatpush.bf16.msrb.mxu2 %v6112_v37  ;;  %1568 = vmatpush.bf16.msrb.mxu0 %v6098_v60 }
  0xe2   : > { %v6800_v2 = vpop.f32.mrf.mxu3 }
  0xe3   : > { %v976_v3 = vpop.f32.mrf.mxu0  ;;  %v6802_v4 = vpop.f32.mrf.mxu2 }
  0xe4   : > { %v1004_v5 = vadd.f32 %v976_v3, %v912_v46  ;;  %v995_v6 = vpop.f32.mrf.mxu1  ;;  %v6111_v46 = vld [vmem:[%s8529_s4 + $0x7c] sm:$0xff]  ;;  %v6097_v3 = vld [vmem:[%s8529_s4 + $0x8] sm:$0xff] }
  0xe5   : > { %v1005_v7 = vadd.f32 %v995_v6, %v913_v62  ;;  %1691 = vmatpush.bf16.msrb.mxu2 %v6111_v46  ;;  %1569 = vmatpush.bf16.msrb.mxu0 %v6097_v3 }
  0xe6   : > { %v1096_v8 = vadd.f32 %v1068_v0, %v1004_v5  ;;  %v6107_v5 = vld [vmem:[%s8529_s4 + $0x5c] sm:$0xff] }
  0xe9   : > { %1692 = vmatpush.bf16.msrb.mxu2 %v6110_v49 }
  0xea   : > { %v1082_v9 = vpop.f32.mrf.mxu3 }
  0xeb   : > { %v1093_v10 = vadd.f32 %v1082_v9, %v1001_v58  ;;  %v6804_v11 = vpop.f32.mrf.mxu0  ;;  %v6806_v12 = vpop.f32.mrf.mxu2  ;;  %v6106_v9 = vld [vmem:[%s8529_s4 + $0x54] sm:$0xff] }
  0xec   : > { %v6808_v13 = vpop.f32.mrf.mxu1  ;;  %v1237_v32 = vadd.f32 %v6806_v12, %v6763_v33  ;;  %v6105_v12 = vld [vmem:[%s8529_s4 + $0x48] sm:$0xff] }
  0xed   : > { %1693 = vmatpush.bf16.msrb.mxu2 %v6109_v57  ;;  %v818_v57 = vadd.f32 %v6763_v33, %v6771_v36 }
  0xf1   : > { %1694 = vmatpush.bf16.msrb.mxu2 %v6108_v61 }
  0xf2   : > { %v6810_v14 = vpop.f32.mrf.mxu3 }
  0xf3   : > { %v1154_v15 = vpop.f32.mrf.mxu0  ;;  %v6812_v16 = vpop.f32.mrf.mxu2 }
  0xf4   : > { %v6814_v17 = vadd.f32 %v1154_v15, %v1092_v59  ;;  %v1173_v18 = vpop.f32.mrf.mxu1 }
  0xf5   : > { %v6816_v19 = vadd.f32 %v1173_v18, %v1093_v10  ;;  %1695 = vmatpush.bf16.msrb.mxu2 %v6107_v5  ;;  %v910_v5 = vadd.f32 %v6779_v43, %v818_v57  ;;  %v6114_v43 = vld [vmem:[%s8529_s4 + $0x94] sm:$0xff] }
  0xf9   : > { %1696 = vmatpush.bf16.msrb.mxu2 %v6106_v9 }
  0xfa   : > { %v1087_v20 = vpop.f32.mrf.mxu3 }
  0xfb   : > { %v1097_v21 = vadd.f32 %v1087_v20, %v1005_v7  ;;  %v6818_v22 = vpop.f32.mrf.mxu0  ;;  %v6820_v23 = vpop.f32.mrf.mxu2  ;;  %v1488_v20 = vld [vmem:[%s8529_s4 + $0x50] sm:$0xf] }
  0xfc   : > { %v6822_v24 = vpop.f32.mrf.mxu1 }
 0x102   : > { %v6824_v25 = vpop.f32.mrf.mxu3 }
 0x103   : > { %v1159_v26 = vpop.f32.mrf.mxu0  ;;  %v6826_v27 = vpop.f32.mrf.mxu2 }
 0x104   : > { %v6828_v28 = vadd.f32 %v1159_v26, %v1096_v8  ;;  %v1178_v29 = vpop.f32.mrf.mxu1  ;;  %v6096_v8 = vld [vmem:[%s8529_s4] sm:$0xff] }
 0x105   : > { %v6830_v30 = vadd.f32 %v1178_v29, %v1097_v21  ;;  %1570 = vmatpush.bf16.msrb.mxu0 %v6096_v8  ;;  %v5114_v21 = vld [vmem:[%s8529_s4 + $0xa4] sm:$0xf]  ;;  %v1530_v29 = vunpack.c.l.b16 %v1488_v20  ;;  %v1239_v8 = vadd.f32 %v6812_v16, %v6763_v33  ;;  %v1191_v16 = vmax.f32 %v6814_v17, 0.0  ;;  %v5179_v17 = vld [vmem:[%s8555_s25 + $0x10] sm:$0xf] }
 0x106   : > { %v1664_v31 = vunpack.c.l.b16 %v5114_v21 }
 0x107   : > { %v1541_v45 = vpack.c.b16 %v1530_v29, %v1530_v29  ;;  %v6104_v29 = vld [vmem:[%s8529_s4 + $0x40] sm:$0xff] }
 0x108   : > { %v1675_v46 = vpack.c.b16 %v1664_v31, %v1664_v31 }
 0x109   : > { %v1561_v49 = vsel %vm1559_vm2, %v1541_v45, 0 }
 0x10a   : > { %v6838_v35 = vpop.f32.mrf.mxu3  ;;  %v1687_v56 = vsel %vm1559_vm2, %v1675_v46, 0  ;;  %1587 = vmatpush.bf16.msrb.mxu1 %v1561_v49  ;;  %v1241_v49 = vadd.f32 %v6820_v23, %v6763_v33 }
 0x10b   : > { %v6846_v39 = vpop.f32.mrf.mxu0  ;;  %v1300_v42 = vpop.f32.mrf.mxu2  ;;  %1713 = vmatpush.bf16.msra.mxu3 %v1687_v56 }
 0x10c   : > { %v6848_v44 = vpop.f32.mrf.mxu1 }
 0x10e   : > { %1588 = vmatpush.bf16.msrb.mxu1 %v6105_v12 }
 0x112   : > { %v6856_v47 = vpop.f32.mrf.mxu3  ;;  %1589 = vmatpush.bf16.msrb.mxu1 %v6104_v29 }
 0x113   : > { %v1254_v51 = vpop.f32.mrf.mxu0  ;;  %v6864_v54 = vpop.f32.mrf.mxu2 }
 0x114   : > { %v6872_v58 = vpop.f32.mrf.mxu1  ;;  %v1283_v48 = vadd.f32 %v1254_v51, %v1237_v32  ;;  %v6115_v51 = vld [vmem:[%s8529_s4 + $0x9c] sm:$0xff] }
 0x115   : > { %1714 = vmatpush.bf16.msra.mxu3 %v6115_v51  ;;  %v822_v51 = vadd.f32 %v6763_v33, %v6786_v50  ;;  %v5207_v50 = vld [vmem:[%s8555_s25 + $0x20] sm:$0xf] }
 0x116   : > { %v1329_v60 = vadd.f32 %v1300_v42, %v1283_v48  ;;  %v1002_v42 = vadd.f32 %v6796_v63, %v910_v5 }
 0x118   : > { %v1094_v63 = vadd.f32 %v6792_v55, %v1002_v42  ;;  %v6121_v55 = vld [vmem:[%s8555_s25 + $0x14] sm:$0xf0]  ;;  %v6119_v42 = vld [vmem:[%s8555_s25 + $0x4] sm:$0xf0] }
 0x119   : > { %1715 = vmatpush.bf16.msra.mxu3 %v6114_v43  ;;  %v6957_v12 = vor.u32 %v6121_v55, %v5179_v17 }
 0x11a   : > { %v6874_v59 = vpop.f32.mrf.mxu3  ;;  %v1185_v48 = vadd.f32 %v6818_v22, %v1094_v63  ;;  %v6127_v22 = vld [vmem:[%s8555_s25 + $0x34] sm:$0xf0] }
 0x11b   : > { %v1256_v62 = vpop.f32.mrf.mxu0  ;;  %v6882_v0 = vpop.f32.mrf.mxu2  ;;  %1796 = vmatpush.bf16.msra.mxu0 %v6957_v12 }
 0x11c   : > { %v6890_v6 = vpop.f32.mrf.mxu1  ;;  %v1285_v9 = vadd.f32 %v1256_v62, %v1239_v8 }
 0x11e   : > { %v1331_v62 = vadd.f32 %v6864_v54, %v1285_v9  ;;  %v5215_v54 = vld [vmem:[%s8555_s25 + $0x30] sm:$0xf] }
 0x11f   : > { %v6962_v23 = vor.u32 %v6127_v22, %v5215_v54  ;;  %v1240_v22 = vadd.f32 %v6856_v47, %v6777_v41 }
 0x121   : > { %1891 = vmatpush.bf16.msra.mxu2 %v6962_v23 }
 0x122   : > { %v6892_v7 = vpop.f32.mrf.mxu3 }
 0x123   : > { %v1259_v10 = vpop.f32.mrf.mxu0  ;;  %v6900_v15 = vpop.f32.mrf.mxu2 }
 0x124   : > { %v6914_v34 = vpop.f32.mrf.mxu1  ;;  %v1287_v57 = vadd.f32 %v1259_v10, %v1241_v49  ;;  %v5171_v10 = vld [vmem:[%s8555_s25] sm:$0xf] }
 0x125   : > { %v6980_v43 = vor.u32 %v6119_v42, %v5171_v10  ;;  %v1286_v10 = vadd.f32 %v6890_v6, %v1240_v22  ;;  %v5239_v22 = vld [vmem:[%s8555_s25 + $0x40] sm:$0xf] }
 0x126   : > { %v1333_v9 = vadd.f32 %v6882_v0, %v1287_v57  ;;  %v1243_v0 = vadd.f32 %v6826_v27, %v6763_v33  ;;  %v819_v33 = vadd.f32 %v6777_v41, %v6773_v38  ;;  %v1195_v27 = vmax.f32 %v6828_v28, 0.0  ;;  %v6120_v38 = vld [vmem:[%s8555_s25 + $0x14] sm:$0xf] }
 0x127   : > { %1797 = vmatpush.bf16.msra.mxu0 %v6980_v43 }
 0x12a   : > { %v6902_v18 = vpop.f32.mrf.mxu3 }
 0x12b   : > { %v6910_v26 = vpop.f32.mrf.mxu0  ;;  %v1411_v37 = vpop.f32.mrf.mxu2 }
 0x12c   : > { %v6932_v20 = vpop.f32.mrf.mxu1 }
 0x132   : > { %v6920_v61 = vpop.f32.mrf.mxu3 }
 0x133   : > { %v1346_v3 = vpop.f32.mrf.mxu0  ;;  %v1413_v31 = vpop.f32.mrf.mxu2 }
 0x134   : > { %v1375_v36 = vadd.f32 %v1346_v3, %v1329_v60  ;;  %v1193_v3 = vmax.f32 %v1185_v48, 0.0  ;;  %v1365_v5 = vpop.f32.mrf.mxu1 }
 0x136   : > { %v1440_v21 = vadd.f32 %v1411_v37, %v1375_v36 }
 0x138   : > { %v1448_v32 = vmax.f32 %v1440_v21, 0.0 }
 0x13a   : > { %v1456_v45 = vmax.f32 %v1191_v16, %v1448_v32  ;;  %v6943_v37 = vpop.f32.mrf.mxu3  ;;  %v1238_v16 = vadd.f32 %v6838_v35, %v6777_v41  ;;  %v1289_v35 = vadd.f32 %v6910_v26, %v1243_v0  ;;  %v1242_v0 = vadd.f32 %v6874_v59, %v6777_v41  ;;  %v6124_v59 = vld [vmem:[%s8555_s25 + $0x24] sm:$0xf] }
 0x13b   : > { %v1348_v46 = vpop.f32.mrf.mxu0  ;;  %v1416_v36 = vpop.f32.mrf.mxu2 }
 0x13c   : > { %v1377_v56 = vadd.f32 %v1348_v46, %v1331_v62  ;;  %v914_v62 = vadd.f32 %v6775_v40, %v822_v51  ;;  %v1284_v49 = vadd.f32 %v6872_v58, %v1238_v16  ;;  %v911_v58 = vadd.f32 %v6790_v53, %v819_v33  ;;  %v1367_v57 = vpop.f32.mrf.mxu1  ;;  %v5181_v53 = vld [vmem:[%s8555_s25 + $0x18] sm:$0xf0] }
 0x13e   : > { %v1442_v60 = vadd.f32 %v1413_v31, %v1377_v56  ;;  %v6125_v31 = vld [vmem:[%s8555_s25 + $0x24] sm:$0xf0]  ;;  %v1006_v56 = vadd.f32 %v6804_v11, %v914_v62  ;;  %v1330_v40 = vadd.f32 %v6902_v18, %v1284_v49  ;;  %v1335_v11 = vadd.f32 %v6900_v15, %v1289_v35  ;;  %v6118_v35 = vld [vmem:[%s8555_s25 + $0x4] sm:$0xf] }
 0x13f   : > { %v6987_v63 = vor.u32 %v6125_v31, %v5207_v50  ;;  %v1003_v28 = vadd.f32 %v6798_v1, %v911_v58 }
 0x140   : > { %v1450_v8 = vmax.f32 %v1442_v60, 0.0  ;;  %v1376_v55 = vadd.f32 %v1365_v5, %v1330_v40  ;;  %v1098_v54 = vadd.f32 %v6802_v4, %v1006_v56  ;;  %v6126_v4 = vld [vmem:[%s8555_s25 + $0x34] sm:$0xf]  ;;  %v7017_v5 = vor.u32 %v6120_v38, %v5181_v53  ;;  %v5275_v53 = vld [vmem:[%s8555_s25 + $0x60] sm:$0xf] }
 0x141   : > { %1892 = vmatpush.bf16.msra.mxu2 %v6987_v63  ;;  %v1095_v1 = vadd.f32 %v6810_v14, %v1003_v28  ;;  %v1288_v14 = vadd.f32 %v6914_v34, %v1242_v0  ;;  %v5209_v34 = vld [vmem:[%s8555_s25 + $0x28] sm:$0xf0] }
 0x142   : > { %v1458_v21 = vmax.f32 %v1193_v3, %v1450_v8  ;;  %v6978_v29 = vpop.f32.mrf.mxu3  ;;  %v1189_v15 = vadd.f32 %v6846_v39, %v1098_v54  ;;  %v5217_v8 = vld [vmem:[%s8555_s25 + $0x38] sm:$0xf0]  ;;  %1815 = vmatpush.bf16.msra.mxu1 %v7017_v5  ;;  %v1332_v39 = vadd.f32 %v6920_v61, %v1286_v10  ;;  %v7138_v0 = vld [vmem:[%s6576_s27 + $0x38] sm:$0xff] }
 0x143   : > { %v1351_v32 = vpop.f32.mrf.mxu0  ;;  %v1418_v3 = vpop.f32.mrf.mxu2  ;;  %v7024_v50 = vor.u32 %v6126_v4, %v5217_v8  ;;  %v1334_v40 = vadd.f32 %v6943_v37, %v1288_v14  ;;  %v6137_v4 = vld [vmem:[%s8555_s25 + $0x64] sm:$0xf0]  ;;  %v6136_v14 = vld [vmem:[%s8555_s25 + $0x64] sm:$0xf] }
 0x144   : > { %v1464_v46 = vpack.c.bf16 %v1458_v21, %v1456_v45  ;;  %v1379_v48 = vadd.f32 %v1351_v32, %v1333_v9  ;;  %v1197_v31 = vmax.f32 %v1189_v15, 0.0  ;;  %v1186_v32 = vadd.f32 %v6822_v24, %v1095_v1  ;;  %v5173_v24 = vld [vmem:[%s8555_s25 + $0x8] sm:$0xf0]  ;;  %v7104_v1 = vld [vmem:[%s6576_s27 + $0x30] sm:$0xff] }
 0x145   : > { %1910 = vmatpush.bf16.msrb.mxu3 %v7024_v50  ;;  %v7097_v8 = vor.u32 %v6137_v4, %v5275_v53 }
 0x146   : > { %v1444_v17 = vadd.f32 %v1416_v36, %v1379_v48  ;;  %1571 = vmatmul.bf16.vlgmr.msrb.gmra.mxu0 %v1464_v46  ;;  %1697 = vmatmul.bf16.vlgmr.msrb.gmra.mxu2 %v1464_v46  ;;  %v1192_v36 = vmax.f32 %v6816_v19, 0.0  ;;  %v1378_v19 = vadd.f32 %v1367_v57, %v1332_v39  ;;  %v1370_v48 = vpop.f32.mrf.mxu1  ;;  %v1194_v56 = vmax.f32 %v1186_v32, 0.0  ;;  %v6138_v32 = vld [vmem:[%s8555_s25 + $0x74] sm:$0xf] }
 0x147   : > { %v1244_v57 = vadd.f32 %v6892_v7, %v6777_v41  ;;  %v6139_v7 = vld [vmem:[%s8555_s25 + $0x74] sm:$0xf0] }
 0x148   : > { %v1452_v45 = vmax.f32 %v1444_v17, 0.0  ;;  %v7040_v17 = vor.u32 %v6118_v35, %v5173_v24  ;;  %v6135_v35 = vld [vmem:[%s6576_s27 + $0x18] sm:$0xff] }
 0x14a   : > { %v1460_v26 = vmax.f32 %v1195_v27, %v1452_v45  ;;  %v1430_v60 = vpop.f32.mrf.mxu3  ;;  %v7049_v27 = vor.u32 %v6124_v59, %v5209_v34  ;;  %v823_v45 = vadd.f32 %v6777_v41, %v6788_v52  ;;  %1816 = vmatpush.bf16.msra.mxu1 %v7040_v17  ;;  %v5247_v52 = vld [vmem:[%s8555_s25 + $0x50] sm:$0xf]  ;;  %v5277_v34 = vld [vmem:[%s8555_s25 + $0x68] sm:$0xf0] }
 0x14b   : > { %v1441_v18 = vadd.f32 %v1430_v60, %v1376_v55  ;;  %v1353_v51 = vpop.f32.mrf.mxu0  ;;  %v1380_v55 = vadd.f32 %v1370_v48, %v1334_v40  ;;  %v6134_v48 = vld [vmem:[%s6576_s27 + $0x10] sm:$0xff]  ;;  %v7160_v40 = vor.u32 %v6136_v14, %v5277_v34 }
 0x14c   : > { %v1381_v47 = vadd.f32 %v1353_v51, %v1335_v11  ;;  %1911 = vmatpush.bf16.msrb.mxu3 %v7049_v27  ;;  %v915_v54 = vadd.f32 %v6800_v2, %v823_v45  ;;  %v5283_v2 = vld [vmem:[%s8555_s25 + $0x70] sm:$0xf]  ;;  %v1196_v51 = vmax.f32 %v6830_v30, 0.0  ;;  %v2057_v24 = vshll.u32 %v6134_v48, 16 }
 0x14d   : > { %v1449_v42 = vmax.f32 %v1441_v18, 0.0  ;;  %v6131_v18 = vld [vmem:[%s8555_s25 + $0x44] sm:$0xf0]  ;;  %v7083_v38 = vor.u32 %v6139_v7, %v5283_v2 }
 0x14e   : > { %v1446_v9 = vadd.f32 %v1418_v3, %v1381_v47  ;;  %v1007_v60 = vadd.f32 %v6808_v13, %v915_v54  ;;  %v1290_v3 = vadd.f32 %v6932_v20, %v1244_v57  ;;  %v1372_v28 = vpop.f32.mrf.mxu1  ;;  %v7092_v15 = vor.u32 %v6131_v18, %v5239_v22  ;;  %v5307_v57 = vld [vmem:[%s8555_s25 + $0x90] sm:$0xf]  ;;  %v6141_v2 = vld [vmem:[%s8555_s25 + $0x84] sm:$0xf0] }
 0x14f   : > { %v1457_v21 = vmax.f32 %v1192_v36, %v1449_v42  ;;  %2101 = vmatpush.bf16.msrb.mxu2 %v7083_v38  ;;  %v2059_v54 = vrot.slane %v2057_v24, 1 }
 0x150   : > { %v1454_v16 = vmax.f32 %v1446_v9, 0.0  ;;  %v1099_v30 = vadd.f32 %v6824_v25, %v1007_v60  ;;  %v1336_v20 = vadd.f32 %v6978_v29, %v1290_v3  ;;  %v7101_v9 = vld [vmem:[%s6576_s27 + $0x20] sm:$0xff] }
 0x152   : > { %v1432_v62 = vpop.f32.mrf.mxu3  ;;  %v1462_v6 = vmax.f32 %v1197_v31, %v1454_v16  ;;  %v1190_v36 = vadd.f32 %v6848_v44, %v1099_v30  ;;  %v1382_v10 = vadd.f32 %v1372_v28, %v1336_v20  ;;  %v6132_v31 = vld [vmem:[%s8555_s25 + $0x54] sm:$0xf]  ;;  %v5249_v16 = vld [vmem:[%s8555_s25 + $0x58] sm:$0xf0]  ;;  %v6140_v30 = vld [vmem:[%s8555_s25 + $0x84] sm:$0xf] }
 0x153   : > { %v1443_v46 = vadd.f32 %v1432_v62, %v1378_v19  ;;  %2102 = vmatpush.bf16.msrb.mxu2 %v7097_v8  ;;  %v5285_v19 = vld [vmem:[%s8555_s25 + $0x78] sm:$0xf0]  ;;  %v5301_v20 = vld [vmem:[%s8555_s25 + $0x88] sm:$0xf0] }
 0x154   : > { %v1466_v49 = vpack.c.bf16 %v1462_v6, %v1460_v26  ;;  %v6133_v26 = vld [vmem:[%s8555_s25 + $0x54] sm:$0xf0]  ;;  %v1198_v25 = vmax.f32 %v1190_v36, 0.0  ;;  %v7130_v62 = vor.u32 %v6138_v32, %v5285_v19 }
 0x155   : > { %v1451_v61 = vmax.f32 %v1443_v46, 0.0  ;;  %v7070_v41 = vor.u32 %v6133_v26, %v5247_v52  ;;  %v7135_v6 = vld [vmem:[%s6576_s27 + $0x28] sm:$0xff]  ;;  %v6128_v46 = vld [vmem:[%s6576_s27] sm:$0xff]  ;;  %v5299_v52 = vld [vmem:[%s8555_s25 + $0x80] sm:$0xf] }
 0x156   : > { %1576 = vmatmul.bf16.gmra.mxu0 %v1466_v49  ;;  %1702 = vmatmul.bf16.gmra.mxu2 %v1466_v49  ;;  %v6129_v49 = vld [vmem:[%s6576_s27 + $0x8] sm:$0xff]  ;;  %v5300_v60 = vor.u32 %v6141_v2, %v5299_v52  ;;  %v2432_v2 = vshrl.u32 %v7138_v0, 16  ;;  %s4870_s27 = sshll.u32 %s8560_s24, 2 }
 0x157   : > { %v1459_v33 = vmax.f32 %v1194_v56, %v1451_v61  ;;  %1996 = vmatpush.bf16.msrb.mxu0 %v7070_v41  ;;  %v6130_v56 = vld [vmem:[%s8555_s25 + $0x44] sm:$0xf]  ;;  %v1952_v61 = vshll.u32 %v6128_v46, 16  ;;  %v1957_v45 = vshll.u32 %v6129_v49, 16  ;;  %p717_p8 = scmp.lt.s32.totalorder %s4870_s27, 7 }
 0x159   : > { %v1465_v58 = vpack.c.bf16 %v1459_v33, %v1457_v21  ;;  %v1950_v33 = vshrl.u32 %v6128_v46, 16  ;;  %v1959_v22 = vrot.slane %v1957_v45, 1  ;;  %s8566_s27 = smov (!%p717_p8, %s4870_s27), 7 }
 0x15a   : > { %v1435_v11 = vpop.f32.mrf.mxu3  ;;  %s719_s22 = scalar_lea.vmem %s8561_s2, %s8566_s27  ;;  %s724_s20 = scalar_lea.vmem %s8544_s19, %s8566_s27 }
 0x15b   : > { %v1445_v37 = vadd.f32 %v1435_v11, %v1380_v55  ;;  %5092 = vmatmul.msk.bf16.vlgmr.msrb.gmra.mxu1 %vm1552_vm3, %v1465_v58  ;;  %5155 = vmatmul.msk.bf16.vlgmr.msra.gmra.mxu3 %vm1552_vm3, %v1465_v58  ;;  %v1954_v55 = vrot.slane %v1952_v61, 1  ;;  %v2055_v58 = vshrl.u32 %v6134_v48, 16  ;;  %v2062_v11 = vshll.u32 %v6135_v35, 16 }
 0x15c   : > { %1997 = vmatpush.bf16.msrb.mxu0 %v7092_v15  ;;  %2120 = vmatpush.bf16.msra.mxu3 %v7130_v62 }
 0x15d   : > { %v1453_v13 = vmax.f32 %v1445_v37, 0.0  ;;  %v6143_v37 = vld [vmem:[%s8555_s25 + $0x94] sm:$0xf0]  ;;  %v1955_v7 = vor.u32 %v1954_v55, %v1950_v33  ;;  %v2060_v18 = vor.u32 %v2059_v54, %v2055_v58 }
 0x15e   : > { %v5308_v26 = vor.u32 %v6143_v37, %v5307_v57 }
 0x15f   : > { %v1461_v47 = vmax.f32 %v1196_v51, %v1453_v13  ;;  %v2064_v51 = vrot.slane %v2062_v11, 1  ;;  %v7182_v3 = vsel %vm1105_vm1, %v1955_v7, %v1959_v22 }
 0x160   : > { %2121 = vmatpush.bf16.msra.mxu3 %v7160_v40 }
 0x161   : > { %v7185_v13 = vsel %vm1105_vm1, %v2060_v18, %v2064_v51 }
 0x162   : > { %v1437_v42 = vpop.f32.mrf.mxu3 }
 0x163   : > { %v1447_v39 = vadd.f32 %v1437_v42, %v1382_v10  ;;  %v2151_v10 = vshll.u32 %v7135_v6, 16 }
 0x165   : > { %v1455_v29 = vmax.f32 %v1447_v39, 0.0  ;;  %v2153_v39 = vrot.slane %v2151_v10, 1 }
 0x166   : > { %5185 = vmatmul.msk.bf16.vlgmr.msra.gmra.mxu0 %vm766_vm0, %v7101_v9  ;;  %5221 = vmatmul.msk.bf16.vlgmr.msra.gmra.mxu2 %vm766_vm0, %v7104_v1 }
 0x167   : > { %v1463_v44 = vmax.f32 %v1198_v25, %v1455_v29  ;;  %2244 = vmatpush.bf16.msra.mxu2 %v6957_v12  ;;  %v7124_v12 = vor.u32 %v6132_v31, %v5249_v16  ;;  %2190 = vmatpush.bf16.msra.mxu0 %v5308_v26 }
 0x169   : > { %v1467_v21 = vpack.c.bf16 %v1463_v44, %v1461_v47  ;;  %2015 = vmatpush.bf16.msrb.mxu1 %v7124_v12  ;;  %v2145_v47 = vshrl.u32 %v7101_v9, 16 }
 0x16b   : > { %5093 = vmatmul.msk.bf16.gmra.mxu1 %vm1552_vm3, %v1467_v21  ;;  %5156 = vmatmul.msk.bf16.gmra.mxu3 %vm1552_vm3, %v1467_v21  ;;  %v2424_v21 = vshll.u32 %v7104_v1, 16 }
 0x16c   : > { %2245 = vmatpush.bf16.msra.mxu2 %v6980_v43  ;;  %v5241_v43 = vld [vmem:[%s8555_s25 + $0x48] sm:$0xf0]  ;;  %2191 = vmatpush.bf16.msra.mxu0 %v5300_v60 }
 0x16d   : > { %v5244_v59 = vor.u32 %v6130_v56, %v5241_v43  ;;  %v2426_v19 = vrot.slane %v2424_v21, 1 }
 0x16f   : > { %2016 = vmatpush.bf16.msrb.mxu1 %v5244_v59 }
 0x176   : > { %5186 = vmatmul.msk.bf16.gmra.mxu0 %vm766_vm0, %v7135_v6  ;;  %5222 = vmatmul.msk.bf16.gmra.mxu2 %vm766_vm0, %v7138_v0 }
 0x17b   : > { %5187 = vmatmul.msk.bf16.vlgmr.msra.gmra.mxu1 %vm766_vm0, %v7101_v9  ;;  %5223 = vmatmul.msk.bf16.vlgmr.msrb.gmra.mxu3 %vm766_vm0, %v7104_v1 }
 0x17c   : > { %2263 = vmatpush.bf16.msrb.mxu3 %v7017_v5  ;;  %v6142_v5 = vld [vmem:[%s8555_s25 + $0x94] sm:$0xf] }
 0x180   : > { %2264 = vmatpush.bf16.msrb.mxu3 %v7040_v17  ;;  %v5309_v17 = vld [vmem:[%s8555_s25 + $0x98] sm:$0xf0] }
 0x181   : > { %v5312_v53 = vor.u32 %v6142_v5, %v5309_v17 }
 0x183   : > { %2209 = vmatpush.bf16.msra.mxu1 %v5312_v53 }
 0x186   : > { %5253 = vmatmul.msk.bf16.vlgmr.msrb.gmra.mxu0 %vm766_vm0, %v7182_v3  ;;  %5289 = vmatmul.msk.bf16.vlgmr.msrb.gmra.mxu2 %vm766_vm0, %v7185_v13 }
 0x187   : > { %2290 = vmatpush.bf16.msrb.mxu0 %v6962_v23  ;;  %2336 = vmatpush.bf16.msrb.mxu2 %v7070_v41  ;;  %v1961_v23 = vshrl.u32 %v6129_v49, 16  ;;  %v2066_v41 = vshrl.u32 %v6135_v35, 16  ;;  %v1745_v49 = vld [vmem:[%s8557_s28] sm:$0x3] }
 0x188   : > { %v7277_v24 = vperm.slane %v1745_v49, 0 }
 0x189   : > { %v7205_v4 = vor.u32 %v1961_v23, %v1959_v22  ;;  %v7207_v28 = vor.u32 %v2066_v41, %v2064_v51  ;;  %v7300_v41 = vperm.slane %v1745_v49, 1 }
 0x18b   : > { %5188 = vmatmul.msk.bf16.gmra.mxu1 %vm766_vm0, %v7135_v6  ;;  %5224 = vmatmul.msk.bf16.gmra.mxu3 %vm766_vm0, %v7138_v0 }
 0x18c   : > { %2291 = vmatpush.bf16.msrb.mxu0 %v6987_v63  ;;  %2337 = vmatpush.bf16.msrb.mxu2 %v7092_v15  ;;  %v5304_v63 = vor.u32 %v6140_v30, %v5301_v20  ;;  %v2147_v15 = vshll.u32 %v7101_v9, 16 }
 0x18e   : > { %2210 = vmatpush.bf16.msra.mxu1 %v5304_v63  ;;  %v2149_v36 = vrot.slane %v2147_v15, 1 }
 0x190   : > { %v2150_v42 = vor.u32 %v2149_v36, %v2145_v47 }
 0x192   : > { %v7230_v25 = vsel %vm1105_vm1, %v2150_v42, %v2153_v39 }
 0x196   : > { %5254 = vmatmul.msk.bf16.gmra.mxu0 %vm766_vm0, %v7205_v4  ;;  %5290 = vmatmul.msk.bf16.gmra.mxu2 %vm766_vm0, %v7207_v28 }
 0x19b   : > { %5255 = vmatmul.msk.bf16.vlgmr.msrb.gmra.mxu1 %vm766_vm0, %v7182_v3  ;;  %5291 = vmatmul.msk.bf16.vlgmr.msra.gmra.mxu3 %vm766_vm0, %v7185_v13 }
 0x19c   : > { %2309 = vmatpush.bf16.msrb.mxu1 %v7024_v50  ;;  %2355 = vmatpush.bf16.msra.mxu3 %v7124_v12  ;;  %v2155_v50 = vshrl.u32 %v7135_v6, 16  ;;  %v2422_v12 = vshrl.u32 %v7104_v1, 16 }
 0x19e   : > { %v2427_v56 = vor.u32 %v2426_v19, %v2422_v12 }
 0x1a0   : > { %2310 = vmatpush.bf16.msrb.mxu1 %v7049_v27  ;;  %2356 = vmatpush.bf16.msra.mxu3 %v5244_v59  ;;  %v7243_v27 = vor.u32 %v2155_v50, %v2153_v39 }
 0x1a6   : > { %5313 = vmatmul.msk.bf16.vlgmr.msra.gmra.mxu0 %vm766_vm0, %v7230_v25  ;;  %5317 = vmatmul.msk.bf16.vlgmr.msra.gmra.mxu2 %vm766_vm0, %v7104_v1 }
 0x1a7   : > { %2382 = vmatpush.bf16.msra.mxu0 %v7083_v38  ;;  %2447 = vmatpush.bf16.msra.mxu2 %v5308_v26 }
 0x1ab   : > { %5256 = vmatmul.msk.bf16.gmra.mxu1 %vm766_vm0, %v7205_v4  ;;  %5292 = vmatmul.msk.bf16.gmra.mxu3 %vm766_vm0, %v7207_v28 }
 0x1ac   : > { %2383 = vmatpush.bf16.msra.mxu0 %v7097_v8  ;;  %2448 = vmatpush.bf16.msra.mxu2 %v5300_v60 }
 0x1b6   : > { %5314 = vmatmul.msk.bf16.gmra.mxu0 %vm766_vm0, %v7243_v27  ;;  %5318 = vmatmul.msk.bf16.gmra.mxu2 %vm766_vm0, %v7138_v0 }
 0x1bb   : > { %5315 = vmatmul.msk.bf16.vlgmr.msra.gmra.mxu1 %vm766_vm0, %v7230_v25  ;;  %5319 = vmatmul.msk.bf16.vlgmr.msrb.gmra.mxu3 %vm766_vm0, %v7104_v1 }
 0x1bc   : > { %2401 = vmatpush.bf16.msra.mxu1 %v7130_v62  ;;  %2466 = vmatpush.bf16.msrb.mxu3 %v5312_v53  ;;  %v2428_v62 = vshll.u32 %v7138_v0, 16 }
 0x1be   : > { %v2430_v43 = vrot.slane %v2428_v62, 1 }
 0x1c0   : > { %2402 = vmatpush.bf16.msra.mxu1 %v7160_v40  ;;  %2467 = vmatpush.bf16.msrb.mxu3 %v5304_v63  ;;  %v2431_v34 = vsel %vm1105_vm1, %v2427_v56, %v2430_v43  ;;  %v1742_v63 = vld [vmem:[#allocation2 + $0xc] sm:$0xf] }
 0x1c3   : > { %v1572_v38 = vpop.f32.mrf.mxu0 }
 0x1c6   : > { %5321 = vmatmul.msk.bf16.vlgmr.msrb.gmra.mxu0 %vm766_vm0, %v7182_v3  ;;  %5325 = vmatmul.msk.bf16.vlgmr.msrb.gmra.mxu2 %vm766_vm0, %v7185_v13 }
 0x1c9   : > { %v1698_v8 = vpop.f32.mrf.mxu2 }
 0x1cb   : > { %5316 = vmatmul.msk.bf16.gmra.mxu1 %vm766_vm0, %v7243_v27  ;;  %5320 = vmatmul.msk.bf16.gmra.mxu3 %vm766_vm0, %v7138_v0  ;;  %v1574_v9 = vpop.f32.mrf.mxu0 }
 0x1d1   : > { %v1700_v29 = vpop.f32.mrf.mxu2 }
 0x1d3   : > { %v1577_v44 = vpop.f32.mrf.mxu0 }
 0x1d6   : > { %5322 = vmatmul.msk.bf16.gmra.mxu0 %vm766_vm0, %v7205_v4  ;;  %5326 = vmatmul.msk.bf16.gmra.mxu2 %vm766_vm0, %v7207_v28 }
 0x1d8   : > { %v1591_v31 = vpop.f32.mrf.mxu1 }
 0x1d9   : > { %v1703_v16 = vpop.f32.mrf.mxu2  ;;  %v1592_v46 = vadd.f32 %v1591_v31, %v1572_v38 }
 0x1db   : > { %5323 = vmatmul.msk.bf16.vlgmr.msrb.gmra.mxu1 %vm766_vm0, %v7182_v3  ;;  %5327 = vmatmul.msk.bf16.vlgmr.msra.gmra.mxu3 %vm766_vm0, %v7185_v13  ;;  %v1579_v32 = vpop.f32.mrf.mxu0  ;;  %v2434_v3 = vor.u32 %v2432_v2, %v2430_v43 }
 0x1de   : > { %v1717_v6 = vpop.f32.mrf.mxu3 }
 0x1df   : > { %v1718_v48 = vadd.f32 %v1717_v6, %v1698_v8 }
 0x1e0   : > { %v1593_v14 = vpop.f32.mrf.mxu1 }
 0x1e1   : > { %v1727_v61 = vmax.f32 %v1592_v46, %v1718_v48  ;;  %v1705_v35 = vpop.f32.mrf.mxu2  ;;  %v1594_v45 = vadd.f32 %v1593_v14, %v1574_v9 }
 0x1e3   : > { %v1731_v59 = vpack.c.bf16 %v1727_v61, %v1727_v61  ;;  %v1799_v1 = vpop.f32.mrf.mxu0 }
 0x1e4   : > { %v1833_v40 = vadd.f32 %v7277_v24, %v1799_v1 }
 0x1e5   : > { %1736 = vst.msk [vmem:[#allocation2] sm:$0xf] %vm1735_vm4, %v1731_v59 }
 0x1e6   : > { %v1719_v33 = vpop.f32.mrf.mxu3  ;;  %5329 = vmatmul.msk.bf16.vlgmr.msra.gmra.mxu0 %vm766_vm0, %v7230_v25  ;;  %5333 = vmatmul.msk.bf16.vlgmr.msra.gmra.mxu2 %vm766_vm0, %v2431_v34 }
 0x1e7   : > { %v1720_v55 = vadd.f32 %v1719_v33, %v1700_v29 }
 0x1e8   : > { %v1596_v58 = vpop.f32.mrf.mxu1 }
 0x1e9   : > { %v1728_v54 = vmax.f32 %v1594_v45, %v1720_v55  ;;  %v1894_v11 = vpop.f32.mrf.mxu2  ;;  %v1597_v60 = vadd.f32 %v1596_v58, %v1577_v44 }
 0x1ea   : > { %v1923_v57 = vadd.f32 %v1894_v11, %v1833_v40 }
 0x1eb   : > { %v1732_v37 = vpack.c.bf16 %v1728_v54, %v1728_v54  ;;  %5324 = vmatmul.msk.bf16.gmra.mxu1 %vm766_vm0, %v7205_v4  ;;  %5328 = vmatmul.msk.bf16.gmra.mxu3 %vm766_vm0, %v7207_v28  ;;  %v7289_v52 = vpop.f32.mrf.mxu0 }
 0x1ed   : > { %1737 = vst.msk [vmem:[#allocation2 + $0x4] sm:$0xf] %vm1735_vm4, %v1732_v37 }
 0x1ee   : > { %v1722_v26 = vpop.f32.mrf.mxu3 }
 0x1ef   : > { %v1723_v7 = vadd.f32 %v1722_v26, %v1703_v16 }
 0x1f0   : > { %v1598_v22 = vpop.f32.mrf.mxu1 }
 0x1f1   : > { %v1729_v18 = vmax.f32 %v1597_v60, %v1723_v7  ;;  %v7293_v51 = vpop.f32.mrf.mxu2  ;;  %v1599_v0 = vadd.f32 %v1598_v22, %v1579_v32 }
 0x1f3   : > { %v1733_v13 = vpack.c.bf16 %v1729_v18, %v1729_v18  ;;  %v1804_v5 = vpop.f32.mrf.mxu0 }
 0x1f4   : > { %v1837_v17 = vadd.f32 %v7277_v24, %v1804_v5  ;;  %v6151_v5 = vld [vmem:[%s8529_s4 + $0x38] sm:$0xff] }
 0x1f5   : > { %1738 = vst.msk [vmem:[#allocation2 + $0x8] sm:$0xf] %vm1735_vm4, %v1733_v13  ;;  %2600 = vmatpush.bf16.msrb.mxu0 %v6151_v5 }
 0x1f6   : > { %v1724_v53 = vpop.f32.mrf.mxu3  ;;  %5330 = vmatmul.msk.bf16.gmra.mxu0 %vm766_vm0, %v7243_v27  ;;  %5334 = vmatmul.msk.bf16.gmra.mxu2 %vm766_vm0, %v2434_v3 }
 0x1f7   : > { %v1725_v23 = vadd.f32 %v1724_v53, %v1705_v35 }
 0x1f8   : > { %v1818_v4 = vpop.f32.mrf.mxu1 }
 0x1f9   : > { %v1730_v28 = vmax.f32 %v1599_v0, %v1725_v23  ;;  %v1899_v30 = vpop.f32.mrf.mxu2  ;;  %v1834_v36 = vadd.f32 %v7300_v41, %v1818_v4  ;;  %v6150_v23 = vld [vmem:[%s8529_s4 + $0x30] sm:$0xff]  ;;  %v6160_v4 = vld [vmem:[%s8529_s4 + $0x84] sm:$0xff] }
 0x1fa   : > { %v1927_v15 = vadd.f32 %v1899_v30, %v1837_v17  ;;  %v6161_v17 = vld [vmem:[%s8529_s4 + $0x8c] sm:$0xff]  ;;  %2601 = vmatpush.bf16.msrb.mxu0 %v6150_v23 }
 0x1fb   : > { %v1734_v47 = vpack.c.bf16 %v1730_v28, %v1730_v28  ;;  %5331 = vmatmul.msk.bf16.vlgmr.msra.gmra.mxu1 %vm766_vm0, %v7230_v25  ;;  %5335 = vmatmul.msk.bf16.vlgmr.msrb.gmra.mxu3 %vm766_vm0, %v2431_v34  ;;  %v7311_v10 = vpop.f32.mrf.mxu0 }
 0x1fc   : > { %2725 = vmatpush.bf16.msrb.mxu2 %v6161_v17 }
 0x1fd   : > { %v1743_v42 = vsel %vm7303_vm6, %v1734_v47, %v1742_v63  ;;  %v6149_v63 = vld [vmem:[%s8529_s4 + $0x28] sm:$0xff] }
 0x1fe   : > { %1744 = vst [vmem:[#allocation2 + $0xc] sm:$0xf] %v1743_v42  ;;  %v1913_v39 = vpop.f32.mrf.mxu3  ;;  %2602 = vmatpush.bf16.msrb.mxu0 %v6149_v63  ;;  %v6148_v42 = vld [vmem:[%s8529_s4 + $0x20] sm:$0xff] }
 0x1ff   : > { %v1924_v50 = vadd.f32 %v1913_v39, %v1834_v36  ;;  %v6158_v39 = vld [vmem:[%s8529_s4 + $0x74] sm:$0xff] }
 0x200   : > { %v7315_v38 = vpop.f32.mrf.mxu1  ;;  %2726 = vmatpush.bf16.msrb.mxu2 %v6160_v4 }
 0x201   : > { %v7317_v8 = vpop.f32.mrf.mxu2 }
 0x202   : > { %2603 = vmatpush.bf16.msrb.mxu0 %v6148_v42 }
 0x203   : > { %v1999_v9 = vpop.f32.mrf.mxu0 }
 0x204   : > { %v2028_v29 = vadd.f32 %v1999_v9, %v1923_v57 }
 0x206   : > { %v7319_v44 = vpop.f32.mrf.mxu3 }
 0x208   : > { %v1823_v21 = vpop.f32.mrf.mxu1 }
 0x209   : > { %v2104_v25 = vpop.f32.mrf.mxu2  ;;  %v1838_v16 = vadd.f32 %v7300_v41, %v1823_v21  ;;  %v6147_v21 = vld [vmem:[%s8529_s4 + $0x18] sm:$0xff] }
 0x20a   : > { %v2133_v31 = vadd.f32 %v2104_v25, %v2028_v29  ;;  %v6157_v25 = vld [vmem:[%s8529_s4 + $0x6c] sm:$0xff]  ;;  %2604 = vmatpush.bf16.msrb.mxu0 %v6147_v21 }
 0x20b   : > { %5332 = vmatmul.msk.bf16.gmra.mxu1 %vm766_vm0, %v7243_v27  ;;  %5336 = vmatmul.msk.bf16.gmra.mxu3 %vm766_vm0, %v2434_v3  ;;  %v7325_v32 = vpop.f32.mrf.mxu0 }
 0x20e   : > { %v1918_v12 = vpop.f32.mrf.mxu3 }
 0x20f   : > { %v1928_v19 = vadd.f32 %v1918_v12, %v1838_v16  ;;  %v6146_v12 = vld [vmem:[%s8529_s4 + $0x10] sm:$0xff] }
 0x210   : > { %v7327_v62 = vpop.f32.mrf.mxu1  ;;  %2605 = vmatpush.bf16.msrb.mxu0 %v6146_v12 }
 0x211   : > { %v7329_v6 = vpop.f32.mrf.mxu2 }
 0x213   : > { %v2004_v46 = vpop.f32.mrf.mxu0 }
 0x214   : > { %v2032_v48 = vadd.f32 %v2004_v46, %v1927_v15  ;;  %v6159_v15 = vld [vmem:[%s8529_s4 + $0x7c] sm:$0xff] }
 0x215   : > { %2727 = vmatpush.bf16.msrb.mxu2 %v6159_v15 }
 0x216   : > { %v7331_v49 = vpop.f32.mrf.mxu3 }
 0x218   : > { %v2018_v56 = vpop.f32.mrf.mxu1 }
 0x219   : > { %v2029_v43 = vadd.f32 %v2018_v56, %v1924_v50  ;;  %v2109_v14 = vpop.f32.mrf.mxu2  ;;  %2728 = vmatpush.bf16.msrb.mxu2 %v6158_v39  ;;  %v6145_v56 = vld [vmem:[%s8529_s4 + $0x8] sm:$0xff] }
 0x21a   : > { %v2137_v61 = vadd.f32 %v2109_v14, %v2032_v48  ;;  %2606 = vmatpush.bf16.msrb.mxu0 %v6145_v56 }
 0x21b   : > { %v7333_v35 = vpop.f32.mrf.mxu0 }
 0x21d   : > { %2729 = vmatpush.bf16.msrb.mxu2 %v6157_v25 }
 0x21e   : > { %v2123_v27 = vpop.f32.mrf.mxu3 }
 0x21f   : > { %v2134_v59 = vadd.f32 %v2123_v27, %v2029_v43  ;;  %v6155_v43 = vld [vmem:[%s8529_s4 + $0x5c] sm:$0xff] }
 0x220   : > { %v7335_v1 = vpop.f32.mrf.mxu1  ;;  %v6144_v27 = vld [vmem:[%s8529_s4] sm:$0xff] }
 0x221   : > { %v7337_v34 = vpop.f32.mrf.mxu2  ;;  %2607 = vmatpush.bf16.msrb.mxu0 %v6144_v27  ;;  %v1835_v27 = vadd.f32 %v7277_v24, %v7289_v52  ;;  %v5468_v52 = vld [vmem:[%s8530_s5 + $0x30] sm:$0xf] }
 0x223   : > { %v2193_v40 = vpop.f32.mrf.mxu0 }
 0x224   : > { %v7339_v33 = vadd.f32 %v2193_v40, %v2133_v31 }
 0x226   : > { %v7341_v45 = vpop.f32.mrf.mxu3 }
 0x228   : > { %v2023_v55 = vpop.f32.mrf.mxu1 }
 0x229   : > { %v2033_v58 = vadd.f32 %v2023_v55, %v1928_v19  ;;  %v7343_v54 = vpop.f32.mrf.mxu2  ;;  %v6156_v19 = vld [vmem:[%s8529_s4 + $0x64] sm:$0xff] }
 0x22a   : > { %2730 = vmatpush.bf16.msrb.mxu2 %v6156_v19 }
 0x22b   : > { %v7345_v11 = vpop.f32.mrf.mxu0 }
 0x22e   : > { %v2128_v57 = vpop.f32.mrf.mxu3  ;;  %2731 = vmatpush.bf16.msrb.mxu2 %v6155_v43  ;;  %v5476_v43 = vld [vmem:[%s8530_s5 + $0x40] sm:$0xf] }
 0x22f   : > { %v2138_v37 = vadd.f32 %v2128_v57, %v2033_v58 }
 0x230   : > { %v7347_v26 = vpop.f32.mrf.mxu1 }
 0x231   : > { %v7349_v2 = vpop.f32.mrf.mxu2 }
 0x233   : > { %v2198_v60 = vpop.f32.mrf.mxu0 }
 0x234   : > { %v7351_v7 = vadd.f32 %v2198_v60, %v2137_v61  ;;  %v5399_v60 = vld [vmem:[%s8529_s4 + $0xa4] sm:$0xf] }
 0x235   : > { %v2700_v17 = vunpack.c.l.b16 %v5399_v60  ;;  %v6163_v60 = vld [vmem:[%s8529_s4 + $0x9c] sm:$0xff] }
 0x236   : > { %v7353_v22 = vpop.f32.mrf.mxu3 }
 0x237   : > { %v2711_v42 = vpack.c.b16 %v2700_v17, %v2700_v17 }
 0x238   : > { %v2212_v18 = vpop.f32.mrf.mxu1 }
 0x239   : > { %v7355_v3 = vadd.f32 %v2212_v18, %v2134_v59  ;;  %v7357_v13 = vpop.f32.mrf.mxu2  ;;  %v6154_v59 = vld [vmem:[%s8529_s4 + $0x54] sm:$0xff]  ;;  %v2723_v12 = vsel %vm1559_vm2, %v2711_v42, 0  ;;  %v1925_v42 = vadd.f32 %v7293_v51, %v1835_v27 }
 0x23a   : > { %2732 = vmatpush.bf16.msrb.mxu2 %v6154_v59  ;;  %v7448_v18 = vld [vmem:[%s8530_s5 + $0x50] sm:$0x33]  ;;  %2749 = vmatpush.bf16.msra.mxu3 %v2723_v12 }
 0x23b   : > { %v7365_v53 = vpop.f32.mrf.mxu0  ;;  %v2835_v23 = vunpack.c.l.b16 %v7448_v18 }
 0x23d   : > { %v2847_v39 = vpack.c.b16 %v2835_v23, %v2835_v23 }
 0x23e   : > { %v7367_v0 = vpop.f32.mrf.mxu3  ;;  %2750 = vmatpush.bf16.msra.mxu3 %v6163_v60 }
 0x23f   : > { %v7460_v19 = vsel %vm2866_vm7, %v2847_v39, 0  ;;  %v2278_v39 = vadd.f32 %v7349_v2, %v7277_v24  ;;  %v5460_v2 = vld [vmem:[%s8530_s5 + $0x20] sm:$0xf] }
 0x240   : > { %v7375_v28 = vpop.f32.mrf.mxu1  ;;  %2875 = vmatpush.bf16.msra.mxu0 %v7460_v19 }
 0x241   : > { %v7377_v30 = vpop.f32.mrf.mxu2 }
 0x243   : > { %v2293_v47 = vpop.f32.mrf.mxu0 }
 0x246   : > { %v7385_v36 = vpop.f32.mrf.mxu3 }
 0x248   : > { %v2217_v50 = vpop.f32.mrf.mxu1 }
 0x249   : > { %v7393_v9 = vadd.f32 %v2217_v50, %v2138_v37  ;;  %v2339_v29 = vpop.f32.mrf.mxu2  ;;  %v2527_v37 = vld [vmem:[%s8529_s4 + $0x50] sm:$0xf]  ;;  %v2276_v50 = vadd.f32 %v7343_v54, %v7277_v24  ;;  %v6173_v54 = vld [vmem:[%s8530_s5 + $0x44] sm:$0xf0] }
 0x24a   : > { %v2569_v5 = vunpack.c.l.b16 %v2527_v37 }
 0x24b   : > { %v7401_v31 = vpop.f32.mrf.mxu0  ;;  %v2322_v56 = vadd.f32 %v2293_v47, %v2276_v50  ;;  %v6153_v47 = vld [vmem:[%s8529_s4 + $0x48] sm:$0xff] }
 0x24c   : > { %v2580_v15 = vpack.c.b16 %v2569_v5, %v2569_v5  ;;  %v7479_v5 = vor.u32 %v6173_v54, %v5476_v43  ;;  %v2030_v43 = vadd.f32 %v7325_v32, %v1925_v42  ;;  %v2230_v54 = vmax.f32 %v7339_v33, 0.0  ;;  %v5452_v42 = vld [vmem:[%s8530_s5 + $0x10] sm:$0xf] }
 0x24d   : > { %v2368_v59 = vadd.f32 %v2339_v29, %v2322_v56  ;;  %v6171_v29 = vld [vmem:[%s8530_s5 + $0x34] sm:$0xf0]  ;;  %v2324_v51 = vadd.f32 %v7401_v31, %v2278_v39 }
 0x24e   : > { %v7403_v16 = vpop.f32.mrf.mxu3  ;;  %v2598_v25 = vsel %vm1559_vm2, %v2580_v15, 0  ;;  %2876 = vmatpush.bf16.msra.mxu0 %v7479_v5  ;;  %v7499_v12 = vor.u32 %v6171_v29, %v5468_v52 }
 0x24f   : > { %2624 = vmatpush.bf16.msrb.mxu1 %v2598_v25  ;;  %v6162_v25 = vld [vmem:[%s8529_s4 + $0x94] sm:$0xff] }
 0x250   : > { %v7411_v46 = vpop.f32.mrf.mxu1  ;;  %2751 = vmatpush.bf16.msra.mxu3 %v6162_v25 }
 0x251   : > { %v7413_v48 = vpop.f32.mrf.mxu2 }
 0x252   : > { %2877 = vmatpush.bf16.msra.mxu0 %v7499_v12  ;;  %v2370_v32 = vadd.f32 %v7413_v48, %v2324_v51  ;;  %v2280_v48 = vadd.f32 %v7357_v13, %v7277_v24  ;;  %v5444_v51 = vld [vmem:[%s8530_s5] sm:$0xf]  ;;  %v6165_v13 = vld [vmem:[%s8530_s5 + $0x4] sm:$0xf0] }
 0x253   : > { %v7421_v14 = vpop.f32.mrf.mxu0  ;;  %2625 = vmatpush.bf16.msrb.mxu1 %v6153_v47  ;;  %v2135_v47 = vadd.f32 %v7329_v6, %v2030_v43  ;;  %v6167_v6 = vld [vmem:[%s8530_s5 + $0x14] sm:$0xf0] }
 0x256   : > { %v7423_v61 = vpop.f32.mrf.mxu3 }
 0x258   : > { %v7431_v40 = vpop.f32.mrf.mxu1 }
 0x259   : > { %v7433_v55 = vpop.f32.mrf.mxu2 }
 0x25b   : > { %v7435_v58 = vpop.f32.mrf.mxu0 }
 0x25e   : > { %v7437_v57 = vpop.f32.mrf.mxu3 }
 0x260   : > { %v7451_v4 = vpop.f32.mrf.mxu1 }
 0x261   : > { %v7453_v63 = vpop.f32.mrf.mxu2 }
 0x263   : > { %v2385_v21 = vpop.f32.mrf.mxu0 }
 0x264   : > { %v2414_v17 = vadd.f32 %v2385_v21, %v2368_v59  ;;  %v6152_v21 = vld [vmem:[%s8529_s4 + $0x40] sm:$0xff]  ;;  %v6169_v59 = vld [vmem:[%s8530_s5 + $0x24] sm:$0xf0] }
 0x265   : > { %2626 = vmatpush.bf16.msrb.mxu1 %v6152_v21  ;;  %v7515_v31 = vor.u32 %v6169_v59, %v5460_v2  ;;  %v2836_v21 = vunpack.c.h.b16 %v7448_v18 }
 0x266   : > { %v7471_v37 = vpop.f32.mrf.mxu3 }
 0x267   : > { %2878 = vmatpush.bf16.msra.mxu0 %v7515_v31 }
 0x268   : > { %v7481_v23 = vpop.f32.mrf.mxu1 }
 0x269   : > { %v2450_v15 = vpop.f32.mrf.mxu2 }
 0x26a   : > { %v2479_v50 = vadd.f32 %v2450_v15, %v2414_v17  ;;  %v2224_v17 = vadd.f32 %v7345_v11, %v2135_v47 }
 0x26b   : > { %v2387_v56 = vpop.f32.mrf.mxu0 }
 0x26c   : > { %v2487_v27 = vmax.f32 %v2479_v50, 0.0  ;;  %v2416_v15 = vadd.f32 %v2387_v56, %v2370_v32  ;;  %v7529_v50 = vor.u32 %v6167_v6, %v5452_v42  ;;  %v2232_v25 = vmax.f32 %v2224_v17, 0.0  ;;  %v6172_v6 = vld [vmem:[%s8530_s5 + $0x44] sm:$0xf] }
 0x26d   : > { %v2326_v56 = vadd.f32 %v7421_v14, %v2280_v48  ;;  %v7545_v14 = vor.u32 %v6165_v13, %v5444_v51  ;;  %v2279_v13 = vadd.f32 %v7385_v36, %v7300_v41 }
 0x26e   : > { %v2495_v33 = vmax.f32 %v2230_v54, %v2487_v27  ;;  %v7513_v60 = vpop.f32.mrf.mxu3  ;;  %v1839_v54 = vadd.f32 %v7277_v24, %v7311_v10  ;;  %2879 = vmatpush.bf16.msra.mxu0 %v7529_v50  ;;  %v2848_v27 = vpack.c.b16 %v2836_v21, %v2836_v21  ;;  %v2277_v10 = vadd.f32 %v7367_v0, %v7300_v41  ;;  %v5478_v0 = vld [vmem:[%s8530_s5 + $0x48] sm:$0xf0] }
 0x26f   : > { %v2372_v18 = vadd.f32 %v7433_v55, %v2326_v56  ;;  %v2234_v21 = vmax.f32 %v7351_v7, 0.0 }
 0x270   : > { %v7518_v52 = vpop.f32.mrf.mxu1  ;;  %v7550_v47 = vsel %vm2866_vm7, %v2848_v27, 0  ;;  %v2323_v55 = vadd.f32 %v7431_v40, %v2277_v10  ;;  %v1836_v40 = vadd.f32 %v7300_v41, %v7315_v38  ;;  %v5470_v38 = vld [vmem:[%s8530_s5 + $0x38] sm:$0xf0] }
 0x271   : > { %v2452_v29 = vpop.f32.mrf.mxu2  ;;  %2894 = vmatpush.bf16.msra.mxu1 %v7550_v47 }
 0x272   : > { %v2481_v39 = vadd.f32 %v2452_v29, %v2416_v15  ;;  %v1929_v29 = vadd.f32 %v7317_v8, %v1839_v54  ;;  %2880 = vmatpush.bf16.msra.mxu0 %v7545_v14  ;;  %v7564_v8 = vor.u32 %v6172_v6, %v5478_v0  ;;  %v6170_v54 = vld [vmem:[%s8530_s5 + $0x34] sm:$0xf]  ;;  %v5586_v0 = vld [vmem:[%s8530_s5 + $0xf0] sm:$0xf] }
 0x273   : > { %v2390_v11 = vpop.f32.mrf.mxu0  ;;  %v7582_v51 = vor.u32 %v6170_v54, %v5470_v38 }
 0x274   : > { %v2489_v43 = vmax.f32 %v2481_v39, 0.0  ;;  %v2418_v17 = vadd.f32 %v2390_v11, %v2372_v18  ;;  %v2369_v39 = vadd.f32 %v7437_v57, %v2323_v55  ;;  %v2034_v11 = vadd.f32 %v7333_v35, %v1929_v29  ;;  %v6168_v18 = vld [vmem:[%s8530_s5 + $0x24] sm:$0xf]  ;;  %v5454_v29 = vld [vmem:[%s8530_s5 + $0x18] sm:$0xf0] }
 0x275   : > { %2895 = vmatpush.bf16.msra.mxu1 %v7564_v8  ;;  %v2231_v55 = vmax.f32 %v7355_v3, 0.0 }
 0x276   : > { %v2497_v2 = vmax.f32 %v2232_v25, %v2489_v43  ;;  %v7543_v59 = vpop.f32.mrf.mxu3  ;;  %v2139_v35 = vadd.f32 %v7337_v34, %v2034_v11  ;;  %v5462_v34 = vld [vmem:[%s8530_s5 + $0x28] sm:$0xf0] }
 0x277   : > { %v7601_v36 = vor.u32 %v6168_v18, %v5462_v34 }
 0x278   : > { %v2503_v32 = vpack.c.bf16 %v2497_v2, %v2495_v33  ;;  %v2404_v15 = vpop.f32.mrf.mxu1  ;;  %v2282_v33 = vadd.f32 %v7377_v30, %v7277_v24  ;;  %v1926_v24 = vadd.f32 %v7319_v44, %v1836_v40  ;;  %v7587_v44 = vld [vmem:[%s8530_s5 + $0x100] sm:$0x33]  ;;  %v2228_v10 = vadd.f32 %v7365_v53, %v2139_v35 }
 0x279   : > { %v2455_v42 = vpop.f32.mrf.mxu2  ;;  %v2415_v30 = vadd.f32 %v2404_v15, %v2369_v39  ;;  %2896 = vmatpush.bf16.msra.mxu1 %v7582_v51  ;;  %v6166_v15 = vld [vmem:[%s8530_s5 + $0x14] sm:$0xf] }
 0x27a   : > { %v2483_v48 = vadd.f32 %v2455_v42, %v2418_v17  ;;  %2608 = vmatmul.bf16.vlgmr.msrb.gmra.mxu0 %v2503_v32  ;;  %2733 = vmatmul.bf16.vlgmr.msrb.gmra.mxu2 %v2503_v32  ;;  %v2328_v25 = vadd.f32 %v7435_v58, %v2282_v33  ;;  %v2031_v2 = vadd.f32 %v7335_v1, %v1926_v24  ;;  %v6193_v33 = vld [vmem:[%s8530_s5 + $0xf4] sm:$0xf0] }
 0x27b   : > { %v2392_v43 = vpop.f32.mrf.mxu0  ;;  %v2325_v1 = vadd.f32 %v7451_v4, %v2279_v13  ;;  %v2236_v4 = vmax.f32 %v2228_v10, 0.0 }
 0x27c   : > { %v2491_v56 = vmax.f32 %v2483_v48, 0.0  ;;  %v2374_v7 = vadd.f32 %v7453_v63, %v2328_v25  ;;  %v3119_v63 = vunpack.c.l.b16 %v7587_v44  ;;  %v2136_v40 = vadd.f32 %v7341_v45, %v2031_v2 }
 0x27d   : > { %v2371_v39 = vadd.f32 %v7471_v37, %v2325_v1  ;;  %2897 = vmatpush.bf16.msra.mxu1 %v7601_v36  ;;  %v7624_v25 = vor.u32 %v6166_v15, %v5454_v29  ;;  %v2281_v37 = vadd.f32 %v7403_v16, %v7300_v41  ;;  %v1840_v2 = vadd.f32 %v7300_v41, %v7327_v62 }
 0x27e   : > { %v2499_v58 = vmax.f32 %v2234_v21, %v2491_v56  ;;  %v2469_v57 = vpop.f32.mrf.mxu3  ;;  %v2420_v32 = vadd.f32 %v2392_v43, %v2374_v7  ;;  %v3131_v6 = vpack.c.b16 %v3119_v63, %v3119_v63  ;;  %v7626_v56 = vor.u32 %v6193_v33, %v5586_v0 }
 0x27f   : > { %v2480_v27 = vadd.f32 %v2469_v57, %v2415_v30  ;;  %v2225_v24 = vadd.f32 %v7375_v28, %v2136_v40  ;;  %v2327_v57 = vadd.f32 %v7481_v23, %v2281_v37  ;;  %v6164_v28 = vld [vmem:[%s8530_s5 + $0x4] sm:$0xf]  ;;  %v6191_v23 = vld [vmem:[%s8530_s5 + $0xe4] sm:$0xf0]  ;;  %v1930_v15 = vadd.f32 %v7331_v49, %v1840_v2  ;;  %v6192_v37 = vld [vmem:[%s8530_s5 + $0xf4] sm:$0xf] }
 0x280   : > { %v2406_v17 = vpop.f32.mrf.mxu1  ;;  %v7620_v3 = vsel %vm2866_vm7, %v3131_v6, 0  ;;  %v2283_v62 = vadd.f32 %v7423_v61, %v7300_v41  ;;  %v3120_v49 = vunpack.c.h.b16 %v7587_v44  ;;  %v2235_v0 = vmax.f32 %v7393_v9, 0.0  ;;  %v6185_v44 = vld [vmem:[%s8530_s5 + $0xb4] sm:$0xf0]  ;;  %v6351_v2 = vld [vmem:[#allocation2 + $0x8] sm:$0x70] }
 0x281   : > { %v2488_v42 = vmax.f32 %v2480_v27, 0.0  ;;  %v2457_v53 = vpop.f32.mrf.mxu2  ;;  %3157 = vmatpush.bf16.msrb.mxu0 %v7620_v3  ;;  %v2417_v30 = vadd.f32 %v2406_v17, %v2371_v39  ;;  %2898 = vmatpush.bf16.msra.mxu1 %v7624_v25  ;;  %v2233_v7 = vmax.f32 %v2225_v24, 0.0  ;;  %v5446_v27 = vld [vmem:[%s8530_s5 + $0x8] sm:$0xf0]  ;;  %v2373_v18 = vadd.f32 %v7513_v60, %v2327_v57  ;;  %v5570_v17 = vld [vmem:[%s8530_s5 + $0xd0] sm:$0xf] }
 0x282   : > { %v2485_v48 = vadd.f32 %v2457_v53, %v2420_v32  ;;  %v7640_v16 = vor.u32 %v6164_v28, %v5446_v27  ;;  %v6189_v60 = vld [vmem:[%s8530_s5 + $0xd4] sm:$0xf0]  ;;  %v6187_v53 = vld [vmem:[%s8530_s5 + $0xc4] sm:$0xf0]  ;;  %v2035_v6 = vadd.f32 %v7347_v26, %v1930_v15  ;;  %v2329_v41 = vadd.f32 %v7518_v52, %v2283_v62  ;;  %v5554_v39 = vld [vmem:[%s8530_s5 + $0xb0] sm:$0xf] }
 0x283   : > { %v2496_v11 = vmax.f32 %v2231_v55, %v2488_v42  ;;  %v7662_v55 = vor.u32 %v6189_v60, %v5570_v17  ;;  %v5562_v42 = vld [vmem:[%s8530_s5 + $0xc0] sm:$0xf]  ;;  %v7695_v24 = vor.u32 %v6185_v44, %v5554_v39  ;;  %v5580_v57 = vld [vmem:[%s8530_s5 + $0xe8] sm:$0xf0]  ;;  %v5661_v28 = vld [vmem:[%s8530_s5 + $0x1b0] sm:$0x33] }
 0x284   : > { %v2493_v21 = vmax.f32 %v2485_v48, 0.0  ;;  %v7679_v33 = vor.u32 %v6187_v53, %v5562_v42  ;;  %v3132_v48 = vpack.c.b16 %v3120_v49, %v3120_v49  ;;  %v2140_v26 = vadd.f32 %v7353_v22, %v2035_v6  ;;  %v6188_v27 = vld [vmem:[%s8530_s5 + $0xd4] sm:$0xf]  ;;  %v5564_v60 = vld [vmem:[%s8530_s5 + $0xc8] sm:$0xf0] }
 0x285   : > { %3158 = vmatpush.bf16.msrb.mxu0 %v7626_v56  ;;  %2899 = vmatpush.bf16.msra.mxu1 %v7640_v16  ;;  %v2375_v9 = vadd.f32 %v7543_v59, %v2329_v41  ;;  %v5696_v15 = vld [vmem:[%s8530_s5 + $0x1a0] sm:$0xf]  ;;  %v6184_v49 = vld [vmem:[%s8530_s5 + $0xb4] sm:$0xf]  ;;  %v5556_v6 = vld [vmem:[%s8530_s5 + $0xb8] sm:$0xf0] }
 0x286   : > { %v2501_v45 = vmax.f32 %v2236_v4, %v2493_v21  ;;  %v2471_v43 = vpop.f32.mrf.mxu3  ;;  %v2229_v4 = vadd.f32 %v7411_v46, %v2140_v26  ;;  %v5588_v46 = vld [vmem:[%s8530_s5 + $0xf8] sm:$0xf0]  ;;  %v7771_v41 = vor.u32 %v6184_v49, %v5556_v6  ;;  %v6209_v39 = vld [vmem:[%s8530_s5 + $0x184] sm:$0xf0]  ;;  %v6206_v49 = vld [vmem:[%s8530_s5 + $0x174] sm:$0xf] }
 0x287   : > { %v2482_v54 = vadd.f32 %v2471_v43, %v2417_v30  ;;  %v7697_v43 = vld [vmem:[#allocation2] sm:$0xff]  }
 0x288   : > { %v2409_v38 = vpop.f32.mrf.mxu1  ;;  %v2505_v35 = vpack.c.bf16 %v2501_v45, %v2499_v58  ;;  %v5578_v58 = vld [vmem:[%s8530_s5 + $0xe0] sm:$0xf]  ;;  %v2237_v22 = vmax.f32 %v2229_v4, 0.0  ;;  %v3077_v26 = vshll.u32 %v7697_v43, 16  ;;  %v3395_v4 = vunpack.c.h.b16 %v5661_v28 }
 0x289   : > { %v2490_v13 = vmax.f32 %v2482_v54, 0.0  ;;  %v7649_v63 = vor.u32 %v6191_v23, %v5578_v58  ;;  %v2419_v32 = vadd.f32 %v2409_v38, %v2373_v18  ;;  %v7708_v54 = vor.u32 %v6192_v37, %v5588_v46  ;;  %v5572_v58 = vld [vmem:[%s8530_s5 + $0xd8] sm:$0xf0]  ;;  %v7730_v18 = vld [vmem:[#allocation2 + $0x8] sm:$0xff]  }
 0x28a   : > { %2613 = vmatmul.bf16.gmra.mxu0 %v2505_v35  ;;  %2738 = vmatmul.bf16.gmra.mxu2 %v2505_v35  ;;  %v3394_v23 = vunpack.c.l.b16 %v5661_v28  ;;  %v3079_v37 = vrot.slane %v3077_v26, 1 }
 0x28b   : > { %v2498_v34 = vmax.f32 %v2233_v7, %v2490_v13  ;;  %3159 = vmatpush.bf16.msrb.mxu0 %v7649_v63  ;;  %v6190_v7 = vld [vmem:[%s8530_s5 + $0xe4] sm:$0xf] }
 0x28c   : > { %v7717_v13 = vor.u32 %v6190_v7, %v5580_v57  ;;  %v3406_v17 = vpack.c.b16 %v3394_v23, %v3394_v23  ;;  %v6210_v23 = vld [vmem:[%s8530_s5 + $0x194] sm:$0xf] }
 0x28d   : > { %v2504_v10 = vpack.c.bf16 %v2498_v34, %v2496_v11  ;;  %v7690_v11 = vsel %vm2866_vm7, %v3132_v48, 0  ;;  %v6345_v34 = vld [vmem:[#allocation2 + $0x8] sm:$0xf]  }
 0x28e   : > { %v2474_v29 = vpop.f32.mrf.mxu3  ;;  %v7748_v62 = vsel %vm2866_vm7, %v3406_v17, 0  ;;  %v7756_v53 = vor.u32 %v6351_v2, %v6345_v34  ;;  %v5690_v34 = vld [vmem:[%s8530_s5 + $0x198] sm:$0xf0]  ;;  %v6208_v17 = vld [vmem:[%s8530_s5 + $0x184] sm:$0xf] }
 0x28f   : > { %v2484_v1 = vadd.f32 %v2474_v29, %v2419_v32  ;;  %5377 = vmatmul.msk.bf16.vlgmr.msrb.gmra.mxu1 %vm1552_vm3, %v2504_v10  ;;  %5440 = vmatmul.msk.bf16.vlgmr.msra.gmra.mxu3 %vm1552_vm3, %v2504_v10  ;;  %v7733_v10 = vor.u32 %v6188_v27, %v5572_v58  ;;  %v6186_v32 = vld [vmem:[%s8530_s5 + $0xc4] sm:$0xf]  ;;  %v6213_v29 = vld [vmem:[%s8530_s5 + $0x1a4] sm:$0xf0]  ;;  %v5698_v58 = vld [vmem:[%s8530_s5 + $0x1a8] sm:$0xf0]  ;;  %v7836_v2 = vor.u32 %v6210_v23, %v5690_v34 }
 0x290   : > { %3160 = vmatpush.bf16.msrb.mxu0 %v7662_v55  ;;  %v2411_v40 = vpop.f32.mrf.mxu1  ;;  %3176 = vmatpush.bf16.msrb.mxu1 %v7690_v11  ;;  %v7754_v42 = vor.u32 %v6213_v29, %v5696_v15  ;;  %v6212_v27 = vld [vmem:[%s8530_s5 + $0x1a4] sm:$0xf] }
 0x291   : > { %v2492_v61 = vmax.f32 %v2484_v1, 0.0  ;;  %v2421_v21 = vadd.f32 %v2411_v40, %v2375_v9  ;;  %v7752_v1 = vor.u32 %v6186_v32, %v5564_v60  ;;  %v5680_v40 = vld [vmem:[%s8530_s5 + $0x180] sm:$0xf]  ;;  %v5672_v9 = vld [vmem:[%s8530_s5 + $0x170] sm:$0xf] }
 0x292   : > { %v7786_v44 = vor.u32 %v6209_v39, %v5680_v40  ;;  %v5496_v32 = vld [vmem:[%s8530_s5 + $0xa8] sm:$0x33]  ;;  %v6183_v40 = vld [vmem:[%s8530_s5 + $0x9c] sm:$0xf0]  ;;  %v6291_v23 = vld [vmem:[#allocation2] sm:$0xf0] }
 0x293   : > { %v2500_v52 = vmax.f32 %v2235_v0, %v2492_v61  ;;  %v5688_v0 = vld [vmem:[%s8530_s5 + $0x190] sm:$0xf]  ;;  %v6211_v61 = vld [vmem:[%s8530_s5 + $0x194] sm:$0xf0]  ;;  %v5682_v60 = vld [vmem:[%s8530_s5 + $0x188] sm:$0xf0]  ;;  %v2981_v15 = vunpack.c.l.b16 %v5496_v32 }
 0x294   : > { %3161 = vmatpush.bf16.msrb.mxu0 %v7679_v33  ;;  %3177 = vmatpush.bf16.msrb.mxu1 %v7708_v54  ;;  %v7776_v48 = vor.u32 %v6211_v61, %v5688_v0  ;;  %v7850_v29 = vor.u32 %v6208_v17, %v5682_v60  ;;  %v5674_v0 = vld [vmem:[%s8530_s5 + $0x178] sm:$0xf0]  ;;  %v5531_v61 = vld [vmem:[%s8530_s5 + $0x98] sm:$0xf]  ;;  %v6292_v17 = vld [vmem:[#allocation2] sm:$0xe] }
 0x295   : > { %v2993_v6 = vpack.c.b16 %v2981_v15, %v2981_v15  ;;  %v7866_v26 = vor.u32 %v6206_v49, %v5674_v0  ;;  %v6293_v60 = vor.u32 %v6292_v17, %v6291_v23  ;;  %v2982_v15 = vunpack.c.h.b16 %v5496_v32  ;;  %v6175_v0 = vld [vmem:[%s8530_s5 + $0x5c] sm:$0xf0]  ;;  %v6182_v32 = vld [vmem:[%s8530_s5 + $0x9c] sm:$0xf]  ;;  %v5509_v17 = vld [vmem:[%s8530_s5 + $0x70] sm:$0xf0] }
 0x296   : > { %v2476_v30 = vpop.f32.mrf.mxu3  ;;  %v7904_v49 = vrot.slane %v7730_v18, 1 }
 0x297   : > { %v2486_v45 = vadd.f32 %v2476_v30, %v2421_v21  ;;  %v3081_v21 = vshll.u32 %v7756_v53, 16  ;;  %v3012_v39 = vsel %vm2866_vm7, %v2993_v6, 0  ;;  %v5499_v6 = vld [vmem:[%s8530_s5 + $0x58] sm:$0xf] }
 0x298   : > { %3162 = vmatpush.bf16.msrb.mxu0 %v7695_v24  ;;  %3178 = vmatpush.bf16.msrb.mxu1 %v7717_v13 }
 0x299   : > { %v2494_v59 = vmax.f32 %v2486_v45, 0.0  ;;  %v3407_v45 = vpack.c.b16 %v3395_v4, %v3395_v4  ;;  %3019 = vmatpush.bf16.msra.mxu2 %v3012_v39 }
 0x29a   : > { %5482 = vmatmul.msk.bf16.vlgmr.msra.gmra.mxu0 %vm2859_vm8, %v7697_v43 }
 0x29b   : > { %v2502_v38 = vmax.f32 %v2237_v22, %v2494_v59  ;;  %v5664_v22 = vld [vmem:[%s8530_s5 + $0x160] sm:$0xf]  ;;  %v6205_v59 = vld [vmem:[%s8530_s5 + $0x164] sm:$0xf0]  ;;  %v7808_v46 = vsel %vm2866_vm7, %v3407_v45, 0 }
 0x29c   : > { %3179 = vmatpush.bf16.msrb.mxu1 %v7733_v10  ;;  %3432 = vmatpush.bf16.msra.mxu0 %v7748_v62  ;;  %v7813_v7 = vor.u32 %v6205_v59, %v5664_v22  ;;  %v5666_v45 = vld [vmem:[%s8530_s5 + $0x168] sm:$0xf0]  ;;  %v5523_v22 = vld [vmem:[%s8530_s5 + $0x88] sm:$0xf]  ;;  %v6181_v59 = vld [vmem:[%s8530_s5 + $0x8c] sm:$0xf0] }
 0x29d   : > { %v2506_v35 = vpack.c.bf16 %v2502_v38, %v2500_v52  ;;  %v6207_v52 = vld [vmem:[%s8530_s5 + $0x174] sm:$0xf0]  ;;  %v3075_v38 = vshrl.u32 %v7697_v43, 16 }
 0x29e   : > { %v7799_v30 = vor.u32 %v6207_v52, %v5672_v9  ;;  %v5532_v9 = vor.u32 %v6183_v40, %v5531_v61  ;;  %v3085_v52 = vshrl.u32 %v7756_v53, 16  ;;  %v2994_v61 = vpack.c.b16 %v2982_v15, %v2982_v15 }
 0x29f   : > { %5378 = vmatmul.msk.bf16.gmra.mxu1 %vm1552_vm3, %v2506_v35  ;;  %5441 = vmatmul.msk.bf16.gmra.mxu3 %vm1552_vm3, %v2506_v35  ;;  %v3083_v35 = vrot.slane %v3081_v21, 1  ;;  %v3080_v57 = vor.u32 %v3079_v37, %v3075_v38  ;;  %v6204_v21 = vld [vmem:[%s8530_s5 + $0x164] sm:$0xf]  ;;  %v5524_v37 = vor.u32 %v6181_v59, %v5523_v22  ;;  %v5515_v38 = vld [vmem:[%s8530_s5 + $0x78] sm:$0xf]  ;;  %v5500_v40 = vor.u32 %v6175_v0, %v5499_v6 }
 0x2a0   : > { %3180 = vmatpush.bf16.msrb.mxu1 %v7752_v1  ;;  %3433 = vmatpush.bf16.msra.mxu0 %v7754_v42  ;;  %v5525_v22 = vld [vmem:[%s8530_s5 + $0x90] sm:$0xf0]  ;;  %v6203_v6 = vld [vmem:[%s8530_s5 + $0x14c] sm:$0xf0]  ;;  %vm4529_vm3 = vcmask 982016  }
 0x2a1   : > { %v7816_v28 = vsel %vm1105_vm1, %v3080_v57, %v3083_v35  ;;  %v7869_v4 = vor.u32 %v3085_v52, %v3083_v35  ;;  %3020 = vmatpush.bf16.msra.mxu2 %v5532_v9  ;;  %v6179_v35 = vld [vmem:[%s8530_s5 + $0x7c] sm:$0xf0]  ;;  %v5533_v52 = vld [vmem:[%s8530_s5 + $0xa0] sm:$0xf0] }
 0x2a2   : > { %v5516_v57 = vor.u32 %v6179_v35, %v5515_v38  ;;  %v6178_v38 = vld [vmem:[%s8530_s5 + $0x7c] sm:$0xf]  ;;  %v5517_v35 = vld [vmem:[%s8530_s5 + $0x80] sm:$0xf0] }
 0x2a4   : > { %3181 = vmatpush.bf16.msrb.mxu1 %v7771_v41  ;;  %3434 = vmatpush.bf16.msra.mxu0 %v7776_v48 }
 0x2a5   : > { %3021 = vmatpush.bf16.msra.mxu2 %v5524_v37 }
 0x2a8   : > { %3435 = vmatpush.bf16.msra.mxu0 %v7786_v44 }
 0x2a9   : > { %3022 = vmatpush.bf16.msra.mxu2 %v5516_v57 }
 0x2aa   : > { %5483 = vmatmul.msk.bf16.gmra.mxu0 %vm2859_vm8, %v7756_v53 }
 0x2ac   : > { %3436 = vmatpush.bf16.msra.mxu0 %v7799_v30 }
 0x2af   : > { %5484 = vmatmul.msk.bf16.vlgmr.msra.gmra.mxu1 %vm2859_vm8, %v7697_v43  ;;  %v7827_v43 = vor.u32 %v6212_v27, %v5698_v58  ;;  %v5507_v27 = vld [vmem:[%s8530_s5 + $0x68] sm:$0xf]  ;;  %v6177_v58 = vld [vmem:[%s8530_s5 + $0x6c] sm:$0xf0] }
 0x2b0   : > { %3451 = vmatpush.bf16.msra.mxu1 %v7808_v46  ;;  %3437 = vmatpush.bf16.msra.mxu0 %v7813_v7  ;;  %v5508_v34 = vor.u32 %v6177_v58, %v5507_v27  ;;  %v5520_v27 = vor.u32 %v6178_v38, %v5517_v35  ;;  %v6197_v38 = vld [vmem:[%s8530_s5 + $0x11c] sm:$0xf0] }
 0x2b2   : > { %3023 = vmatpush.bf16.msra.mxu2 %v5508_v34 }
 0x2b4   : > { %3452 = vmatpush.bf16.msra.mxu1 %v7827_v43 }
 0x2b6   : > { %3024 = vmatpush.bf16.msra.mxu2 %v5500_v40 }
 0x2b8   : > { %3453 = vmatpush.bf16.msra.mxu1 %v7836_v2 }
 0x2ba   : > { %5592 = vmatmul.msk.bf16.vlgmr.msrb.gmra.mxu0 %vm2859_vm8, %v7816_v28 }
 0x2bb   : > { %3532 = vmatpush.bf16.msrb.mxu0 %v3012_v39  ;;  %v3360_v39 = vrot.slane %v6293_v60, 1  ;;  %v5641_v60 = vld [vmem:[%s8530_s5 + $0x148] sm:$0xf] }
 0x2bc   : > { %3454 = vmatpush.bf16.msra.mxu1 %v7850_v29  ;;  %v5642_v0 = vor.u32 %v6203_v6, %v5641_v60  ;;  %v5643_v60 = vld [vmem:[%s8530_s5 + $0x150] sm:$0xf0]  ;;  %v6200_v6 = vld [vmem:[%s8530_s5 + $0x13c] sm:$0xf] }
 0x2bd   : > { %v7915_v18 = vsel %vm3359_vm9, %v3360_v39, %v7904_v49  ;;  %v5633_v39 = vld [vmem:[%s8530_s5 + $0x138] sm:$0xf] }
 0x2bf   : > { %5485 = vmatmul.msk.bf16.gmra.mxu1 %vm2859_vm8, %v7756_v53  ;;  %3533 = vmatpush.bf16.msrb.mxu0 %v5532_v9  ;;  %v7883_v53 = vor.u32 %v6204_v21, %v5666_v45  ;;  %v3015_v9 = vsel %vm2866_vm7, %v2994_v61, 0  ;;  %v5536_v21 = vor.u32 %v6182_v32, %v5533_v52  ;;  %v6180_v45 = vld [vmem:[%s8530_s5 + $0x8c] sm:$0xf]  ;;  %v6174_v61 = vld [vmem:[%s8530_s5 + $0x5c] sm:$0xf] }
 0x2c0   : > { %3455 = vmatpush.bf16.msra.mxu1 %v7866_v26  ;;  %3038 = vmatpush.bf16.msrb.mxu3 %v3015_v9  ;;  %v5528_v59 = vor.u32 %v6180_v45, %v5525_v22  ;;  %v6201_v32 = vld [vmem:[%s8530_s5 + $0x13c] sm:$0xf0]  ;;  %v6199_v45 = vld [vmem:[%s8530_s5 + $0x12c] sm:$0xf0] }
 0x2c1   : > { %v5634_v52 = vor.u32 %v6201_v32, %v5633_v39  ;;  %v5627_v39 = vld [vmem:[%s8530_s5 + $0x130] sm:$0xf0]  ;;  %v6196_v32 = vld [vmem:[%s8530_s5 + $0x11c] sm:$0xf] }
 0x2c3   : > { %3534 = vmatpush.bf16.msrb.mxu0 %v5524_v37  ;;  %v5606_v37 = vld [vmem:[%s8530_s5 + $0x158] sm:$0x33] }
 0x2c4   : > { %3456 = vmatpush.bf16.msra.mxu1 %v7883_v53  ;;  %3039 = vmatpush.bf16.msrb.mxu3 %v5536_v21 }
 0x2c7   : > { %3535 = vmatpush.bf16.msrb.mxu0 %v5516_v57  ;;  %v3257_v57 = vunpack.c.l.b16 %v5606_v37 }
 0x2c8   : > { %3040 = vmatpush.bf16.msrb.mxu3 %v5528_v59 }
 0x2c9   : > { %v3269_v58 = vpack.c.b16 %v3257_v57, %v3257_v57  ;;  %v3258_v57 = vunpack.c.h.b16 %v5606_v37  ;;  %v6202_v37 = vld [vmem:[%s8530_s5 + $0x14c] sm:$0xf] }
 0x2ca   : > { %5593 = vmatmul.msk.bf16.gmra.mxu0 %vm2859_vm8, %v7869_v4 }
 0x2cb   : > { %3536 = vmatpush.bf16.msrb.mxu0 %v5508_v34  ;;  %v3288_v23 = vsel %vm2866_vm7, %v3269_v58, 0  ;;  %v6176_v34 = vld [vmem:[%s8530_s5 + $0x6c] sm:$0xf]  ;;  %v6195_v58 = vld [vmem:[%s8530_s5 + $0x10c] sm:$0xf0] }
 0x2cc   : > { %3041 = vmatpush.bf16.msrb.mxu3 %v5520_v27  ;;  %3295 = vmatpush.bf16.msrb.mxu2 %v3288_v23  ;;  %v5512_v15 = vor.u32 %v6176_v34, %v5509_v17 }
 0x2cf   : > { %5594 = vmatmul.msk.bf16.vlgmr.msrb.gmra.mxu1 %vm2859_vm8, %v7816_v28  ;;  %3537 = vmatpush.bf16.msrb.mxu0 %v5500_v40  ;;  %v5501_v40 = vld [vmem:[%s8530_s5 + $0x60] sm:$0xf0] }
 0x2d0   : > { %3551 = vmatpush.bf16.msrb.mxu1 %v3015_v9  ;;  %3042 = vmatpush.bf16.msrb.mxu3 %v5512_v15  ;;  %v5504_v9 = vor.u32 %v6174_v61, %v5501_v40  ;;  %v6198_v40 = vld [vmem:[%s8530_s5 + $0x12c] sm:$0xf] }
 0x2d1   : > { %3296 = vmatpush.bf16.msrb.mxu2 %v5642_v0 }
 0x2d4   : > { %3552 = vmatpush.bf16.msrb.mxu1 %v5536_v21  ;;  %v5625_v21 = vld [vmem:[%s8530_s5 + $0x128] sm:$0xf]  ;;  %3043 = vmatpush.bf16.msrb.mxu3 %v5504_v9 }
 0x2d5   : > { %v5626_v22 = vor.u32 %v6199_v45, %v5625_v21  ;;  %3297 = vmatpush.bf16.msrb.mxu2 %v5634_v52  ;;  %v6194_v45 = vld [vmem:[%s8530_s5 + $0x10c] sm:$0xf] }
 0x2d8   : > { %3553 = vmatpush.bf16.msrb.mxu1 %v5528_v59  ;;  %v5617_v59 = vld [vmem:[%s8530_s5 + $0x118] sm:$0xf] }
 0x2d9   : > { %v5618_v35 = vor.u32 %v6197_v38, %v5617_v59  ;;  %3298 = vmatpush.bf16.msrb.mxu2 %v5626_v22 }
 0x2da   : > { %5702 = vmatmul.msk.bf16.vlgmr.msra.gmra.mxu0 %vm2859_vm8, %v7915_v18 }
 0x2db   : > { %3624 = vmatpush.bf16.msra.mxu0 %v3288_v23  ;;  %v3270_v23 = vpack.c.b16 %v3258_v57, %v3258_v57 }
 0x2dc   : > { %3554 = vmatpush.bf16.msrb.mxu1 %v5520_v27  ;;  %v5609_v27 = vld [vmem:[%s8530_s5 + $0x108] sm:$0xf] }
 0x2dd   : > { %v5610_v34 = vor.u32 %v6195_v58, %v5609_v27  ;;  %3299 = vmatpush.bf16.msrb.mxu2 %v5618_v35  ;;  %v3291_v17 = vsel %vm2866_vm7, %v3270_v23, 0 }
 0x2de   : > { %3314 = vmatpush.bf16.msra.mxu3 %v3291_v17 }
 0x2df   : > { %5595 = vmatmul.msk.bf16.gmra.mxu1 %vm2859_vm8, %v7869_v4  ;;  %3625 = vmatpush.bf16.msra.mxu0 %v5642_v0  ;;  %v5635_v0 = vld [vmem:[%s8530_s5 + $0x140] sm:$0xf0] }
 0x2e0   : > { %3555 = vmatpush.bf16.msrb.mxu1 %v5512_v15  ;;  %v5646_v15 = vor.u32 %v6202_v37, %v5643_v60  ;;  %v5638_v61 = vor.u32 %v6200_v6, %v5635_v0 }
 0x2e1   : > { %3300 = vmatpush.bf16.msrb.mxu2 %v5610_v34 }
 0x2e2   : > { %3315 = vmatpush.bf16.msra.mxu3 %v5646_v15 }
 0x2e3   : > { %3626 = vmatpush.bf16.msra.mxu0 %v5634_v52  ;;  %v5619_v52 = vld [vmem:[%s8530_s5 + $0x120] sm:$0xf0] }
 0x2e4   : > { %3556 = vmatpush.bf16.msrb.mxu1 %v5504_v9  ;;  %v5630_v9 = vor.u32 %v6198_v40, %v5627_v39  ;;  %v5622_v21 = vor.u32 %v6196_v32, %v5619_v52 }
 0x2e6   : > { %3316 = vmatpush.bf16.msra.mxu3 %v5638_v61 }
 0x2e7   : > { %3627 = vmatpush.bf16.msra.mxu0 %v5626_v22  ;;  %v5611_v22 = vld [vmem:[%s8530_s5 + $0x110] sm:$0xf0] }
 0x2e8   : > { %v5614_v59 = vor.u32 %v6194_v45, %v5611_v22 }
 0x2ea   : > { %5703 = vmatmul.msk.bf16.gmra.mxu0 %vm2859_vm8, %v7904_v49  ;;  %3317 = vmatpush.bf16.msra.mxu3 %v5630_v9 }
 0x2eb   : > { %3628 = vmatpush.bf16.msra.mxu0 %v5618_v35 }
 0x2ee   : > { %3318 = vmatpush.bf16.msra.mxu3 %v5622_v21 }
 0x2ef   : > { %5704 = vmatmul.msk.bf16.vlgmr.msra.gmra.mxu1 %vm2859_vm8, %v7915_v18  ;;  %3629 = vmatpush.bf16.msra.mxu0 %v5610_v34 }
 0x2f0   : > { %3643 = vmatpush.bf16.msra.mxu1 %v3291_v17 }
 0x2f2   : > { %3319 = vmatpush.bf16.msra.mxu3 %v5614_v59 }
 0x2f4   : > { %3644 = vmatpush.bf16.msra.mxu1 %v5646_v15 }
 0x2f7   : > { %v2609_v38 = vpop.f32.mrf.mxu0 }
 0x2f8   : > { %3645 = vmatpush.bf16.msra.mxu1 %v5638_v61 }
 0x2fa   : > { %5710 = vmatmul.msk.bf16.vlgmr.msrb.gmra.mxu0 %vm2859_vm8, %v7816_v28 }
 0x2fc   : > { %3646 = vmatpush.bf16.msra.mxu1 %v5630_v9 }
 0x2fd   : > { %v2734_v35 = vpop.f32.mrf.mxu2 }
 0x2ff   : > { %5705 = vmatmul.msk.bf16.gmra.mxu1 %vm2859_vm8, %v7904_v49  ;;  %v2611_v17 = vpop.f32.mrf.mxu0 }
 0x300   : > { %3647 = vmatpush.bf16.msra.mxu1 %v5622_v21 }
 0x304   : > { %3648 = vmatpush.bf16.msra.mxu1 %v5614_v59 }
 0x305   : > { %v2736_v60 = vpop.f32.mrf.mxu2 }
 0x307   : > { %v2614_v9 = vpop.f32.mrf.mxu0 }
 0x30a   : > { %5711 = vmatmul.msk.bf16.gmra.mxu0 %vm2859_vm8, %v7869_v4 }
 0x30c   : > { %v2628_v57 = vpop.f32.mrf.mxu1 }
 0x30d   : > { %v2629_v58 = vadd.f32 %v2628_v57, %v2609_v38  ;;  %v2739_v32 = vpop.f32.mrf.mxu2 }
 0x30f   : > { %5712 = vmatmul.msk.bf16.vlgmr.msrb.gmra.mxu1 %vm2859_vm8, %v7816_v28  ;;  %v2616_v57 = vpop.f32.mrf.mxu0 }
 0x312   : > { %v2753_v27 = vpop.f32.mrf.mxu3 }
 0x313   : > { %v2754_v23 = vadd.f32 %v2753_v27, %v2734_v35 }
 0x314   : > { %v2630_v34 = vpop.f32.mrf.mxu1 }
 0x315   : > { %v2763_v37 = vmax.f32 %v2629_v58, %v2754_v23  ;;  %v2631_v0 = vadd.f32 %v2630_v34, %v2611_v17  ;;  %v2741_v27 = vpop.f32.mrf.mxu2  ;;  %v2775_v17 = vld [vmem:[#allocation2 + $0x1c] sm:$0xf] }
 0x317   : > { %v2767_v15 = vpack.c.bf16 %v2763_v37, %v2763_v37 }
 0x319   : > { %2772 = vst.msk [vmem:[#allocation2 + $0x10] sm:$0xf] %vm1735_vm4, %v2767_v15 }
 0x31a   : > { %v2755_v6 = vpop.f32.mrf.mxu3  ;;  %5718 = vmatmul.msk.bf16.vlgmr.msra.gmra.mxu0 %vm2859_vm8, %v7915_v18 }
 0x31b   : > { %v2756_v61 = vadd.f32 %v2755_v6, %v2736_v60 }
 0x31c   : > { %v2633_v39 = vpop.f32.mrf.mxu1 }
 0x31d   : > { %v2764_v40 = vmax.f32 %v2631_v0, %v2756_v61  ;;  %v2634_v21 = vadd.f32 %v2633_v39, %v2614_v9 }
 0x31f   : > { %v2768_v28 = vpack.c.bf16 %v2764_v40, %v2764_v40  ;;  %5713 = vmatmul.msk.bf16.gmra.mxu1 %vm2859_vm8, %v7869_v4 }
 0x321   : > { %2773 = vst.msk [vmem:[#allocation2 + $0x14] sm:$0xf] %vm1735_vm4, %v2768_v28 }
 0x322   : > { %v2758_v52 = vpop.f32.mrf.mxu3 }
 0x323   : > { %v2759_v45 = vadd.f32 %v2758_v52, %v2739_v32 }
 0x324   : > { %v2635_v38 = vpop.f32.mrf.mxu1 }
 0x325   : > { %v2765_v22 = vmax.f32 %v2634_v21, %v2759_v45  ;;  %v2636_v4 = vadd.f32 %v2635_v38, %v2616_v57 }
 0x327   : > { %v2769_v59 = vpack.c.bf16 %v2765_v22, %v2765_v22 }
 0x328   : > { %v6284_v35 = vld [vmem:[#allocation2 + $0x10] sm:$0xff]  }
 0x329   : > { %2774 = vst.msk [vmem:[#allocation2 + $0x18] sm:$0xf] %vm1735_vm4, %v2769_v59  ;;  %5537 = vmatmul.msk.bf16.vlgmr.msra.gmra.mxu2 %vm2859_vm8, %v6284_v35  ;;  %5539 = vmatmul.msk.bf16.vlgmr.msrb.gmra.mxu3 %vm2859_vm8, %v6284_v35  ;;  %v3215_v20 = vshll.u32 %v6284_v35, 16  ;;  %vm4678_vm4 = vcmask 1041409  }
 0x32a   : > { %v2760_v58 = vpop.f32.mrf.mxu3  ;;  %5719 = vmatmul.msk.bf16.gmra.mxu0 %vm2859_vm8, %v7904_v49  ;;  %3486 = vmatpush.bf16.msra.mxu2 %v7460_v19 }
 0x32b   : > { %v2761_v23 = vadd.f32 %v2760_v58, %v2741_v27  ;;  %3505 = vmatpush.bf16.msrb.mxu3 %v7550_v47 }
 0x32d   : > { %v2766_v34 = vmax.f32 %v2636_v4, %v2761_v23 }
 0x32e   : > { %3487 = vmatpush.bf16.msra.mxu2 %v7479_v5 }
 0x32f   : > { %v2770_v37 = vpack.c.bf16 %v2766_v34, %v2766_v34  ;;  %5720 = vmatmul.msk.bf16.vlgmr.msra.gmra.mxu1 %vm2859_vm8, %v7915_v18  ;;  %3506 = vmatpush.bf16.msrb.mxu3 %v7564_v8 }
 0x330   : > { %v6349_v5 = vld [vmem:[#allocation2 + $0x18] sm:$0xf]  }
 0x331   : > { %v2776_v60 = vsel %vm7303_vm6, %v2770_v37, %v2775_v17  ;;  %vm4684_vm6 = vcmask 1043459  }
 0x332   : > { %2777 = vst [vmem:[#allocation2 + $0x1c] sm:$0xf] %v2776_v60  ;;  %3488 = vmatpush.bf16.msra.mxu2 %v7499_v12 }
 0x333   : > { %3507 = vmatpush.bf16.msrb.mxu3 %v7582_v51  ;;  %v3213_v51 = vshrl.u32 %v6284_v35, 16 }
 0x336   : > { %3489 = vmatpush.bf16.msra.mxu2 %v7515_v31  ;;  %v3217_v31 = vrot.slane %v3215_v20, 1 }
 0x337   : > { %3508 = vmatpush.bf16.msrb.mxu3 %v7601_v36 }
 0x339   : > { %v8051_v19 = vld [vmem:[#allocation2 + $0x18] sm:$0xff]  }
 0x33a   : > { %v6352_v47 = vld [vmem:[#allocation2 + $0x18] sm:$0x70]  ;;  %3490 = vmatpush.bf16.msra.mxu2 %v7529_v50  ;;  %v3218_v50 = vor.u32 %v3217_v31, %v3213_v51 }
 0x33b   : > { %3509 = vmatpush.bf16.msrb.mxu3 %v7624_v25  ;;  %v6350_v8 = vor.u32 %v6352_v47, %v6349_v5 }
 0x33d   : > { %5538 = vmatmul.msk.bf16.gmra.mxu2 %vm2859_vm8, %v6350_v8  ;;  %5540 = vmatmul.msk.bf16.gmra.mxu3 %vm2859_vm8, %v6350_v8  ;;  %v3219_v12 = vshll.u32 %v6350_v8, 16 }
 0x33e   : > { %3491 = vmatpush.bf16.msra.mxu2 %v7545_v14  ;;  %v3223_v14 = vshrl.u32 %v6350_v8, 16 }
 0x33f   : > { %5721 = vmatmul.msk.bf16.gmra.mxu1 %vm2859_vm8, %v7904_v49  ;;  %3510 = vmatpush.bf16.msrb.mxu3 %v7640_v16  ;;  %v3221_v36 = vrot.slane %v3219_v12, 1 }
 0x341   : > { %v3222_v25 = vsel %vm1105_vm1, %v3218_v50, %v3221_v36  ;;  %v3225_v16 = vor.u32 %v3223_v14, %v3221_v36 }
 0x34d   : > { %5647 = vmatmul.msk.bf16.vlgmr.msrb.gmra.mxu2 %vm2859_vm8, %v3222_v25  ;;  %5649 = vmatmul.msk.bf16.vlgmr.msra.gmra.mxu3 %vm2859_vm8, %v3222_v25 }
 0x34e   : > { %3578 = vmatpush.bf16.msrb.mxu2 %v7620_v3  ;;  %3597 = vmatpush.bf16.msra.mxu3 %v7690_v11  ;;  %v2901_v3 = vpop.f32.mrf.mxu1 }
 0x352   : > { %3579 = vmatpush.bf16.msrb.mxu2 %v7626_v56  ;;  %3598 = vmatpush.bf16.msra.mxu3 %v7708_v54  ;;  %v2778_v54 = vld [vmem:[%s8531_s6] sm:$0x3] }
 0x356   : > { %3580 = vmatpush.bf16.msrb.mxu2 %v7649_v63  ;;  %3599 = vmatpush.bf16.msra.mxu3 %v7717_v13  ;;  %v8094_v56 = vpop.f32.mrf.mxu1  ;;  %v2882_v63 = vpop.f32.mrf.mxu0 }
 0x35a   : > { %3581 = vmatpush.bf16.msrb.mxu2 %v7662_v55  ;;  %3600 = vmatpush.bf16.msra.mxu3 %v7733_v10  ;;  %v6294_v10 = vld [vmem:[#allocation2 + $0x10] sm:$0xf0] }
 0x35d   : > { %5648 = vmatmul.msk.bf16.gmra.mxu2 %vm2859_vm8, %v3225_v16  ;;  %5650 = vmatmul.msk.bf16.gmra.mxu3 %vm2859_vm8, %v3225_v16 }
 0x35e   : > { %3582 = vmatpush.bf16.msrb.mxu2 %v7679_v33  ;;  %3601 = vmatpush.bf16.msra.mxu3 %v7752_v1  ;;  %v2906_v55 = vpop.f32.mrf.mxu1  ;;  %v8098_v33 = vpop.f32.mrf.mxu0  ;;  %v6295_v1 = vld [vmem:[#allocation2 + $0x10] sm:$0xe] }
 0x362   : > { %3583 = vmatpush.bf16.msrb.mxu2 %v7695_v24  ;;  %3602 = vmatpush.bf16.msra.mxu3 %v7771_v41  ;;  %v8109_v41 = vperm.slane %v2778_v54, 1 }
 0x364   : > { %v2921_v39 = vadd.f32 %v8109_v41, %v2906_v55 }
 0x366   : > { %v2908_v11 = vpop.f32.mrf.mxu1  ;;  %v2887_v24 = vpop.f32.mrf.mxu0 }
 0x367   : > { %v2923_v31 = vadd.f32 %v8109_v41, %v2908_v11 }
 0x36d   : > { %5706 = vmatmul.msk.bf16.vlgmr.msra.gmra.mxu2 %vm2859_vm8, %v6284_v35  ;;  %5708 = vmatmul.msk.bf16.vlgmr.msrb.gmra.mxu3 %vm2859_vm8, %v6284_v35 }
 0x36e   : > { %3687 = vmatpush.bf16.msra.mxu2 %v7748_v62  ;;  %3706 = vmatpush.bf16.msrb.mxu3 %v7808_v46  ;;  %v3183_v13 = vpop.f32.mrf.mxu1  ;;  %v8105_v62 = vpop.f32.mrf.mxu0  ;;  %v2917_v46 = vadd.f32 %v8109_v41, %v2901_v3 }
 0x372   : > { %3688 = vmatpush.bf16.msra.mxu2 %v7754_v42  ;;  %3707 = vmatpush.bf16.msrb.mxu3 %v7827_v43  ;;  %v8107_v42 = vperm.slane %v2778_v54, 0 }
 0x374   : > { %v2920_v40 = vadd.f32 %v8107_v42, %v2887_v24 }
 0x376   : > { %3689 = vmatpush.bf16.msra.mxu2 %v7776_v48  ;;  %3708 = vmatpush.bf16.msrb.mxu3 %v7836_v2  ;;  %v6296_v48 = vor.u32 %v6295_v1, %v6294_v10  ;;  %v8115_v49 = vpop.f32.mrf.mxu1  ;;  %v3164_v18 = vpop.f32.mrf.mxu0 }
 0x37a   : > { %3690 = vmatpush.bf16.msra.mxu2 %v7786_v44  ;;  %3709 = vmatpush.bf16.msrb.mxu3 %v7850_v29  ;;  %v3677_v44 = vrot.slane %v8051_v19, 1 }
 0x37d   : > { %5707 = vmatmul.msk.bf16.gmra.mxu2 %vm2859_vm8, %v6350_v8  ;;  %5709 = vmatmul.msk.bf16.gmra.mxu3 %vm2859_vm8, %v6350_v8 }
 0x37e   : > { %3691 = vmatpush.bf16.msra.mxu2 %v7799_v30  ;;  %3710 = vmatpush.bf16.msrb.mxu3 %v7866_v26  ;;  %v2916_v30 = vadd.f32 %v8107_v42, %v2882_v63  ;;  %v3188_v15 = vpop.f32.mrf.mxu1  ;;  %v8123_v61 = vpop.f32.mrf.mxu0 }
 0x382   : > { %3692 = vmatpush.bf16.msra.mxu2 %v7813_v7  ;;  %3711 = vmatpush.bf16.msrb.mxu3 %v7883_v53  ;;  %v3676_v7 = vrot.slane %v6296_v48, 1 }
 0x384   : > { %v3678_v53 = vsel %vm3359_vm9, %v3676_v7, %v3677_v44 }
 0x386   : > { %v3190_v32 = vpop.f32.mrf.mxu1  ;;  %v3169_v45 = vpop.f32.mrf.mxu0 }
 0x38d   : > { %5714 = vmatmul.msk.bf16.vlgmr.msrb.gmra.mxu2 %vm2859_vm8, %v3222_v25  ;;  %5716 = vmatmul.msk.bf16.vlgmr.msra.gmra.mxu3 %vm2859_vm8, %v3222_v25 }
 0x38e   : > { %v8131_v38 = vpop.f32.mrf.mxu1  ;;  %v8133_v35 = vpop.f32.mrf.mxu0 }
 0x396   : > { %v8139_v17 = vpop.f32.mrf.mxu1  ;;  %v8141_v37 = vpop.f32.mrf.mxu0 }
 0x39d   : > { %5715 = vmatmul.msk.bf16.gmra.mxu2 %vm2859_vm8, %v3225_v16  ;;  %5717 = vmatmul.msk.bf16.gmra.mxu3 %vm2859_vm8, %v3225_v16 }
 0x39e   : > { %v8147_v5 = vpop.f32.mrf.mxu1  ;;  %v8150_v51 = vpop.f32.mrf.mxu0 }
 0x3a6   : > { %v3465_v55 = vpop.f32.mrf.mxu1  ;;  %v8158_v24 = vpop.f32.mrf.mxu0 }
 0x3ac   : > { %v3026_v43 = vpop.f32.mrf.mxu2  ;;  %v3045_v2 = vpop.f32.mrf.mxu3 }
 0x3ad   : > { %v3055_v29 = vadd.f32 %v3026_v43, %v2916_v30  ;;  %v3056_v26 = vadd.f32 %v3045_v2, %v2917_v46  ;;  %5722 = vmatmul.msk.bf16.vlgmr.msra.gmra.mxu2 %vm2859_vm8, %v3678_v53  ;;  %5724 = vmatmul.msk.bf16.vlgmr.msrb.gmra.mxu3 %vm2859_vm8, %v3678_v53  ;;  %v6221_v43 = vld [vmem:[%s8532_s7 + $0x38] sm:$0xff]  ;;  %v6231_v2 = vld [vmem:[%s8532_s7 + $0x88] sm:$0xff] }
 0x3ae   : > { %v8166_v10 = vpop.f32.mrf.mxu0  ;;  %v8174_v30 = vpop.f32.mrf.mxu1  ;;  %3837 = vmatpush.bf16.msrb.mxu0 %v6221_v43  ;;  %3956 = vmatpush.bf16.msrb.mxu2 %v6231_v2  ;;  %v6224_v43 = vld [vmem:[%s8532_s7 + $0x50] sm:$0xff] }
 0x3af   : > { %v3193_v57 = vadd.f32 %v3164_v18, %v3055_v29  ;;  %v3194_v27 = vadd.f32 %v3183_v13, %v3056_v26  ;;  %v6220_v29 = vld [vmem:[%s8532_s7 + $0x30] sm:$0xff]  ;;  %v6230_v26 = vld [vmem:[%s8532_s7 + $0x80] sm:$0xff] }
 0x3b0   : > { %v6232_v2 = vld [vmem:[%s8532_s7 + $0x90] sm:$0xff] }
 0x3b2   : > { %3838 = vmatpush.bf16.msrb.mxu0 %v6220_v29  ;;  %3957 = vmatpush.bf16.msrb.mxu2 %v6230_v26 }
 0x3b4   : > { %v8119_v6 = vpop.f32.mrf.mxu2  ;;  %v8121_v0 = vpop.f32.mrf.mxu3 }
 0x3bd   : > { %5723 = vmatmul.msk.bf16.gmra.mxu2 %vm2859_vm8, %v3677_v44  ;;  %5725 = vmatmul.msk.bf16.gmra.mxu3 %vm2859_vm8, %v3677_v44  ;;  %v8172_v44 = vpop.f32.mrf.mxu0 }
 0x3c0   : > { %v3031_v9 = vpop.f32.mrf.mxu2  ;;  %v3050_v28 = vpop.f32.mrf.mxu3 }
 0x3c1   : > { %v3059_v52 = vadd.f32 %v3031_v9, %v2920_v40  ;;  %v3060_v21 = vadd.f32 %v3050_v28, %v2921_v39  ;;  %v8198_v40 = vpop.f32.mrf.mxu1  ;;  %v6219_v39 = vld [vmem:[%s8532_s7 + $0x28] sm:$0xff]  ;;  %v6229_v9 = vld [vmem:[%s8532_s7 + $0x78] sm:$0xff]  ;;  %v6218_v28 = vld [vmem:[%s8532_s7 + $0x20] sm:$0xff] }
 0x3c2   : > { %3839 = vmatpush.bf16.msrb.mxu0 %v6219_v39  ;;  %3958 = vmatpush.bf16.msrb.mxu2 %v6229_v9 }
 0x3c3   : > { %v3197_v47 = vadd.f32 %v3169_v45, %v3059_v52  ;;  %v3198_v8 = vadd.f32 %v3188_v15, %v3060_v21  ;;  %v6217_v45 = vld [vmem:[%s8532_s7 + $0x18] sm:$0xff] }
 0x3c5   : > { %v8196_v15 = vpop.f32.mrf.mxu0 }
 0x3c6   : > { %3840 = vmatpush.bf16.msrb.mxu0 %v6218_v28 }
 0x3c8   : > { %v8129_v22 = vpop.f32.mrf.mxu2  ;;  %v3052_v59 = vpop.f32.mrf.mxu3 }
 0x3c9   : > { %v3062_v25 = vadd.f32 %v3052_v59, %v2923_v31  ;;  %v6227_v59 = vld [vmem:[%s8532_s7 + $0x68] sm:$0xff]  ;;  %v6225_v31 = vld [vmem:[%s8532_s7 + $0x58] sm:$0xff] }
 0x3ca   : > { %3841 = vmatpush.bf16.msrb.mxu0 %v6217_v45 }
 0x3cb   : > { %v3200_v14 = vadd.f32 %v3190_v32, %v3062_v25  ;;  %v6228_v32 = vld [vmem:[%s8532_s7 + $0x70] sm:$0xff]  ;;  %v6233_v25 = vld [vmem:[%s8532_s7 + $0x98] sm:$0xff] }
 0x3cc   : > { %3959 = vmatpush.bf16.msrb.mxu2 %v6228_v32  ;;  %3981 = vmatpush.bf16.msra.mxu3 %v6233_v25 }
 0x3d0   : > { %v3302_v58 = vpop.f32.mrf.mxu2  ;;  %v3321_v4 = vpop.f32.mrf.mxu3  ;;  %3960 = vmatpush.bf16.msrb.mxu2 %v6227_v59  ;;  %3982 = vmatpush.bf16.msra.mxu3 %v6232_v2 }
 0x3d1   : > { %v8135_v23 = vadd.f32 %v3302_v58, %v3193_v57  ;;  %v8137_v34 = vadd.f32 %v3321_v4, %v3194_v27  ;;  %v8218_v57 = vpop.f32.mrf.mxu0  ;;  %v8220_v27 = vpop.f32.mrf.mxu1  ;;  %v6216_v58 = vld [vmem:[%s8532_s7 + $0x10] sm:$0xff]  ;;  %v6226_v4 = vld [vmem:[%s8532_s7 + $0x60] sm:$0xff] }
 0x3d2   : > { %3842 = vmatpush.bf16.msrb.mxu0 %v6216_v58 }
 0x3d4   : > { %3961 = vmatpush.bf16.msrb.mxu2 %v6226_v4 }
 0x3d8   : > { %v8143_v60 = vpop.f32.mrf.mxu2  ;;  %v8145_v19 = vpop.f32.mrf.mxu3  ;;  %3962 = vmatpush.bf16.msrb.mxu2 %v6225_v31 }
 0x3dc   : > { %3963 = vmatpush.bf16.msrb.mxu2 %v6224_v43 }
 0x3e0   : > { %v3307_v20 = vpop.f32.mrf.mxu2  ;;  %v3326_v12 = vpop.f32.mrf.mxu3 }
 0x3e1   : > { %v8152_v36 = vadd.f32 %v3307_v20, %v3197_v47  ;;  %v8154_v50 = vadd.f32 %v3326_v12, %v3198_v8  ;;  %v6215_v20 = vld [vmem:[%s8532_s7 + $0x8] sm:$0xff] }
 0x3e2   : > { %v6223_v12 = vld [vmem:[%s8532_s7 + $0x48] sm:$0xff]  ;;  %3843 = vmatpush.bf16.msrb.mxu0 %v6215_v20  ;;  %v2918_v20 = vadd.f32 %v8107_v42, %v8098_v33  ;;  %v3469_v33 = vadd.f32 %v8131_v38, %v8137_v34 }
 0x3e3   : > { %3862 = vmatpush.bf16.msrb.mxu1 %v6223_v12  ;;  %v2919_v12 = vadd.f32 %v8109_v41, %v8094_v56 }
 0x3e5   : > { %v3058_v25 = vadd.f32 %v8121_v0, %v2919_v12 }
 0x3e8   : > { %v8156_v16 = vpop.f32.mrf.mxu2  ;;  %v3328_v3 = vpop.f32.mrf.mxu3 }
 0x3e9   : > { %v3338_v63 = vadd.f32 %v3328_v3, %v3200_v14  ;;  %v8240_v14 = vpop.f32.mrf.mxu0  ;;  %v8242_v3 = vpop.f32.mrf.mxu1 }
 0x3eb   : > { %v8160_v54 = vadd.f32 %v3465_v55, %v3338_v63  ;;  %v6214_v63 = vld [vmem:[%s8532_s7] sm:$0xff] }
 0x3ec   : > { %v6222_v55 = vld [vmem:[%s8532_s7 + $0x40] sm:$0xff]  ;;  %3844 = vmatpush.bf16.msrb.mxu0 %v6214_v63 }
 0x3ed   : > { %3863 = vmatpush.bf16.msrb.mxu1 %v6222_v55 }
 0x3f0   : > { %v8162_v13 = vpop.f32.mrf.mxu2  ;;  %v8164_v11 = vpop.f32.mrf.mxu3 }
 0x3f1   : > { %v3522_v39 = vadd.f32 %v8162_v13, %v8107_v42  ;;  %v3523_v9 = vadd.f32 %v8164_v11, %v8109_v41  ;;  %v3631_v28 = vpop.f32.mrf.mxu0  ;;  %v3650_v32 = vpop.f32.mrf.mxu1  ;;  %v3057_v11 = vadd.f32 %v8119_v6, %v2918_v20  ;;  %v3196_v6 = vadd.f32 %v8115_v49, %v3058_v25 }
 0x3f3   : > { %v3568_v58 = vadd.f32 %v8172_v44, %v3522_v39  ;;  %v3569_v4 = vadd.f32 %v8174_v30, %v3523_v9  ;;  %v3468_v30 = vadd.f32 %v8141_v37, %v8135_v23  ;;  %v3477_v37 = vmax.f32 %v3469_v33, 0.0 }
 0x3f4   : > { %v3334_v34 = vadd.f32 %v8145_v19, %v3196_v6 }
 0x3f5   : > { %v3476_v23 = vmax.f32 %v3468_v30, 0.0 }
 0x3f6   : > { %v3471_v12 = vadd.f32 %v8139_v17, %v3334_v34 }
 0x3f8   : > { %v8168_v1 = vpop.f32.mrf.mxu2  ;;  %v8170_v48 = vpop.f32.mrf.mxu3 }
 0x3f9   : > { %v3524_v63 = vadd.f32 %v8168_v1, %v8107_v42  ;;  %v3525_v44 = vadd.f32 %v8170_v48, %v8109_v41  ;;  %v3633_v39 = vpop.f32.mrf.mxu0  ;;  %v3652_v9 = vpop.f32.mrf.mxu1 }
 0x3fb   : > { %v3570_v43 = vadd.f32 %v8196_v15, %v3524_v63  ;;  %v3571_v1 = vadd.f32 %v8198_v40, %v3525_v44  ;;  %v3479_v63 = vmax.f32 %v3471_v12, 0.0  ;;  %v6236_v12 = vld [vmem:[%s8533_s8 + $0x10] sm:$0xff] }
 0x400   : > { %v8176_v46 = vpop.f32.mrf.mxu2  ;;  %v8178_v7 = vpop.f32.mrf.mxu3 }
 0x401   : > { %v3527_v15 = vadd.f32 %v8178_v7, %v8109_v41  ;;  %v3636_v17 = vpop.f32.mrf.mxu0 }
 0x408   : > { %v8192_v53 = vpop.f32.mrf.mxu2  ;;  %v8194_v18 = vpop.f32.mrf.mxu3 }
 0x410   : > { %v3585_v52 = vpop.f32.mrf.mxu2  ;;  %v3604_v21 = vpop.f32.mrf.mxu3 }
 0x411   : > { %v3614_v13 = vadd.f32 %v3585_v52, %v3568_v58  ;;  %v3615_v31 = vadd.f32 %v3604_v21, %v3569_v4  ;;  %v3195_v52 = vadd.f32 %v8123_v61, %v3057_v11  ;;  %v3526_v58 = vadd.f32 %v8176_v46, %v8107_v42 }
 0x412   : > { %v2922_v46 = vadd.f32 %v8107_v42, %v8105_v62  ;;  %v3472_v62 = vadd.f32 %v8158_v24, %v8152_v36 }
 0x413   : > { %v3660_v55 = vadd.f32 %v3631_v28, %v3614_v13  ;;  %v3661_v56 = vadd.f32 %v3650_v32, %v3615_v31  ;;  %v3333_v38 = vadd.f32 %v8143_v60, %v3195_v52 }
 0x414   : > { %v3480_v36 = vmax.f32 %v3472_v62, 0.0 }
 0x415   : > { %v3470_v20 = vadd.f32 %v8150_v51, %v3333_v38 }
 0x417   : > { %v3478_v7 = vmax.f32 %v3470_v20, 0.0 }
 0x418   : > { %v3587_v47 = vpop.f32.mrf.mxu2  ;;  %v3606_v8 = vpop.f32.mrf.mxu3 }
 0x419   : > { %v3616_v28 = vadd.f32 %v3587_v47, %v3570_v43  ;;  %v3617_v61 = vadd.f32 %v3606_v8, %v3571_v1  ;;  %v3572_v47 = vadd.f32 %v8218_v57, %v3526_v58  ;;  %v3573_v8 = vadd.f32 %v8220_v27, %v3527_v15 }
 0x41a   : > { %v3528_v57 = vadd.f32 %v8192_v53, %v8107_v42  ;;  %v3529_v27 = vadd.f32 %v8194_v18, %v8109_v41  ;;  %v3483_v58 = vmax.f32 %v8160_v54, 0.0  ;;  %v6237_v54 = vld [vmem:[%s8533_s8 + $0x18] sm:$0xff] }
 0x41b   : > { %v3662_v13 = vadd.f32 %v3633_v39, %v3616_v28  ;;  %v3663_v60 = vadd.f32 %v3652_v9, %v3617_v61  ;;  %v3638_v9 = vpop.f32.mrf.mxu0 }
 0x41c   : > { %v3574_v1 = vadd.f32 %v8240_v14, %v3528_v57  ;;  %v3575_v41 = vadd.f32 %v8242_v3, %v3529_v27  ;;  %v6258_v57 = vld [vmem:[%s8533_s8 + $0xc0] sm:$0xff] }
 0x420   : > { %v3590_v29 = vpop.f32.mrf.mxu2  ;;  %v3609_v26 = vpop.f32.mrf.mxu3 }
 0x421   : > { %v3618_v44 = vadd.f32 %v3590_v29, %v3572_v47  ;;  %v3619_v30 = vadd.f32 %v3609_v26, %v3573_v8  ;;  %v3473_v29 = vadd.f32 %v8147_v5, %v8154_v50  ;;  %v6248_v47 = vld [vmem:[%s8533_s8 + $0x70] sm:$0xff]  ;;  %v6243_v8 = vld [vmem:[%s8533_s8 + $0x48] sm:$0xff] }
 0x422   : > { %4244 = vmatpush.bf16.msra.mxu2 %v6248_v47  ;;  %4163 = vmatpush.bf16.msra.mxu1 %v6243_v8 }
 0x423   : > { %v3481_v24 = vmax.f32 %v3473_v29, 0.0  ;;  %v6240_v29 = vld [vmem:[%s8533_s8 + $0x30] sm:$0xff] }
 0x428   : > { %v8260_v45 = vpop.f32.mrf.mxu2  ;;  %v8262_v59 = vpop.f32.mrf.mxu3 }
 0x429   : > { %v3621_v50 = vadd.f32 %v8262_v59, %v3575_v41 }
 0x430   : > { %v3694_v21 = vpop.f32.mrf.mxu2  ;;  %v3713_v0 = vpop.f32.mrf.mxu3 }
 0x431   : > { %v3723_v2 = vadd.f32 %v3694_v21, %v3660_v55  ;;  %v3724_v48 = vadd.f32 %v3713_v0, %v3661_v56  ;;  %v3655_v55 = vpop.f32.mrf.mxu1  ;;  %v3061_v56 = vadd.f32 %v8129_v22, %v2922_v46  ;;  %v3664_v0 = vadd.f32 %v3636_v17, %v3618_v44  ;;  %v6246_v44 = vld [vmem:[%s8533_s8 + $0x60] sm:$0xff] }
 0x432   : > { %v3665_v43 = vadd.f32 %v3655_v55, %v3619_v30  ;;  %v6252_v30 = vld [vmem:[%s8533_s8 + $0x90] sm:$0xff] }
 0x433   : > { %v3731_v32 = vmax.f32 %v3723_v2, 0.0  ;;  %v3732_v49 = vmax.f32 %v3724_v48, 0.0  ;;  %v3199_v22 = vadd.f32 %v8133_v35, %v3061_v56  ;;  %v3620_v35 = vadd.f32 %v8260_v45, %v3574_v1  ;;  %v6241_v56 = vld [vmem:[%s8533_s8 + $0x38] sm:$0xff]  ;;  %v6250_v1 = vld [vmem:[%s8533_s8 + $0x80] sm:$0xff] }
 0x435   : > { %v3739_v40 = vmax.f32 %v3476_v23, %v3731_v32  ;;  %v3740_v4 = vmax.f32 %v3477_v37, %v3732_v49  ;;  %v3337_v5 = vadd.f32 %v8156_v16, %v3199_v22  ;;  %v3666_v38 = vadd.f32 %v3638_v9, %v3620_v35  ;;  %v6244_v22 = vld [vmem:[%s8533_s8 + $0x50] sm:$0xff] }
 0x437   : > { %v3474_v37 = vadd.f32 %v8166_v10, %v3337_v5  ;;  %v6238_v10 = vld [vmem:[%s8533_s8 + $0x20] sm:$0xff]  ;;  %v6256_v5 = vld [vmem:[%s8533_s8 + $0xb0] sm:$0xff] }
 0x438   : > { %v3696_v31 = vpop.f32.mrf.mxu2  ;;  %v3715_v19 = vpop.f32.mrf.mxu3  ;;  %4077 = vmatpush.bf16.msra.mxu0 %v6238_v10 }
 0x439   : > { %v3725_v11 = vadd.f32 %v3696_v31, %v3662_v13  ;;  %v3726_v25 = vadd.f32 %v3715_v19, %v3663_v60  ;;  %v3657_v23 = vpop.f32.mrf.mxu1  ;;  %v3482_v49 = vmax.f32 %v3474_v37, 0.0  ;;  %v6235_v13 = vld [vmem:[%s8533_s8 + $0x8] sm:$0xff]  ;;  %v6234_v60 = vld [vmem:[%s8533_s8] sm:$0xff] }
 0x43a   : > { %v3667_v34 = vadd.f32 %v3657_v23, %v3621_v50  ;;  %v6254_v23 = vld [vmem:[%s8533_s8 + $0xa0] sm:$0xff] }
 0x43b   : > { %v3733_v51 = vmax.f32 %v3725_v11, 0.0  ;;  %v3734_v33 = vmax.f32 %v3726_v25, 0.0  ;;  %v6247_v11 = vld [vmem:[%s8533_s8 + $0x68] sm:$0xff]  ;;  %v6253_v25 = vld [vmem:[%s8533_s8 + $0x98] sm:$0xff] }
 0x43c   : > { %4078 = vmatpush.bf16.msra.mxu0 %v6237_v54  ;;  %4245 = vmatpush.bf16.msra.mxu2 %v6247_v11 }
 0x43d   : > { %v3741_v52 = vmax.f32 %v3478_v7, %v3733_v51  ;;  %v3742_v6 = vmax.f32 %v3479_v63, %v3734_v33  ;;  %4332 = vmatpush.bf16.msrb.mxu3 %v6253_v25  ;;  %v6242_v63 = vld [vmem:[%s8533_s8 + $0x40] sm:$0xff] }
 0x43e   : > { %4164 = vmatpush.bf16.msra.mxu1 %v6242_v63 }
 0x43f   : > { %v3747_v26 = vpack.c.bf16 %v3741_v52, %v3739_v40  ;;  %v3748_v21 = vpack.c.bf16 %v3742_v6, %v3740_v4  ;;  %v6245_v52 = vld [vmem:[%s8533_s8 + $0x58] sm:$0xff]  ;;  %v6251_v6 = vld [vmem:[%s8533_s8 + $0x88] sm:$0xff] }
 0x440   : > { %v3699_v42 = vpop.f32.mrf.mxu2  ;;  %v3718_v53 = vpop.f32.mrf.mxu3  ;;  %4079 = vmatpush.bf16.msra.mxu0 %v6236_v12  ;;  %4246 = vmatpush.bf16.msra.mxu2 %v6246_v44 }
 0x441   : > { %v3727_v18 = vadd.f32 %v3699_v42, %v3664_v0  ;;  %v3728_v2 = vadd.f32 %v3718_v53, %v3665_v43  ;;  %3845 = vmatmul.bf16.vlgmr.msrb.gmra.mxu0 %v3747_v26  ;;  %5766 = vmatmul.msk.bf16.vlgmr.msrb.gmra.mxu1 %vm766_vm0, %v3748_v21  ;;  %v6257_v53 = vld [vmem:[%s8533_s8 + $0xb8] sm:$0xff] }
 0x442   : > { %3964 = vmatmul.bf16.vlgmr.msrb.gmra.mxu2 %v3747_v26  ;;  %5828 = vmatmul.msk.bf16.vlgmr.msra.gmra.mxu3 %vm766_vm0, %v3748_v21 }
 0x443   : > { %v3735_v14 = vmax.f32 %v3727_v18, 0.0  ;;  %v3736_v48 = vmax.f32 %v3728_v2, 0.0  ;;  %4333 = vmatpush.bf16.msrb.mxu3 %v6252_v30  ;;  %4165 = vmatpush.bf16.msra.mxu1 %v6241_v56  ;;  %v6239_v2 = vld [vmem:[%s8533_s8 + $0x28] sm:$0xff] }
 0x444   : > { %4080 = vmatpush.bf16.msra.mxu0 %v6235_v13  ;;  %4247 = vmatpush.bf16.msra.mxu2 %v6245_v52 }
 0x445   : > { %v3743_v39 = vmax.f32 %v3480_v36, %v3735_v14  ;;  %v3744_v3 = vmax.f32 %v3481_v24, %v3736_v48  ;;  %v6249_v24 = vld [vmem:[%s8533_s8 + $0x78] sm:$0xff] }
 0x447   : > { %4334 = vmatpush.bf16.msrb.mxu3 %v6251_v6  ;;  %4166 = vmatpush.bf16.msra.mxu1 %v6240_v29 }
 0x448   : > { %v3701_v28 = vpop.f32.mrf.mxu2  ;;  %v3720_v61 = vpop.f32.mrf.mxu3  ;;  %4081 = vmatpush.bf16.msra.mxu0 %v6234_v60  ;;  %4248 = vmatpush.bf16.msra.mxu2 %v6244_v22 }
 0x449   : > { %v3729_v16 = vadd.f32 %v3701_v28, %v3666_v38  ;;  %v3730_v32 = vadd.f32 %v3720_v61, %v3667_v34 }
 0x44b   : > { %v3737_v45 = vmax.f32 %v3729_v16, 0.0  ;;  %v3738_v15 = vmax.f32 %v3730_v32, 0.0  ;;  %4335 = vmatpush.bf16.msrb.mxu3 %v6250_v1  ;;  %4167 = vmatpush.bf16.msra.mxu1 %v6239_v2 }
 0x44c   : > { %4414 = vmatpush.bf16.msrb.mxu0 %v6258_v57 }
 0x44d   : > { %v3745_v59 = vmax.f32 %v3482_v49, %v3737_v45  ;;  %v3746_v40 = vmax.f32 %v3483_v58, %v3738_v15  ;;  %v4009_v58 = vld [vmem:[#allocation3 + $0xc] sm:$0x7] }
 0x44f   : > { %v3750_v4 = vpack.c.bf16 %v3746_v40, %v3744_v3  ;;  %v3749_v20 = vpack.c.bf16 %v3745_v59, %v3743_v39  ;;  %4336 = vmatpush.bf16.msrb.mxu3 %v6249_v24  ;;  %v6255_v3 = vld [vmem:[%s8533_s8 + $0xa8] sm:$0xff] }
 0x450   : > { %4415 = vmatpush.bf16.msrb.mxu0 %v6257_v53 }
 0x451   : > { %3850 = vmatmul.bf16.gmra.mxu0 %v3749_v20  ;;  %5767 = vmatmul.msk.bf16.gmra.mxu1 %vm766_vm0, %v3750_v4 }
 0x452   : > { %3969 = vmatmul.bf16.gmra.mxu2 %v3749_v20  ;;  %5829 = vmatmul.msk.bf16.gmra.mxu3 %vm766_vm0, %v3750_v4  ;;  %vm4371_vm0 = vcmask 1045504  }
 0x454   : > { %4416 = vmatpush.bf16.msrb.mxu0 %v6256_v5 }
 0x458   : > { %4417 = vmatpush.bf16.msrb.mxu0 %v6255_v3 }
 0x45c   : > { %4418 = vmatpush.bf16.msrb.mxu0 %v6254_v23 }
 0x4be   : > { %v3846_v31 = vpop.f32.mrf.mxu0  ;;  %v3865_v19 = vpop.f32.mrf.mxu1 }
 0x4bf   : > { %v3866_v51 = vadd.f32 %v3865_v19, %v3846_v31 }
 0x4c5   : > { %v3965_v46 = vpop.f32.mrf.mxu2  ;;  %v3984_v7 = vpop.f32.mrf.mxu3 }
 0x4c6   : > { %v3985_v33 = vadd.f32 %v3984_v7, %v3965_v46  ;;  %v3848_v17 = vpop.f32.mrf.mxu0  ;;  %v3867_v55 = vpop.f32.mrf.mxu1 }
 0x4c7   : > { %v3868_v0 = vadd.f32 %v3867_v55, %v3848_v17 }
 0x4c8   : > { %v3994_v27 = vmax.f32 %v3866_v51, %v3985_v33 }
 0x4ca   : > { %v3998_v62 = vpack.c.bf16 %v3994_v27, %v3994_v27 }
 0x4cc   : > { %4003 = vst.msk [vmem:[#allocation3] sm:$0xf] %vm4002_vm10, %v3998_v62 }
 0x4cd   : > { %v3967_v26 = vpop.f32.mrf.mxu2  ;;  %v3986_v21 = vpop.f32.mrf.mxu3 }
 0x4ce   : > { %v3987_v43 = vadd.f32 %v3986_v21, %v3967_v26  ;;  %v3851_v41 = vpop.f32.mrf.mxu0  ;;  %v3870_v18 = vpop.f32.mrf.mxu1 }
 0x4cf   : > { %v3871_v14 = vadd.f32 %v3870_v18, %v3851_v41 }
 0x4d0   : > { %v3995_v42 = vmax.f32 %v3868_v0, %v3987_v43 }
 0x4d2   : > { %v3999_v36 = vpack.c.bf16 %v3995_v42, %v3995_v42 }
 0x4d3   : > { %v4183_v15 = vld [vmem:[#allocation3] sm:$0xe] }
 0x4d4   : > { %4004 = vst.msk [vmem:[#allocation3 + $0x4] sm:$0xf] %vm4002_vm10, %v3999_v36  ;;  %v4198_v4 = vunpack.c.l.b16 %v4183_v15  ;;  %v4352_v43 = vld [vmem:[#allocation3] sm:$0xc] }
 0x4d5   : > { %v3970_v35 = vpop.f32.mrf.mxu2  ;;  %v3989_v50 = vpop.f32.mrf.mxu3  ;;  %v4367_v1 = vunpack.c.l.b16 %v4352_v43 }
 0x4d6   : > { %v3990_v48 = vadd.f32 %v3989_v50, %v3970_v35  ;;  %v3853_v37 = vpop.f32.mrf.mxu0  ;;  %v3872_v38 = vpop.f32.mrf.mxu1 }
 0x4d7   : > { %v3873_v16 = vadd.f32 %v3872_v38, %v3853_v37 }
 0x4d8   : > { %v3996_v39 = vmax.f32 %v3871_v14, %v3990_v48 }
 0x4da   : > { %v4000_v9 = vpack.c.bf16 %v3996_v39, %v3996_v39 }
 0x4db   : > { %v6288_v34 = vld [vmem:[#allocation3] sm:$0xff]  }
 0x4dc   : > { %4005 = vst.msk [vmem:[#allocation3 + $0x8] sm:$0xf] %vm4002_vm10, %v4000_v9  ;;  %5850 = vmatmul.msk.bf16.vlgmr.msra.gmra.mxu0 %vm4067_vm11, %v6288_v34  ;;  %v6290_v59 = vunpack.c.h.b16 %v6288_v34  ;;  %v4113_v10 = vshll.u32 %v6288_v34, 16  ;;  %v4111_v7 = vshrl.u32 %v6288_v34, 16 }
 0x4dd   : > { %v3972_v28 = vpop.f32.mrf.mxu2  ;;  %v3991_v61 = vpop.f32.mrf.mxu3 }
 0x4de   : > { %v3992_v32 = vadd.f32 %v3991_v61, %v3972_v28  ;;  %v4200_v20 = vpack.c.b16 %v6290_v59, %v4198_v4  ;;  %v4115_v11 = vrot.slane %v4113_v10, 1  ;;  %v4369_v53 = vpack.c.b16 %v6290_v59, %v4367_v1  ;;  %v4563_v61 = vld [vmem:[%s8538_s13 + $0x38] sm:$0xf]  ;;  %v6272_v10 = vld [vmem:[%s8538_s13 + $0x30] sm:$0xff] }
 0x4e0   : > { %v3997_v49 = vmax.f32 %v3873_v16, %v3992_v32  ;;  %v4277_v60 = vshrl.u32 %v4200_v20, 16  ;;  %v4280_v31 = vshll.u32 %v4200_v20, 16  ;;  %v4202_v63 = vrot.slane %v4200_v20, 1 }
 0x4e1   : > { %v4116_v57 = vor.u32 %v4115_v11, %v4111_v7  ;;  %v4372_v18 = vrot.slane %v4369_v53, 2  ;;  %v4597_v32 = vunpack.c.l.b16 %v4563_v61  ;;  %v4664_v61 = vld [vmem:[%s8540_s15 + $0x8] sm:$0x3] }
 0x4e2   : > { %v4001_v45 = vpack.c.bf16 %v3997_v49, %v3997_v49  ;;  %v4279_v44 = vrot.slane %v4277_v60, 1  ;;  %v4282_v30 = vrot.slane %v4280_v31, 2  ;;  %v4479_v49 = vld [vmem:[%s8536_s11 + $0x38] sm:$0xf]  ;;  %v6265_v60 = vld [vmem:[%s8536_s11 + $0x30] sm:$0xff] }
 0x4e3   : > { %v4015_v54 = vld [vmem:[#allocation3 + $0x8] sm:$0xf]  ;;  %v4605_v15 = vpack.c.b16 %v4597_v32, %v4597_v32 }
 0x4e4   : > { %v4010_v40 = vsel %vm4008_vm14, %v4001_v45, %v4009_v58  ;;  %v4033_v19 = vunpack.c.l.b16 %v4015_v54  ;;  %v4283_v21 = vor.u32 %v4282_v30, %v4279_v44  ;;  %v4513_v58 = vunpack.c.l.b16 %v4479_v49  ;;  %v6324_v45 = vld [vmem:[%s8534_s9] ss:$0 sm:$0xff]  ;;  %v6264_v30 = vld [vmem:[%s8536_s11 + $0x28] sm:$0xff] }
 0x4e5   : > { %4011 = vst [vmem:[#allocation3 + $0xc] sm:$0x7] %v4010_v40  ;;  %v4614_v20 = vsel %vm1559_vm2, %v4605_v15, 0  ;;  %v4728_v15 = vld [vmem:[%s8542_s17 + $0x28] sm:$0x3] }
 0x4e6   : > { %v4521_v59 = vpack.c.b16 %v4513_v58, %v4513_v58  ;;  %4616 = vmatpush.bf16.msra.mxu3 %v4614_v20  ;;  %v6273_v58 = vld [vmem:[%s8540_s15] sm:$0xff] }
 0x4e8   : > { %v4534_v54 = vsel %vm1559_vm2, %v4521_v59, 0 }
 0x4e9   : > { %4536 = vmatpush.bf16.msrb.mxu2 %v4534_v54 }
 0x4ea   : > { %4617 = vmatpush.bf16.msra.mxu3 %v6272_v10 }
 0x4ec   : > { %v4016_v12 = vld [vmem:[#allocation3 + $0xc] sm:$0x1] }
 0x4ed   : > { %v4184_v13 = vld [vmem:[#allocation3 + $0xc] sm:$0x3]  ;;  %v4034_v47 = vunpack.c.l.b16 %v4016_v12  ;;  %4537 = vmatpush.bf16.msrb.mxu2 %v6265_v60  ;;  %v6278_v60 = vld [vmem:[%s8542_s17 + $0x20] sm:$0xff] }
 0x4ee   : > { %v4199_v8 = vunpack.c.l.b16 %v4184_v13  ;;  %v4353_v56 = vld [vmem:[#allocation3 + $0xc] sm:$0x7] }
 0x4ef   : > { %v4036_v25 = vpack.c.b16 %v4034_v47, %v4033_v19  ;;  %v4368_v29 = vunpack.c.l.b16 %v4353_v56 }
 0x4f0   : > { %v4201_v46 = vpack.c.b16 %v4199_v8, %v4033_v19 }
 0x4f1   : > { %5851 = vmatmul.msk.bf16.gmra.mxu0 %vm4067_vm11, %v4036_v25  ;;  %v4117_v51 = vshll.u32 %v4036_v25, 16  ;;  %v4370_v42 = vpack.c.b16 %v4368_v29, %v4033_v19  ;;  %v4121_v36 = vshrl.u32 %v4036_v25, 16  ;;  %4538 = vmatpush.bf16.msrb.mxu2 %v6264_v30  ;;  %v6276_v30 = vld [vmem:[%s8542_s17 + $0x10] sm:$0xff] }
 0x4f2   : > { %v4203_v33 = vrot.slane %v4201_v46, 1  ;;  %v4285_v17 = vshrl.u32 %v4201_v46, 16  ;;  %v4288_v55 = vshll.u32 %v4201_v46, 16  ;;  %v6271_v46 = vld [vmem:[%s8538_s13 + $0x28] sm:$0xff] }
 0x4f3   : > { %v4119_v27 = vrot.slane %v4117_v51, 1  ;;  %v4373_v41 = vrot.slane %v4370_v42, 2  ;;  %4618 = vmatpush.bf16.msra.mxu3 %v6271_v46  ;;  %v4633_v46 = vld [vmem:[%s719_s22 + $0x1] sm:$0x1] }
 0x4f4   : > { %v4204_v52 = vsel %vm3359_vm9, %v4202_v63, %v4203_v33  ;;  %v4287_v6 = vrot.slane %v4285_v17, 1  ;;  %v4290_v62 = vrot.slane %v4288_v55, 2 }
 0x4f5   : > { %5914 = vmatmul.msk.bf16.vlgmr.msra.gmra.mxu2 %vm4067_vm11, %v4204_v52  ;;  %v4120_v26 = vsel %vm1105_vm1, %v4116_v57, %v4119_v27  ;;  %v4374_v2 = vsel %vm4371_vm0, %v4372_v18, %v4373_v41  ;;  %v4123_v24 = vor.u32 %v4121_v36, %v4119_v27  ;;  %v6270_v57 = vld [vmem:[%s8538_s13 + $0x20] sm:$0xff]  ;;  %vm4445_vm1 = vcmask 1044480   ;;  %v6268_v36 = vld [vmem:[%s8538_s13 + $0x10] sm:$0xff] }
 0x4f6   : > { %v4291_v0 = vor.u32 %v4290_v62, %v4287_v6  ;;  %5882 = vmatmul.msk.bf16.vlgmr.msra.gmra.mxu1 %vm4067_vm11, %v4120_v26  ;;  %v6263_v62 = vld [vmem:[%s8536_s11 + $0x20] sm:$0xff] }
 0x4f7   : > { %4619 = vmatpush.bf16.msra.mxu3 %v6270_v57  ;;  %4539 = vmatpush.bf16.msrb.mxu2 %v6263_v62 }
 0x4f8   : > { %v4292_v22 = vsel %vm4275_vm15, %v4283_v21, %v4291_v0 }
 0x4f9   : > { %5946 = vmatmul.msk.bf16.vlgmr.msrb.gmra.mxu3 %vm4067_vm11, %v4292_v22  ;;  %v6269_v22 = vld [vmem:[%s8538_s13 + $0x18] sm:$0xff] }
 0x4fb   : > { %4620 = vmatpush.bf16.msra.mxu3 %v6269_v22 }
 0x4ff   : > { %4621 = vmatpush.bf16.msra.mxu3 %v6268_v36 }
 0x501   : > { %5978 = vmatmul.msk.bf16.vlgmr.msrb.gmra.mxu0 %vm4067_vm11, %v4374_v2 }
 0x505   : > { %5915 = vmatmul.msk.bf16.gmra.mxu2 %vm4067_vm11, %v4203_v33 }
 0x506   : > { %5883 = vmatmul.msk.bf16.gmra.mxu1 %vm4067_vm11, %v4123_v24 }
 0x509   : > { %5947 = vmatmul.msk.bf16.gmra.mxu3 %vm4067_vm11, %v4291_v0  ;;  %v6365_v0 = vmov 65535  }
 0x50a   : > { %v4446_v43 = vsel %vm1559_vm2, 4294967295, %v6365_v0  ;;  %vm4441_vm2 = vcmask 203776  }
 0x511   : > { %5979 = vmatmul.msk.bf16.gmra.mxu0 %vm4067_vm11, %v4373_v41  ;;  %v4447_v41 = vsel %vm4445_vm1, %v4446_v43, 0 }
 0x559   : > { %v4083_v5 = vpop.f32.mrf.mxu0 }
 0x55a   : > { %v4096_v7 = vadd.f32 %v6324_v45, %v4083_v5 }
 0x561   : > { %v4085_v35 = vpop.f32.mrf.mxu0 }
 0x562   : > { %v4097_v47 = vadd.f32 %v6324_v45, %v4085_v35 }
 0x56e   : > { %v4088_v50 = vpop.f32.mrf.mxu0 }
 0x56f   : > { %v4098_v40 = vadd.f32 %v6324_v45, %v4088_v50  ;;  %v6267_v50 = vld [vmem:[%s8538_s13 + $0x8] sm:$0xff] }
 0x570   : > { %4622 = vmatpush.bf16.msra.mxu3 %v6267_v50 }
 0x573   : > { %v4169_v14 = vpop.f32.mrf.mxu1 }
 0x574   : > { %v4179_v33 = vadd.f32 %v4169_v14, %v4096_v7 }
 0x576   : > { %v4090_v48 = vpop.f32.mrf.mxu0 }
 0x577   : > { %v4099_v31 = vadd.f32 %v6324_v45, %v4090_v48  ;;  %v4440_v48 = vld [vmem:[%s8535_s10] sm:$0x3] }
 0x578   : > { %v4250_v39 = vpop.f32.mrf.mxu2  ;;  %v6325_v45 = vld [vmem:[%s8539_s14] ss:$0 sm:$0xff] }
 0x579   : > { %v4260_v27 = vadd.f32 %v4250_v39, %v4179_v33  ;;  %v6262_v39 = vld [vmem:[%s8536_s11 + $0x18] sm:$0xff] }
 0x57a   : > { %4540 = vmatpush.bf16.msrb.mxu2 %v6262_v39  ;;  %v6275_v39 = vld [vmem:[%s8542_s17 + $0x8] sm:$0xff] }
 0x57b   : > { %v4171_v3 = vpop.f32.mrf.mxu1 }
 0x57c   : > { %v4338_v9 = vpop.f32.mrf.mxu3  ;;  %v4180_v63 = vadd.f32 %v4171_v3, %v4097_v47  ;;  %v6261_v3 = vld [vmem:[%s8536_s11 + $0x10] sm:$0xff] }
 0x57d   : > { %v4348_v26 = vadd.f32 %v4338_v9, %v4260_v27  ;;  %v6260_v9 = vld [vmem:[%s8536_s11 + $0x8] sm:$0xff] }
 0x57e   : > { %v4420_v23 = vpop.f32.mrf.mxu0  ;;  %4541 = vmatpush.bf16.msrb.mxu2 %v6261_v3  ;;  %v6274_v3 = vld [vmem:[%s8542_s17] sm:$0xff] }
 0x57f   : > { %v4430_v18 = vadd.f32 %v4420_v23, %v4348_v26  ;;  %v6266_v23 = vld [vmem:[%s8538_s13] sm:$0xff] }
 0x580   : > { %v4252_v37 = vpop.f32.mrf.mxu2  ;;  %4623 = vmatpush.bf16.msra.mxu3 %v6266_v23 }
 0x581   : > { %v4261_v17 = vadd.f32 %v4252_v37, %v4180_v63  ;;  %v4434_v35 = vmax.f32 %v4430_v18, 0.0  ;;  %v6259_v37 = vld [vmem:[%s8536_s11] sm:$0xff] }
 0x582   : > { %4542 = vmatpush.bf16.msrb.mxu2 %v6260_v9  ;;  %v4634_v63 = vld [vmem:[%s719_s22 + $0x2] sm:$0x1]  ;;  %v6327_v9 = vld [vmem:[%s8541_s16] ss:$0 sm:$0xff] }
 0x583   : > { %v4174_v38 = vpop.f32.mrf.mxu1 }
 0x584   : > { %v4340_v34 = vpop.f32.mrf.mxu3  ;;  %v4181_v12 = vadd.f32 %v4174_v38, %v4098_v40 }
 0x585   : > { %v4349_v52 = vadd.f32 %v4340_v34, %v4261_v17 }
 0x586   : > { %v4422_v28 = vpop.f32.mrf.mxu0  ;;  %4543 = vmatpush.bf16.msrb.mxu2 %v6259_v37 }
 0x587   : > { %v4431_v1 = vadd.f32 %v4422_v28, %v4349_v52 }
 0x588   : > { %v4255_v16 = vpop.f32.mrf.mxu2 }
 0x589   : > { %v4262_v8 = vadd.f32 %v4255_v16, %v4181_v12  ;;  %v4435_v24 = vmax.f32 %v4431_v1, 0.0  ;;  %v4692_v16 = vunpack.c.l.b16 %v4664_v61  ;;  %v6328_v61 = vld [vmem:[%s8543_s18] ss:$0 sm:$0xff] }
 0x58b   : > { %v4176_v13 = vpop.f32.mrf.mxu1  ;;  %v4438_v14 = vpack.c.bf16 %v4435_v24, %v4434_v35  ;;  %v4694_v32 = vpack.c.b16 %v4692_v16, %v4692_v16 }
 0x58c   : > { %v4343_v4 = vpop.f32.mrf.mxu3  ;;  %v4182_v25 = vadd.f32 %v4176_v13, %v4099_v31  ;;  %v6326_v31 = vld [vmem:[%s8537_s12] ss:$0 sm:$0xff] }
 0x58d   : > { %v4350_v44 = vadd.f32 %v4343_v4, %v4262_v8  ;;  %v4701_v49 = vsel %vm2866_vm7, %v4694_v32, 0  ;;  %v4754_v4 = vunpack.c.l.b16 %v4728_v15  ;;  %v6277_v8 = vld [vmem:[%s8542_s17 + $0x18] sm:$0xff] }
 0x58e   : > { %v4425_v19 = vpop.f32.mrf.mxu0 }
 0x58f   : > { %v4432_v6 = vadd.f32 %v4425_v19, %v4350_v44  ;;  %v4760_v10 = vpack.c.b16 %v4754_v4, %v4754_v4  ;;  %v4635_v44 = vld [vmem:[%s719_s22 + $0x3] sm:$0x1] }
 0x590   : > { %v4257_v11 = vpop.f32.mrf.mxu2 }
 0x591   : > { %v4263_v51 = vadd.f32 %v4257_v11, %v4182_v25  ;;  %v4436_v42 = vmax.f32 %v4432_v6, 0.0  ;;  %v4770_v12 = vsel %vm2866_vm7, %v4760_v10, 0  ;;  %v4632_v25 = vld [vmem:[%s719_s22] sm:$0x1]  ;;  %vm4696_vm7 = vcmask 162816  }
 0x592   : > { %4774 = vmatpush.bf16.msra.mxu2 %v4770_v12 }
 0x594   : > { %v4345_v55 = vpop.f32.mrf.mxu3 }
 0x595   : > { %v4351_v56 = vadd.f32 %v4345_v55, %v4263_v51 }
 0x596   : > { %v4427_v29 = vpop.f32.mrf.mxu0  ;;  %4775 = vmatpush.bf16.msra.mxu2 %v6278_v60 }
 0x597   : > { %v4433_v21 = vadd.f32 %v4427_v29, %v4351_v56 }
 0x599   : > { %v4437_v53 = vmax.f32 %v4433_v21, 0.0 }
 0x59a   : > { %4776 = vmatpush.bf16.msra.mxu2 %v6277_v8 }
 0x59b   : > { %v4439_v2 = vpack.c.bf16 %v4437_v53, %v4436_v42 }
 0x59d   : > { %v4449_v5 = vand.u32 %v4447_v41, %v4439_v2 }
 0x59e   : > { %4777 = vmatpush.bf16.msra.mxu2 %v6276_v30 }
 0x59f   : > { %4457 = vmatpush.bf16.msrb.mxu1 %v4449_v5 }
 0x5a2   : > { %4778 = vmatpush.bf16.msra.mxu2 %v6275_v39 }
 0x5a3   : > { %4458 = vmatpush.bf16.msrb.mxu1 %v4438_v14 }
 0x5a6   : > { %5980 = vmatmul.msk.bf16.vlgmr.msrb.gmra.mxu1 %vm4441_vm2, %v4440_v48  ;;  %4779 = vmatpush.bf16.msra.mxu2 %v6274_v3 }
 0x5a7   : > { %4709 = vmatpush.bf16.msra.mxu1 %v4701_v49 }
 0x5ab   : > { %4710 = vmatpush.bf16.msra.mxu1 %v6273_v58 }
 0x623   : > { %v4460_v38 = vpop.f32.mrf.mxu1 }
 0x624   : > { %v4464_v34 = vpack.c.bf16 %v4460_v38, %v4460_v38 }
 0x626   : > { %6038 = vmatmul.msk.bf16.vlgmr.msra.gmra.mxu3 %vm4529_vm3, %v4464_v34  ;;  %6009 = vmatmul.msk.bf16.vlgmr.msrb.gmra.mxu2 %vm4529_vm3, %v4464_v34 }
 0x62b   : > { %v4462_v28 = vpop.f32.mrf.mxu1 }
 0x6a9   : > { %v4625_v59 = vpop.f32.mrf.mxu3  ;;  %v4545_v40 = vpop.f32.mrf.mxu2 }
 0x6aa   : > { %v4626_v20 = vadd.f32 %v6325_v45, %v4625_v59  ;;  %v4546_v11 = vadd.f32 %v6326_v31, %v4545_v40 }
 0x6ac   : > { %v4629_v54 = vmul.f32 0.5, %v4626_v20  ;;  %v4648_v56 = vrot.slane %v4546_v11, 1  ;;  %v4649_v57 = vrot.slane %v4546_v11, 2  ;;  %v4650_v27 = vrot.slane %v4546_v11, 3 }
 0x6ae   : > { %v4630_v13 = vmul.f32 1.442695, %v4629_v54 }
 0x6b0   : > { %6329 = vpow2.f32 %v4630_v13 }
 0x6b1   : > { %v4547_v19 = vpop.f32.mrf.mxu2  ;;  %v4627_v47 = vpop.f32.mrf.mxu3 }
 0x6b6   : > { %v6330_v7 = vpop.eup %6329 }
 0x6b7   : > { %v4637_v51 = vrot.slane %v6330_v7, 1  ;;  %v4638_v33 = vrot.slane %v6330_v7, 2  ;;  %v4639_v17 = vrot.slane %v6330_v7, 3  ;;  %v4643_v55 = vmul.f32 %v6330_v7, %v4632_v25 }
 0x6b9   : > { %v4644_v52 = vmul.f32 %v4637_v51, %v4633_v46  ;;  %v4645_v6 = vmul.f32 %v4638_v33, %v4634_v63  ;;  %v4646_v62 = vmul.f32 %v4639_v17, %v4635_v44  ;;  %v4654_v29 = vadd.f32 %v4643_v55, %v4546_v11 }
 0x6bb   : > { %v4655_v26 = vadd.f32 %v4648_v56, %v4644_v52  ;;  %v4656_v21 = vadd.f32 %v4649_v57, %v4645_v6  ;;  %v4657_v0 = vadd.f32 %v4650_v27, %v4646_v62  ;;  %v4658_v43 = vpack.c.bf16 %v4654_v29, %v4654_v29 }
 0x6bd   : > { %v4659_v22 = vpack.c.bf16 %v4655_v26, %v4655_v26  ;;  %v4660_v1 = vpack.c.bf16 %v4656_v21, %v4656_v21  ;;  %v4661_v42 = vpack.c.bf16 %v4657_v0, %v4657_v0  ;;  %v4673_v2 = vunpack.c.l.b16 %v4658_v43 }
 0x6bf   : > { %v4674_v53 = vunpack.c.l.b16 %v4659_v22  ;;  %v4675_v41 = vunpack.c.l.b16 %v4660_v1  ;;  %v4676_v18 = vunpack.c.l.b16 %v4661_v42 }
 0x6c1   : > { %v4677_v36 = vrot.slane %v4674_v53, 7  ;;  %v4680_v24 = vrot.slane %v4675_v41, 6  ;;  %v4683_v35 = vrot.slane %v4676_v18, 5 }
 0x6c3   : > { %v4679_v5 = vsel %vm4678_vm4, %v4677_v36, %v4673_v2 }
 0x6c4   : > { %v4682_v50 = vsel %vm4681_vm5, %v4680_v24, %v4679_v5 }
 0x6c5   : > { %v4685_v14 = vsel %vm4684_vm6, %v4683_v35, %v4682_v50 }
 0x6c6   : > { %v4686_v48 = vpack.c.b16 %v4685_v14, %v4685_v14 }
 0x6c8   : > { %6043 = vmatmul.msk.bf16.vlgmr.msra.gmra.mxu1 %vm4696_vm7, %v4686_v48 }
 0x745   : > { %v4712_v23 = vpop.f32.mrf.mxu1 }
 0x746   : > { %v4713_v37 = vadd.f32 %v6327_v9, %v4712_v23 }
 0x748   : > { %v4716_v38 = vmax.f32 %v4713_v37, 0.0 }
 0x74a   : > { %v4717_v34 = vpack.c.bf16 %v4716_v38, %v4716_v38 }
 0x74c   : > { %6064 = vmatmul.msk.bf16.vlgmr.msra.gmra.mxu2 %vm2859_vm8, %v4717_v34 }
 0x74d   : > { %v4714_v28 = vpop.f32.mrf.mxu1 }
 0x7cf   : > { %v4781_v16 = vpop.f32.mrf.mxu2 }
 0x7d0   : > { %v4782_v32 = vadd.f32 %v6328_v61, %v4781_v16 }
 0x7d2   : > { %v4786_v49 = vrot.slane %v4782_v32, 1  ;;  %v4787_v58 = vrot.slane %v4782_v32, 2  ;;  %4792 = vst [vmem:[%s724_s20] sm:$0x1] %v4782_v32  ;;  %v4788_v45 = vrot.slane %v4782_v32, 3 }
 0x7d4   : > { %4793 = vst [vmem:[%s724_s20 + $0x1] sm:$0x1] %v4786_v49 }
 0x7d5   : > { %4794 = vst [vmem:[%s724_s20 + $0x2] sm:$0x1] %v4787_v58 }
 0x7d6   : > { %4795 = vst [vmem:[%s724_s20 + $0x3] sm:$0x1] %v4788_v45 }
 0x7d7   : > { %v4783_v15 = vpop.f32.mrf.mxu2 }
 0x7d8 PF: > { %s8562_s0 = sld [smem:[#allocation5_spill]]  ;;  %p26_p9 = scmp.ge.s32.totalorder %s6483_s1, 4  }
 0x7d9   : > { %s8563_s30 = sld [smem:[#allocation6_spill]]  ;;  %s8564_s20 = smov %s6483_s1 }
 0x7da   :  { %28 = sbr.rel (!%p26_p9) target bundleno = 7 (0x7), region = 193 }

</bundles_post_ra>
